<compile_context>
chip_gen: v6e
topology: v6e:2x2x1
jax: 0.10.0
libtpu: 0.0.40
codegen_flags: <defaults>
</compile_context>

<pallas_src>
import functools
import numpy as np
import jax
import jax.numpy as jnp
from jax import lax
from jax.experimental import pallas as pl
from jax.experimental.pallas import tpu as pltpu

_EPS = 1e-5                      # torch BatchNorm default eps
_VMEM = pltpu.MemorySpace.VMEM


# ---------------------------------------------------------------------------
# In-kernel helpers
# ---------------------------------------------------------------------------
def _sigmoid(v):
    # numerically stable sigmoid via tanh (EUP slot)
    return 0.5 * (jnp.tanh(0.5 * v) + 1.0)


def _bn_cols(x, m_col, g_col, b_col):
    """BatchNorm2d (training-mode batch stats), channels = column blocks.
    One (2,C)x(C,C) matmul instead of four selection matmuls."""
    f32 = jnp.float32
    mean0 = jnp.mean(x, axis=0, keepdims=True)
    msq0 = jnp.mean(x * x, axis=0, keepdims=True)
    stats = jnp.concatenate([mean0, msq0], axis=0)                  # (2, C)
    bc = jnp.dot(stats, m_col, preferred_element_type=f32)          # (2, C)
    mean_c = bc[0:1, :]
    var_c = bc[1:2, :] - mean_c * mean_c
    inv = lax.rsqrt(var_c + _EPS)
    return (x - mean_c) * (inv * g_col) + b_col


def _bn_rows(x, m_row, g_row, b_row):
    """BatchNorm1d (training-mode batch stats), channels = row groups.
    One (N,N)x(N,2) matmul instead of four selection matmuls."""
    f32 = jnp.float32
    mean0 = jnp.mean(x, axis=1, keepdims=True)
    msq0 = jnp.mean(x * x, axis=1, keepdims=True)
    stats = jnp.concatenate([mean0, msq0], axis=1)                  # (N, 2)
    bc = jnp.dot(m_row, stats, preferred_element_type=f32)          # (N, 2)
    mean_r = bc[:, 0:1]
    var_r = bc[:, 1:2] - mean_r * mean_r
    inv = lax.rsqrt(var_r + _EPS)
    return (x - mean_r) * (inv * g_row) + b_row


# ---------------------------------------------------------------------------
# The single fused kernel
# ---------------------------------------------------------------------------
def _fused_kernel(xr_ref, wband_ref, ppool_ref, mcolt_ref, k1x1_ref,
                  kpool2_ref, mcolt2_ref, bias_ref, wloc_ref, magg_ref,
                  small6_ref, gcnw_ref, pick_ref, gruw_ref, headw_ref, h0_ref,
                  y_ref, hn_ref, *, meta):
    f32 = jnp.float32
    H = meta['hidden']
    nl = meta['num_layers']
    A = meta['brain_area']
    boff = meta['bias_off']
    soff = meta['small6_off']
    woff = meta['wloc_off']
    goff = meta['gru_off']
    hoff = meta['head_off']

    def dot(a, b):
        return jnp.dot(a, b, preferred_element_type=f32)

    def brow(name):                       # (1, K) row from the bias slab
        s, n = boff[name]
        return bias_ref[:, s:s + n]

    def scol(name):                       # (B*A, K) block from the small slab
        s, n = soff[name]
        return small6_ref[:, s:s + n]

    # ---- T-ception: all 3 branches, all input channels -> ONE matmul ----
    conv = dot(xr_ref[...], wband_ref[...]) + brow('brow')          # (R, nT*To)
    pooled = dot(conv * conv, ppool_ref[...])                       # (R, nT*Wt)
    logpow = jnp.log(jnp.maximum(pooled, 1e-30))   # tiny floor: no -inf/NaN

    # ---- BN_t -> 1x1 conv -> LeakyReLU -> AvgPool(1,2) -> BN_t_ ----
    xbn = _bn_cols(logpow, mcolt_ref[...], brow('gt'), brow('bt'))
    h1 = dot(xbn, k1x1_ref[...]) + brow('b1c')
    h1 = jnp.where(h1 > 0, h1, 0.01 * h1)                           # LeakyReLU
    h2 = dot(h1, kpool2_ref[...])
    feat2d = _bn_cols(h2, mcolt2_ref[...], brow('gt2'), brow('bt2'))
    # feat2d[b*E+e, n*W2+j] == permute(0,2,1,3)+reshape of the torch code

    # ---- local filter: relu(x*w - b) ----
    ws, wn = woff['wloc']
    bs, bn = woff['bloc']
    loc = jnp.maximum(feat2d * wloc_ref[:, ws:ws + wn]
                      - wloc_ref[:, bs:bs + bn], 0.0)

    # ---- aggregate electrodes into brain areas (mean per group) ----
    agg = dot(magg_ref[...], loc)                                   # (B*A, feat)

    # ---- adjacency: relu(xx^T * (G+G^T)) + I, symmetric normalization
    #      (block-diagonal over batch; cross-batch terms masked by gbd) ----
    s = lax.dot_general(agg, agg, (((1,), (1,)), ((), ())),
                        preferred_element_type=f32)                 # (B*A, B*A)
    adj = jnp.maximum(s * scol('gbd'), 0.0) + scol('eyebd')
    rs_r = jnp.sum(adj, axis=1, keepdims=True)
    rs_c = jnp.sum(adj, axis=0, keepdims=True)     # == rs_r.T (adj symmetric)
    d_r = lax.rsqrt(jnp.where(rs_r == 0.0, 1.0, rs_r))
    d_c = lax.rsqrt(jnp.where(rs_c == 0.0, 1.0, rs_c))
    adjn = adj * d_r * d_c

    # ---- bn -> GCN -> bn_ ----
    m_row = scol('mrow')
    gv = scol('gvec')                                               # (B*A, 4)
    xg = _bn_rows(agg, m_row, gv[:, 0:1], gv[:, 1:2])
    xw = dot(xg, gcnw_ref[...]) - brow('gcnb')
    gout = jnp.maximum(dot(adjn, xw), 0.0)
    gbn = _bn_rows(gout, m_row, gv[:, 2:3], gv[:, 3:4])

    # ---- flatten (B*A, og) -> (B, A*og) via row-pick matmuls ----
    feat_head = jnp.concatenate(
        [dot(pick_ref[a], gbn) for a in range(A)], axis=1)          # (B, A*og)

    # ---- GRU single step, fused gates: 2 matmuls / layer ----
    x = feat_head
    for l in range(nl):
        si, ni = goff['wih%d' % l]
        sh, nh = goff['whh%d' % l]
        h = h0_ref[l]
        gi = dot(x, gruw_ref[si:si + ni, :]) + brow('bih%d' % l)    # (B, 3H)
        gh = dot(h, gruw_ref[sh:sh + nh, :]) + brow('bhh%d' % l)    # (B, 3H)
        r = _sigmoid(gi[:, 0:H] + gh[:, 0:H])
        z = _sigmoid(gi[:, H:2 * H] + gh[:, H:2 * H])
        n = jnp.tanh(gi[:, 2 * H:3 * H] + r * gh[:, 2 * H:3 * H])
        h_new = (1.0 - z) * n + z * h
        hn_ref[l] = h_new
        x = h_new

    # ---- host-folded head: sigmoid(x@W_o + feat_head@W_g + b) ----
    so_, no_ = hoff['w_o']
    sg_, ng_ = hoff['w_g']
    y_ref[...] = _sigmoid(dot(x, headw_ref[so_:so_ + no_, :])
                          + dot(feat_head, headw_ref[sg_:sg_ + ng_, :])
                          + brow('bhead'))


# ---------------------------------------------------------------------------
# Host-side packing helpers (one-time prep, never inside the jitted forward)
# ---------------------------------------------------------------------------
def _pack_lanes(segments):
    """Concat along the lane (last) axis, each segment padded to 128 lanes."""
    offs, parts, cur = {}, [], 0
    for name, arr in segments:
        a = np.asarray(arr, np.float32)
        if a.ndim == 1:
            a = a.reshape(1, -1)
        n = a.shape[1]
        npad = -(-n // 128) * 128
        if npad > n:
            a = np.concatenate(
                [a, np.zeros((a.shape[0], npad - n), np.float32)], axis=1)
        parts.append(a)
        offs[name] = (cur, n)
        cur += npad
    return np.concatenate(parts, axis=1), offs


def _pack_sublanes(segments):
    """Concat along the sublane (row) axis, each segment padded to 8 rows."""
    offs, parts, cur = {}, [], 0
    for name, arr in segments:
        a = np.asarray(arr, np.float32)
        r = a.shape[0]
        rpad = -(-r // 8) * 8
        if rpad > r:
            a = np.concatenate(
                [a, np.zeros((rpad - r, a.shape[1]), np.float32)], axis=0)
        parts.append(a)
        offs[name] = (cur, r)
        cur += rpad
    return np.concatenate(parts, axis=0), offs


def prepare_constants(params, cfg, B):
    """One-time host prep: banded conv weights, kron pool/1x1 matrices, BN
    block-averaging matrices, folded head, packed bias/weight slabs."""
    c_in, E, T = cfg['input_size']
    num_t = cfg['num_T']
    pool, step = cfg['pool'], cfg['step']
    kws = cfg['kws']
    t_outs = [T - k + 1 for k in kws]
    n_pools = [(to - pool) // step + 1 for to in t_outs]
    tout_tot = sum(t_outs)
    wt = sum(n_pools)
    w2 = (wt - 2) // 2 + 1
    groups = cfg['groups']
    A = len(groups)
    og = cfg['out_graph']
    hid, nl = cfg['hidden_size'], cfg['num_layers']

    npf = lambda a: np.asarray(jax.device_get(a), np.float32)

    # --- banded temporal conv: all branches and input channels in one matmul
    bands, brows = [], []
    for kw, to, w, bvec in zip(kws, t_outs, params['tw'], params['tb']):
        w_np = npf(w).reshape(num_t, c_in, kw)
        S = np.zeros((kw, T, to), np.float32)
        for k in range(kw):
            S[k, k:k + to, :] += np.eye(to, dtype=np.float32)       # S[k,j+k,j]=1
        bands.append(np.einsum('nck,ktj->ctnj', w_np, S))
        brows.append(np.broadcast_to(npf(bvec)[:, None], (num_t, to)))
    wband = np.concatenate(bands, axis=-1).reshape(c_in * T, num_t * tout_tot)
    brow = np.concatenate(brows, axis=-1).reshape(num_t * tout_tot)

    # --- avg-pool (length=pool, stride=step) as block-diagonal matrix ---
    pbr = np.zeros((tout_tot, wt), np.float32)
    ro, co = 0, 0
    for to, npo in zip(t_outs, n_pools):
        for j in range(npo):
            pbr[ro + j * step:ro + j * step + pool, co + j] = 1.0 / pool
        ro += to
        co += npo
    ppool = np.kron(np.eye(num_t, dtype=np.float32), pbr)

    # --- BN block-averaging matrices (collapse the selection matmuls) ---
    def col_avg(width):
        return np.kron(np.eye(num_t, dtype=np.float32),
                       np.full((width, width), 1.0 / width, np.float32))
    mcol_t = col_avg(wt)
    mcol_t2 = col_avg(w2)
    mrow = np.kron(np.full((B, B), 1.0 / B, np.float32),
                   np.eye(A, dtype=np.float32))

    # --- 1x1 conv + AvgPool(1,2) as kron matmuls ---
    k1x1 = np.kron(npf(params['conv1x1_w']).T, np.eye(wt, dtype=np.float32))
    p2 = np.zeros((wt, w2), np.float32)
    for j in range(w2):
        p2[2 * j, j] = 0.5
        p2[2 * j + 1, j] = 0.5
    kpool2 = np.kron(np.eye(num_t, dtype=np.float32), p2)

    # --- local filter slab ---
    wloc = np.tile(npf(params['local_w']), (B, 1))                  # (B*E, feat)
    bloc = np.tile(npf(params['local_b']).reshape(E, 1), (B, 1))    # (B*E, 1)
    wloc_slab, wloc_off = _pack_lanes([('wloc', wloc), ('bloc', bloc)])

    # --- electrode -> brain-area aggregation matrix ---
    magg = np.zeros((B * A, B * E), np.float32)
    for b in range(B):
        for a, (g0, g1) in enumerate(groups):
            magg[b * A + a, b * E + g0:b * E + g1] = 1.0 / (g1 - g0)

    # --- adjacency constants + BN1d gains/biases, packed into one slab ---
    ga = npf(params['global_adj'])
    gbd = np.kron(np.eye(B, dtype=np.float32), ga + ga.T)
    eyebd = np.eye(B * A, dtype=np.float32)
    gvec = np.stack([np.tile(npf(params['bn1_g']), B),
                     np.tile(npf(params['bn1_b']), B),
                     np.tile(npf(params['bn2_g']), B),
                     np.tile(npf(params['bn2_b']), B)], axis=1)     # (B*A, 4)
    small6_slab, small6_off = _pack_lanes(
        [('gbd', gbd), ('eyebd', eyebd), ('mrow', mrow), ('gvec', gvec)])

    gcnw = npf(params['gcn_w'])                                     # (feat, og)
    gcnb = npf(params['gcn_b']).reshape(-1)                         # (og,)

    # --- flatten picks: feat_head[b, a*og+f] = gbn[b*A+a, f] ---
    pick = np.zeros((A, B, B * A), np.float32)
    for a in range(A):
        for b in range(B):
            pick[a, b, b * A + a] = 1.0

    # --- GRU: fused-gate weights / biases ---
    gru_w_segs, gru_b_segs = [], []
    for l, (wih, whh, bih, bhh) in enumerate(params['gru']):
        gru_w_segs += [('wih%d' % l, npf(wih).T), ('whh%d' % l, npf(whh).T)]
        gru_b_segs += [('bih%d' % l, npf(bih)), ('bhh%d' % l, npf(bhh))]
    gruw_slab, gru_off = _pack_sublanes(gru_w_segs)

    # --- fold fc -> fcLGG -> out_weights (all linear, dropout p=0) ---
    fc1w, fc1b = npf(params['fc1_w']), npf(params['fc1_b'])
    fc2w, fc2b = npf(params['fc2_w']), npf(params['fc2_b'])
    lg1w, lg1b = npf(params['lgg1_w']), npf(params['lgg1_b'])
    lg2w, lg2b = npf(params['lgg2_w']), npf(params['lgg2_b'])
    oww, owb = npf(params['outw_w']), npf(params['outw_b'])
    w_fc = fc1w.T @ fc2w.T                       # (hid, 1)
    b_fc = fc1b @ fc2w.T + fc2b                  # (1,)
    w_lg = lg1w.T @ lg2w.T                       # (A*og, 1)
    b_lg = lg1b @ lg2w.T + lg2b                  # (1,)
    w_o = w_fc * oww[0, 0]
    w_g = w_lg * oww[0, 1]
    b_head = np.array([b_fc[0] * oww[0, 0] + b_lg[0] * oww[0, 1] + owb[0]],
                      np.float32)
    headw_slab, head_off = _pack_sublanes([('w_o', w_o), ('w_g', w_g)])

    # --- all (1, K) bias-like rows packed into one slab ---
    bias_slab, bias_off = _pack_lanes(
        [('brow', brow),
         ('gt', np.repeat(npf(params['bnt_g']), wt)),
         ('bt', np.repeat(npf(params['bnt_b']), wt)),
         ('b1c', np.repeat(npf(params['conv1x1_b']), wt)),
         ('gt2', np.repeat(npf(params['bnt2_g']), w2)),
         ('bt2', np.repeat(npf(params['bnt2_b']), w2)),
         ('gcnb', gcnb),
         ('bhead', b_head)] + gru_b_segs)

    consts = dict(
        wband=wband, ppool=ppool, mcol_t=mcol_t, k1x1=k1x1, kpool2=kpool2,
        mcol_t2=mcol_t2, bias=bias_slab, wloc=wloc_slab, magg=magg,
        small6=small6_slab, gcnw=gcnw, pick=pick, gruw=gruw_slab,
        headw=headw_slab)
    consts = {k: jnp.asarray(v) for k, v in consts.items()}
    meta = dict(batch=B, electrodes=E, c_in=c_in, t_len=T, hidden=hid,
                num_layers=nl, brain_area=A,
                bias_off=bias_off, wloc_off=wloc_off, small6_off=small6_off,
                gru_off=gru_off, head_off=head_off)
    return consts, meta


# ---------------------------------------------------------------------------
# Forward: one gridless pallas_call over the whole network
# ---------------------------------------------------------------------------
def rnn_lggnet_forward(x, consts, meta, h0=None):
    B, c_in, E, T = x.shape
    assert (B == meta['batch'] and E == meta['electrodes']
            and c_in == meta['c_in'] and T == meta['t_len'])
    nl, hid = meta['num_layers'], meta['hidden']
    if h0 is None:
        h0 = jnp.zeros((nl, B, hid), jnp.float32)

    # lane-dense activation layout (B*E, c_in*T); only per-call data movement
    xr = jnp.transpose(x, (0, 2, 1, 3)).reshape(B * E, c_in * T)

    kern = functools.partial(_fused_kernel, meta=meta)
    # Whole-batch, whole-network in one launch; total VMEM footprint ~2.5 MiB,
    # so no grid / blocking is needed (one TensorCore; BN batch stats couple
    # the whole batch so a batch grid would change semantics).
    y, h_n = pl.pallas_call(
        kern,
        out_shape=(jax.ShapeDtypeStruct((B, 1), jnp.float32),
                   jax.ShapeDtypeStruct((nl, B, hid), jnp.float32)),
        in_specs=[pl.BlockSpec(memory_space=_VMEM)] * 16,
        out_specs=(pl.BlockSpec(memory_space=_VMEM),
                   pl.BlockSpec(memory_space=_VMEM)),
    )(xr, consts['wband'], consts['ppool'], consts['mcol_t'], consts['k1x1'],
      consts['kpool2'], consts['mcol_t2'], consts['bias'], consts['wloc'],
      consts['magg'], consts['small6'], consts['gcnw'], consts['pick'],
      consts['gruw'], consts['headw'], h0)
    return y[:, 0], h_n


# ---------------------------------------------------------------------------
# Config / params (deterministic stand-in for the torch state_dict)
# ---------------------------------------------------------------------------
def build_cfg(input_size, sampling_rate, num_T, out_graph, pool, pool_step_rate,
              idx_graph, hidden_size, num_layers):
    c_in, e, t = input_size
    assert sum(idx_graph) == e
    kws = [int(w * sampling_rate) for w in (0.5, 0.25, 0.125)]
    step = int(pool_step_rate * pool)
    t_outs = [t - k + 1 for k in kws]
    n_pools = [(to - pool) // step + 1 for to in t_outs]
    wt = sum(n_pools)
    w2 = (wt - 2) // 2 + 1
    feat = num_T * w2
    bounds = [0]
    for n in idx_graph:
        bounds.append(bounds[-1] + n)
    groups = [(bounds[i], bounds[i + 1]) for i in range(len(idx_graph))]
    return dict(input_size=input_size, kws=kws, pool=pool, step=step, feat=feat,
                num_T=num_T, out_graph=out_graph, groups=groups,
                hidden_size=hidden_size, num_layers=num_layers)


def init_params(key, cfg):
    def nrm(k, shape, scale):
        return scale * jax.random.normal(k, shape, dtype=jnp.float32)

    keys = iter(jax.random.split(key, 64))
    c_in, e, _ = cfg['input_size']
    num_t, og = cfg['num_T'], cfg['out_graph']
    a = len(cfg['groups'])
    feat = cfg['feat']
    hid, nl = cfg['hidden_size'], cfg['num_layers']
    d = a * og
    p = {}
    p['tw'] = [nrm(next(keys), (num_t, c_in, 1, kw), 0.15) for kw in cfg['kws']]
    p['tb'] = [nrm(next(keys), (num_t,), 0.05) for _ in cfg['kws']]
    p['bnt_g'] = jnp.ones((num_t,), jnp.float32)
    p['bnt_b'] = jnp.zeros((num_t,), jnp.float32)
    p['conv1x1_w'] = nrm(next(keys), (num_t, num_t), 0.3)
    p['conv1x1_b'] = nrm(next(keys), (num_t,), 0.05)
    p['bnt2_g'] = jnp.ones((num_t,), jnp.float32)
    p['bnt2_b'] = jnp.zeros((num_t,), jnp.float32)
    p['local_w'] = nrm(next(keys), (e, feat), 0.3)
    p['local_b'] = jnp.zeros((1, e, 1), jnp.float32)
    p['global_adj'] = nrm(next(keys), (a, a), 0.5)
    p['bn1_g'] = jnp.ones((a,), jnp.float32)
    p['bn1_b'] = jnp.zeros((a,), jnp.float32)
    p['gcn_w'] = nrm(next(keys), (feat, og), 0.12)
    p['gcn_b'] = jnp.zeros((1, 1, og), jnp.float32)
    p['bn2_g'] = jnp.ones((a,), jnp.float32)
    p['bn2_b'] = jnp.zeros((a,), jnp.float32)
    gru = []
    in_l = d
    for _ in range(nl):
        gru.append((nrm(next(keys), (3 * hid, in_l), 0.2),
                    nrm(next(keys), (3 * hid, hid), 0.2),
                    nrm(next(keys), (3 * hid,), 0.05),
                    nrm(next(keys), (3 * hid,), 0.05)))
        in_l = hid
    p['gru'] = gru
    p['fc1_w'] = nrm(next(keys), (5, hid), 0.25)
    p['fc1_b'] = nrm(next(keys), (5,), 0.05)
    p['fc2_w'] = nrm(next(keys), (1, 5), 0.3)
    p['fc2_b'] = nrm(next(keys), (1,), 0.05)
    p['lgg1_w'] = nrm(next(keys), (5, d), 0.25)
    p['lgg1_b'] = nrm(next(keys), (5,), 0.05)
    p['lgg2_w'] = nrm(next(keys), (1, 5), 0.3)
    p['lgg2_b'] = nrm(next(keys), (1,), 0.05)
    p['outw_w'] = nrm(next(keys), (1, 2), 0.5)
    p['outw_b'] = nrm(next(keys), (1,), 0.05)
    return p


if __name__ == "__main__":
    input_size = (1, 8, 64)       # (C_in, EEG electrodes, time samples)
    sampling_rate = 32
    num_T = 4
    out_graph = 8
    pool = 4
    pool_step_rate = 0.5
    idx_graph = [2, 3, 3]
    hidden_size = 16
    num_layers = 2
    batch = 2

    cfg = build_cfg(input_size, sampling_rate, num_T, out_graph, pool,
                    pool_step_rate, idx_graph, hidden_size, num_layers)

    key = jax.random.PRNGKey(0)
    kx, kp = jax.random.split(key)
    x = jax.random.normal(kx, (batch,) + input_size, dtype=jnp.float32)
    params = init_params(kp, cfg)
    h0 = jnp.zeros((num_layers, batch, hidden_size), jnp.float32)

    # one-time host prep (banded / kron / averaging constants + packed slabs)
    consts, meta = prepare_constants(params, cfg, batch)

    fwd = jax.jit(lambda xx, cc, hh: rnn_lggnet_forward(xx, cc, meta, hh))
    y, h_n = fwd(x, consts, h0)
    y = jax.block_until_ready(y)
    h_n = jax.block_until_ready(h_n)

    assert y.shape == (batch,)
    assert h_n.shape == (num_layers, batch, hidden_size)
    assert bool(jnp.all(jnp.isfinite(y))) and bool(jnp.all(jnp.isfinite(h_n)))
    print("KERNEL_OK")
</pallas_src>

<mosaic_0001>
module attributes {stable_mosaic.version = 11 : i64} {
  func.func @_fused_kernel(%arg0: memref<16x64xf32, #tpu.memory_space<vmem>>, %arg1: memref<64x668xf32, #tpu.memory_space<vmem>>, %arg2: memref<668x316xf32, #tpu.memory_space<vmem>>, %arg3: memref<316x316xf32, #tpu.memory_space<vmem>>, %arg4: memref<316x316xf32, #tpu.memory_space<vmem>>, %arg5: memref<316x156xf32, #tpu.memory_space<vmem>>, %arg6: memref<156x156xf32, #tpu.memory_space<vmem>>, %arg7: memref<1x3200xf32, #tpu.memory_space<vmem>>, %arg8: memref<16x384xf32, #tpu.memory_space<vmem>>, %arg9: memref<6x16xf32, #tpu.memory_space<vmem>>, %arg10: memref<6x512xf32, #tpu.memory_space<vmem>>, %arg11: memref<156x8xf32, #tpu.memory_space<vmem>>, %arg12: memref<3x2x6xf32, #tpu.memory_space<vmem>>, %arg13: memref<72x48xf32, #tpu.memory_space<vmem>>, %arg14: memref<40x1xf32, #tpu.memory_space<vmem>>, %arg15: memref<2x2x16xf32, #tpu.memory_space<vmem>>, %arg16: memref<2x1xf32, #tpu.memory_space<vmem>>, %arg17: memref<2x2x16xf32, #tpu.memory_space<vmem>>) attributes {dimension_semantics = [], scalar_prefetch = 0 : i64, scratch_operands = 0 : i64, tpu.core_type = #tpu.core_type<tc>} {
    %c0 = arith.constant 0 : index
    %c0_0 = arith.constant 0 : index
    %0 = vector.load %arg0[%c0, %c0_0] : memref<16x64xf32, #tpu.memory_space<vmem>>, vector<16x64xf32>
    %c0_1 = arith.constant 0 : index
    %c0_2 = arith.constant 0 : index
    %1 = vector.load %arg1[%c0_1, %c0_2] : memref<64x668xf32, #tpu.memory_space<vmem>>, vector<64x668xf32>
    %cst = arith.constant dense<0.000000e+00> : vector<16x668xf32>
    %2 = tpu.matmul %0, %1, %cst {dimension_numbers = #tpu.dot_dimension_numbers<[1], [0], [0], [1], [0, 0, 1, 1], [], []>} : vector<16x64xf32>, vector<64x668xf32>, vector<16x668xf32> -> vector<16x668xf32>
    %c0_3 = arith.constant 0 : index
    %c0_4 = arith.constant 0 : index
    %3 = vector.load %arg7[%c0_3, %c0_4] : memref<1x3200xf32, #tpu.memory_space<vmem>>, vector<1x668xf32>
    %4 = vector.broadcast %3 : vector<1x668xf32> to vector<16x668xf32>
    %5 = arith.addf %2, %4 : vector<16x668xf32>
    %6 = arith.mulf %5, %5 : vector<16x668xf32>
    %c0_5 = arith.constant 0 : index
    %c0_6 = arith.constant 0 : index
    %7 = vector.load %arg2[%c0_5, %c0_6] : memref<668x316xf32, #tpu.memory_space<vmem>>, vector<668x316xf32>
    %cst_7 = arith.constant dense<0.000000e+00> : vector<16x316xf32>
    %8 = tpu.matmul %6, %7, %cst_7 {dimension_numbers = #tpu.dot_dimension_numbers<[1], [0], [0], [1], [0, 0, 1, 1], [], []>} : vector<16x668xf32>, vector<668x316xf32>, vector<16x316xf32> -> vector<16x316xf32>
    %cst_8 = arith.constant 1.000000e-30 : f32
    %9 = vector.broadcast %cst_8 : f32 to vector<16x316xf32>
    %10 = arith.maximumf %8, %9 : vector<16x316xf32>
    %11 = math.log %10 : vector<16x316xf32>
    %c0_9 = arith.constant 0 : index
    %c0_10 = arith.constant 0 : index
    %12 = vector.load %arg3[%c0_9, %c0_10] : memref<316x316xf32, #tpu.memory_space<vmem>>, vector<316x316xf32>
    %c0_11 = arith.constant 0 : index
    %c768 = arith.constant 768 : index
    %13 = vector.load %arg7[%c0_11, %c768] : memref<1x3200xf32, #tpu.memory_space<vmem>>, vector<1x316xf32>
    %c0_12 = arith.constant 0 : index
    %c1152 = arith.constant 1152 : index
    %14 = vector.load %arg7[%c0_12, %c1152] : memref<1x3200xf32, #tpu.memory_space<vmem>>, vector<1x316xf32>
    %cst_13 = arith.constant dense<0.000000e+00> : vector<316xf32>
    %15 = vector.multi_reduction <add>, %11, %cst_13 [0] : vector<16x316xf32> to vector<316xf32>
    %16 = vector.shape_cast %15 : vector<316xf32> to vector<1x316xf32>
    %cst_14 = arith.constant 1.600000e+01 : f32
    %17 = vector.broadcast %cst_14 : f32 to vector<1x316xf32>
    %18 = arith.divf %16, %17 : vector<1x316xf32>
    %19 = arith.mulf %11, %11 : vector<16x316xf32>
    %cst_15 = arith.constant dense<0.000000e+00> : vector<316xf32>
    %20 = vector.multi_reduction <add>, %19, %cst_15 [0] : vector<16x316xf32> to vector<316xf32>
    %21 = vector.shape_cast %20 : vector<316xf32> to vector<1x316xf32>
    %cst_16 = arith.constant 1.600000e+01 : f32
    %22 = vector.broadcast %cst_16 : f32 to vector<1x316xf32>
    %23 = arith.divf %21, %22 : vector<1x316xf32>
    %24 = tpu.concatenate %18, %23 in 0 : vector<1x316xf32>, vector<1x316xf32> -> vector<2x316xf32>
    %cst_17 = arith.constant dense<0.000000e+00> : vector<2x316xf32>
    %25 = tpu.matmul %24, %12, %cst_17 {dimension_numbers = #tpu.dot_dimension_numbers<[1], [0], [0], [1], [0, 0, 1, 1], [], []>} : vector<2x316xf32>, vector<316x316xf32>, vector<2x316xf32> -> vector<2x316xf32>
    %26 = vector.extract_strided_slice %25 {offsets = [0, 0], sizes = [1, 316], strides = [1, 1]} : vector<2x316xf32> to vector<1x316xf32>
    %27 = vector.extract_strided_slice %25 {offsets = [1, 0], sizes = [1, 316], strides = [1, 1]} : vector<2x316xf32> to vector<1x316xf32>
    %28 = arith.mulf %26, %26 : vector<1x316xf32>
    %29 = arith.subf %27, %28 : vector<1x316xf32>
    %cst_18 = arith.constant 9.99999974E-6 : f32
    %30 = vector.broadcast %cst_18 : f32 to vector<1x316xf32>
    %31 = arith.addf %29, %30 : vector<1x316xf32>
    %32 = math.rsqrt %31 : vector<1x316xf32>
    %33 = vector.broadcast %26 : vector<1x316xf32> to vector<16x316xf32>
    %34 = arith.subf %11, %33 : vector<16x316xf32>
    %35 = arith.mulf %32, %13 : vector<1x316xf32>
    %36 = vector.broadcast %35 : vector<1x316xf32> to vector<16x316xf32>
    %37 = arith.mulf %34, %36 : vector<16x316xf32>
    %38 = vector.broadcast %14 : vector<1x316xf32> to vector<16x316xf32>
    %39 = arith.addf %37, %38 : vector<16x316xf32>
    %c0_19 = arith.constant 0 : index
    %c0_20 = arith.constant 0 : index
    %40 = vector.load %arg4[%c0_19, %c0_20] : memref<316x316xf32, #tpu.memory_space<vmem>>, vector<316x316xf32>
    %cst_21 = arith.constant dense<0.000000e+00> : vector<16x316xf32>
    %41 = tpu.matmul %39, %40, %cst_21 {dimension_numbers = #tpu.dot_dimension_numbers<[1], [0], [0], [1], [0, 0, 1, 1], [], []>} : vector<16x316xf32>, vector<316x316xf32>, vector<16x316xf32> -> vector<16x316xf32>
    %c0_22 = arith.constant 0 : index
    %c1536 = arith.constant 1536 : index
    %42 = vector.load %arg7[%c0_22, %c1536] : memref<1x3200xf32, #tpu.memory_space<vmem>>, vector<1x316xf32>
    %43 = vector.broadcast %42 : vector<1x316xf32> to vector<16x316xf32>
    %44 = arith.addf %41, %43 : vector<16x316xf32>
    %cst_23 = arith.constant 0.000000e+00 : f32
    %45 = vector.broadcast %cst_23 : f32 to vector<16x316xf32>
    %46 = arith.cmpf ogt, %44, %45 : vector<16x316xf32>
    %cst_24 = arith.constant 0.00999999977 : f32
    %47 = vector.broadcast %cst_24 : f32 to vector<16x316xf32>
    %48 = arith.mulf %47, %44 : vector<16x316xf32>
    %49 = arith.select %46, %44, %48 : vector<16x316xi1>, vector<16x316xf32>
    %c0_25 = arith.constant 0 : index
    %c0_26 = arith.constant 0 : index
    %50 = vector.load %arg5[%c0_25, %c0_26] : memref<316x156xf32, #tpu.memory_space<vmem>>, vector<316x156xf32>
    %cst_27 = arith.constant dense<0.000000e+00> : vector<16x156xf32>
    %51 = tpu.matmul %49, %50, %cst_27 {dimension_numbers = #tpu.dot_dimension_numbers<[1], [0], [0], [1], [0, 0, 1, 1], [], []>} : vector<16x316xf32>, vector<316x156xf32>, vector<16x156xf32> -> vector<16x156xf32>
    %c0_28 = arith.constant 0 : index
    %c0_29 = arith.constant 0 : index
    %52 = vector.load %arg6[%c0_28, %c0_29] : memref<156x156xf32, #tpu.memory_space<vmem>>, vector<156x156xf32>
    %c0_30 = arith.constant 0 : index
    %c1920 = arith.constant 1920 : index
    %53 = vector.load %arg7[%c0_30, %c1920] : memref<1x3200xf32, #tpu.memory_space<vmem>>, vector<1x156xf32>
    %c0_31 = arith.constant 0 : index
    %c2176 = arith.constant 2176 : index
    %54 = vector.load %arg7[%c0_31, %c2176] : memref<1x3200xf32, #tpu.memory_space<vmem>>, vector<1x156xf32>
    %cst_32 = arith.constant dense<0.000000e+00> : vector<156xf32>
    %55 = vector.multi_reduction <add>, %51, %cst_32 [0] : vector<16x156xf32> to vector<156xf32>
    %56 = vector.shape_cast %55 : vector<156xf32> to vector<1x156xf32>
    %cst_33 = arith.constant 1.600000e+01 : f32
    %57 = vector.broadcast %cst_33 : f32 to vector<1x156xf32>
    %58 = arith.divf %56, %57 : vector<1x156xf32>
    %59 = arith.mulf %51, %51 : vector<16x156xf32>
    %cst_34 = arith.constant dense<0.000000e+00> : vector<156xf32>
    %60 = vector.multi_reduction <add>, %59, %cst_34 [0] : vector<16x156xf32> to vector<156xf32>
    %61 = vector.shape_cast %60 : vector<156xf32> to vector<1x156xf32>
    %cst_35 = arith.constant 1.600000e+01 : f32
    %62 = vector.broadcast %cst_35 : f32 to vector<1x156xf32>
    %63 = arith.divf %61, %62 : vector<1x156xf32>
    %64 = tpu.concatenate %58, %63 in 0 : vector<1x156xf32>, vector<1x156xf32> -> vector<2x156xf32>
    %cst_36 = arith.constant dense<0.000000e+00> : vector<2x156xf32>
    %65 = tpu.matmul %64, %52, %cst_36 {dimension_numbers = #tpu.dot_dimension_numbers<[1], [0], [0], [1], [0, 0, 1, 1], [], []>} : vector<2x156xf32>, vector<156x156xf32>, vector<2x156xf32> -> vector<2x156xf32>
    %66 = vector.extract_strided_slice %65 {offsets = [0, 0], sizes = [1, 156], strides = [1, 1]} : vector<2x156xf32> to vector<1x156xf32>
    %67 = vector.extract_strided_slice %65 {offsets = [1, 0], sizes = [1, 156], strides = [1, 1]} : vector<2x156xf32> to vector<1x156xf32>
    %68 = arith.mulf %66, %66 : vector<1x156xf32>
    %69 = arith.subf %67, %68 : vector<1x156xf32>
    %cst_37 = arith.constant 9.99999974E-6 : f32
    %70 = vector.broadcast %cst_37 : f32 to vector<1x156xf32>
    %71 = arith.addf %69, %70 : vector<1x156xf32>
    %72 = math.rsqrt %71 : vector<1x156xf32>
    %73 = vector.broadcast %66 : vector<1x156xf32> to vector<16x156xf32>
    %74 = arith.subf %51, %73 : vector<16x156xf32>
    %75 = arith.mulf %72, %53 : vector<1x156xf32>
    %76 = vector.broadcast %75 : vector<1x156xf32> to vector<16x156xf32>
    %77 = arith.mulf %74, %76 : vector<16x156xf32>
    %78 = vector.broadcast %54 : vector<1x156xf32> to vector<16x156xf32>
    %79 = arith.addf %77, %78 : vector<16x156xf32>
    %c0_38 = arith.constant 0 : index
    %c0_39 = arith.constant 0 : index
    %80 = vector.load %arg8[%c0_38, %c0_39] : memref<16x384xf32, #tpu.memory_space<vmem>>, vector<16x156xf32>
    %81 = arith.mulf %79, %80 : vector<16x156xf32>
    %c0_40 = arith.constant 0 : index
    %c256 = arith.constant 256 : index
    %82 = vector.load %arg8[%c0_40, %c256] : memref<16x384xf32, #tpu.memory_space<vmem>>, vector<16x1xf32>
    %83 = vector.broadcast %82 : vector<16x1xf32> to vector<16x156xf32>
    %84 = arith.subf %81, %83 : vector<16x156xf32>
    %cst_41 = arith.constant 0.000000e+00 : f32
    %85 = vector.broadcast %cst_41 : f32 to vector<16x156xf32>
    %86 = arith.maximumf %84, %85 : vector<16x156xf32>
    %c0_42 = arith.constant 0 : index
    %c0_43 = arith.constant 0 : index
    %87 = vector.load %arg9[%c0_42, %c0_43] : memref<6x16xf32, #tpu.memory_space<vmem>>, vector<6x16xf32>
    %cst_44 = arith.constant dense<0.000000e+00> : vector<6x156xf32>
    %88 = tpu.matmul %87, %86, %cst_44 {dimension_numbers = #tpu.dot_dimension_numbers<[1], [0], [0], [1], [0, 0, 1, 1], [], []>} : vector<6x16xf32>, vector<16x156xf32>, vector<6x156xf32> -> vector<6x156xf32>
    %cst_45 = arith.constant dense<0.000000e+00> : vector<6x6xf32>
    %89 = tpu.matmul %88, %88, %cst_45 {dimension_numbers = #tpu.dot_dimension_numbers<[1], [1], [0], [0], [0, 0, 1, 0], [], []>} : vector<6x156xf32>, vector<6x156xf32>, vector<6x6xf32> -> vector<6x6xf32>
    %c0_46 = arith.constant 0 : index
    %c0_47 = arith.constant 0 : index
    %90 = vector.load %arg10[%c0_46, %c0_47] : memref<6x512xf32, #tpu.memory_space<vmem>>, vector<6x6xf32>
    %91 = arith.mulf %89, %90 : vector<6x6xf32>
    %cst_48 = arith.constant 0.000000e+00 : f32
    %92 = vector.broadcast %cst_48 : f32 to vector<6x6xf32>
    %93 = arith.maximumf %91, %92 : vector<6x6xf32>
    %c0_49 = arith.constant 0 : index
    %c128 = arith.constant 128 : index
    %94 = vector.load %arg10[%c0_49, %c128] : memref<6x512xf32, #tpu.memory_space<vmem>>, vector<6x6xf32>
    %95 = arith.addf %93, %94 : vector<6x6xf32>
    %cst_50 = arith.constant dense<0.000000e+00> : vector<6xf32>
    %96 = vector.multi_reduction <add>, %95, %cst_50 [1] : vector<6x6xf32> to vector<6xf32>
    %97 = vector.shape_cast %96 : vector<6xf32> to vector<6x1xf32>
    %cst_51 = arith.constant dense<0.000000e+00> : vector<6xf32>
    %98 = vector.multi_reduction <add>, %95, %cst_51 [0] : vector<6x6xf32> to vector<6xf32>
    %99 = vector.shape_cast %98 : vector<6xf32> to vector<1x6xf32>
    %cst_52 = arith.constant 0.000000e+00 : f32
    %100 = vector.broadcast %cst_52 : f32 to vector<6x1xf32>
    %101 = arith.cmpf oeq, %97, %100 : vector<6x1xf32>
    %cst_53 = arith.constant 1.000000e+00 : f32
    %102 = vector.broadcast %cst_53 : f32 to vector<6x1xf32>
    %103 = arith.select %101, %102, %97 : vector<6x1xi1>, vector<6x1xf32>
    %104 = math.rsqrt %103 : vector<6x1xf32>
    %cst_54 = arith.constant 0.000000e+00 : f32
    %105 = vector.broadcast %cst_54 : f32 to vector<1x6xf32>
    %106 = arith.cmpf oeq, %99, %105 : vector<1x6xf32>
    %cst_55 = arith.constant 1.000000e+00 : f32
    %107 = vector.broadcast %cst_55 : f32 to vector<1x6xf32>
    %108 = arith.select %106, %107, %99 : vector<1x6xi1>, vector<1x6xf32>
    %109 = math.rsqrt %108 : vector<1x6xf32>
    %110 = vector.broadcast %104 : vector<6x1xf32> to vector<6x6xf32>
    %111 = arith.mulf %95, %110 : vector<6x6xf32>
    %112 = vector.broadcast %109 : vector<1x6xf32> to vector<6x6xf32>
    %113 = arith.mulf %111, %112 : vector<6x6xf32>
    %c0_56 = arith.constant 0 : index
    %c256_57 = arith.constant 256 : index
    %114 = vector.load %arg10[%c0_56, %c256_57] : memref<6x512xf32, #tpu.memory_space<vmem>>, vector<6x6xf32>
    %c0_58 = arith.constant 0 : index
    %c384 = arith.constant 384 : index
    %115 = vector.load %arg10[%c0_58, %c384] : memref<6x512xf32, #tpu.memory_space<vmem>>, vector<6x4xf32>
    %116 = vector.extract_strided_slice %115 {offsets = [0, 0], sizes = [6, 1], strides = [1, 1]} : vector<6x4xf32> to vector<6x1xf32>
    %117 = vector.extract_strided_slice %115 {offsets = [0, 1], sizes = [6, 1], strides = [1, 1]} : vector<6x4xf32> to vector<6x1xf32>
    %cst_59 = arith.constant dense<0.000000e+00> : vector<6xf32>
    %118 = vector.multi_reduction <add>, %88, %cst_59 [1] : vector<6x156xf32> to vector<6xf32>
    %119 = vector.shape_cast %118 : vector<6xf32> to vector<6x1xf32>
    %cst_60 = arith.constant 1.560000e+02 : f32
    %120 = vector.broadcast %cst_60 : f32 to vector<6x1xf32>
    %121 = arith.divf %119, %120 : vector<6x1xf32>
    %122 = arith.mulf %88, %88 : vector<6x156xf32>
    %cst_61 = arith.constant dense<0.000000e+00> : vector<6xf32>
    %123 = vector.multi_reduction <add>, %122, %cst_61 [1] : vector<6x156xf32> to vector<6xf32>
    %124 = vector.shape_cast %123 : vector<6xf32> to vector<6x1xf32>
    %cst_62 = arith.constant 1.560000e+02 : f32
    %125 = vector.broadcast %cst_62 : f32 to vector<6x1xf32>
    %126 = arith.divf %124, %125 : vector<6x1xf32>
    %127 = tpu.concatenate %121, %126 in 1 : vector<6x1xf32>, vector<6x1xf32> -> vector<6x2xf32>
    %cst_63 = arith.constant dense<0.000000e+00> : vector<6x2xf32>
    %128 = tpu.matmul %114, %127, %cst_63 {dimension_numbers = #tpu.dot_dimension_numbers<[1], [0], [0], [1], [0, 0, 1, 1], [], []>} : vector<6x6xf32>, vector<6x2xf32>, vector<6x2xf32> -> vector<6x2xf32>
    %129 = vector.extract_strided_slice %128 {offsets = [0, 0], sizes = [6, 1], strides = [1, 1]} : vector<6x2xf32> to vector<6x1xf32>
    %130 = vector.extract_strided_slice %128 {offsets = [0, 1], sizes = [6, 1], strides = [1, 1]} : vector<6x2xf32> to vector<6x1xf32>
    %131 = arith.mulf %129, %129 : vector<6x1xf32>
    %132 = arith.subf %130, %131 : vector<6x1xf32>
    %cst_64 = arith.constant 9.99999974E-6 : f32
    %133 = vector.broadcast %cst_64 : f32 to vector<6x1xf32>
    %134 = arith.addf %132, %133 : vector<6x1xf32>
    %135 = math.rsqrt %134 : vector<6x1xf32>
    %136 = vector.broadcast %129 : vector<6x1xf32> to vector<6x156xf32>
    %137 = arith.subf %88, %136 : vector<6x156xf32>
    %138 = arith.mulf %135, %116 : vector<6x1xf32>
    %139 = vector.broadcast %138 : vector<6x1xf32> to vector<6x156xf32>
    %140 = arith.mulf %137, %139 : vector<6x156xf32>
    %141 = vector.broadcast %117 : vector<6x1xf32> to vector<6x156xf32>
    %142 = arith.addf %140, %141 : vector<6x156xf32>
    %c0_65 = arith.constant 0 : index
    %c0_66 = arith.constant 0 : index
    %143 = vector.load %arg11[%c0_65, %c0_66] : memref<156x8xf32, #tpu.memory_space<vmem>>, vector<156x8xf32>
    %cst_67 = arith.constant dense<0.000000e+00> : vector<6x8xf32>
    %144 = tpu.matmul %142, %143, %cst_67 {dimension_numbers = #tpu.dot_dimension_numbers<[1], [0], [0], [1], [0, 0, 1, 1], [], []>} : vector<6x156xf32>, vector<156x8xf32>, vector<6x8xf32> -> vector<6x8xf32>
    %c0_68 = arith.constant 0 : index
    %c2432 = arith.constant 2432 : index
    %145 = vector.load %arg7[%c0_68, %c2432] : memref<1x3200xf32, #tpu.memory_space<vmem>>, vector<1x8xf32>
    %146 = vector.broadcast %145 : vector<1x8xf32> to vector<6x8xf32>
    %147 = arith.subf %144, %146 : vector<6x8xf32>
    %cst_69 = arith.constant dense<0.000000e+00> : vector<6x8xf32>
    %148 = tpu.matmul %113, %147, %cst_69 {dimension_numbers = #tpu.dot_dimension_numbers<[1], [0], [0], [1], [0, 0, 1, 1], [], []>} : vector<6x6xf32>, vector<6x8xf32>, vector<6x8xf32> -> vector<6x8xf32>
    %cst_70 = arith.constant 0.000000e+00 : f32
    %149 = vector.broadcast %cst_70 : f32 to vector<6x8xf32>
    %150 = arith.maximumf %148, %149 : vector<6x8xf32>
    %151 = vector.extract_strided_slice %115 {offsets = [0, 2], sizes = [6, 1], strides = [1, 1]} : vector<6x4xf32> to vector<6x1xf32>
    %152 = vector.extract_strided_slice %115 {offsets = [0, 3], sizes = [6, 1], strides = [1, 1]} : vector<6x4xf32> to vector<6x1xf32>
    %cst_71 = arith.constant dense<0.000000e+00> : vector<6xf32>
    %153 = vector.multi_reduction <add>, %150, %cst_71 [1] : vector<6x8xf32> to vector<6xf32>
    %154 = vector.shape_cast %153 : vector<6xf32> to vector<6x1xf32>
    %cst_72 = arith.constant 8.000000e+00 : f32
    %155 = vector.broadcast %cst_72 : f32 to vector<6x1xf32>
    %156 = arith.divf %154, %155 : vector<6x1xf32>
    %157 = arith.mulf %150, %150 : vector<6x8xf32>
    %cst_73 = arith.constant dense<0.000000e+00> : vector<6xf32>
    %158 = vector.multi_reduction <add>, %157, %cst_73 [1] : vector<6x8xf32> to vector<6xf32>
    %159 = vector.shape_cast %158 : vector<6xf32> to vector<6x1xf32>
    %cst_74 = arith.constant 8.000000e+00 : f32
    %160 = vector.broadcast %cst_74 : f32 to vector<6x1xf32>
    %161 = arith.divf %159, %160 : vector<6x1xf32>
    %162 = tpu.concatenate %156, %161 in 1 : vector<6x1xf32>, vector<6x1xf32> -> vector<6x2xf32>
    %cst_75 = arith.constant dense<0.000000e+00> : vector<6x2xf32>
    %163 = tpu.matmul %114, %162, %cst_75 {dimension_numbers = #tpu.dot_dimension_numbers<[1], [0], [0], [1], [0, 0, 1, 1], [], []>} : vector<6x6xf32>, vector<6x2xf32>, vector<6x2xf32> -> vector<6x2xf32>
    %164 = vector.extract_strided_slice %163 {offsets = [0, 0], sizes = [6, 1], strides = [1, 1]} : vector<6x2xf32> to vector<6x1xf32>
    %165 = vector.extract_strided_slice %163 {offsets = [0, 1], sizes = [6, 1], strides = [1, 1]} : vector<6x2xf32> to vector<6x1xf32>
    %166 = arith.mulf %164, %164 : vector<6x1xf32>
    %167 = arith.subf %165, %166 : vector<6x1xf32>
    %cst_76 = arith.constant 9.99999974E-6 : f32
    %168 = vector.broadcast %cst_76 : f32 to vector<6x1xf32>
    %169 = arith.addf %167, %168 : vector<6x1xf32>
    %170 = math.rsqrt %169 : vector<6x1xf32>
    %171 = vector.broadcast %164 : vector<6x1xf32> to vector<6x8xf32>
    %172 = arith.subf %150, %171 : vector<6x8xf32>
    %173 = arith.mulf %170, %151 : vector<6x1xf32>
    %174 = vector.broadcast %173 : vector<6x1xf32> to vector<6x8xf32>
    %175 = arith.mulf %172, %174 : vector<6x8xf32>
    %176 = vector.broadcast %152 : vector<6x1xf32> to vector<6x8xf32>
    %177 = arith.addf %175, %176 : vector<6x8xf32>
    %c0_77 = arith.constant 0 : index
    %c0_78 = arith.constant 0 : index
    %c0_79 = arith.constant 0 : index
    %178 = vector.load %arg12[%c0_77, %c0_78, %c0_79] : memref<3x2x6xf32, #tpu.memory_space<vmem>>, vector<1x2x6xf32>
    %179 = vector.shape_cast %178 : vector<1x2x6xf32> to vector<2x6xf32>
    %cst_80 = arith.constant dense<0.000000e+00> : vector<2x8xf32>
    %180 = tpu.matmul %179, %177, %cst_80 {dimension_numbers = #tpu.dot_dimension_numbers<[1], [0], [0], [1], [0, 0, 1, 1], [], []>} : vector<2x6xf32>, vector<6x8xf32>, vector<2x8xf32> -> vector<2x8xf32>
    %c1 = arith.constant 1 : index
    %c0_81 = arith.constant 0 : index
    %c0_82 = arith.constant 0 : index
    %181 = vector.load %arg12[%c1, %c0_81, %c0_82] : memref<3x2x6xf32, #tpu.memory_space<vmem>>, vector<1x2x6xf32>
    %182 = vector.shape_cast %181 : vector<1x2x6xf32> to vector<2x6xf32>
    %cst_83 = arith.constant dense<0.000000e+00> : vector<2x8xf32>
    %183 = tpu.matmul %182, %177, %cst_83 {dimension_numbers = #tpu.dot_dimension_numbers<[1], [0], [0], [1], [0, 0, 1, 1], [], []>} : vector<2x6xf32>, vector<6x8xf32>, vector<2x8xf32> -> vector<2x8xf32>
    %c2 = arith.constant 2 : index
    %c0_84 = arith.constant 0 : index
    %c0_85 = arith.constant 0 : index
    %184 = vector.load %arg12[%c2, %c0_84, %c0_85] : memref<3x2x6xf32, #tpu.memory_space<vmem>>, vector<1x2x6xf32>
    %185 = vector.shape_cast %184 : vector<1x2x6xf32> to vector<2x6xf32>
    %cst_86 = arith.constant dense<0.000000e+00> : vector<2x8xf32>
    %186 = tpu.matmul %185, %177, %cst_86 {dimension_numbers = #tpu.dot_dimension_numbers<[1], [0], [0], [1], [0, 0, 1, 1], [], []>} : vector<2x6xf32>, vector<6x8xf32>, vector<2x8xf32> -> vector<2x8xf32>
    %187 = tpu.concatenate %180, %183, %186 in 1 : vector<2x8xf32>, vector<2x8xf32>, vector<2x8xf32> -> vector<2x24xf32>
    %c0_87 = arith.constant 0 : index
    %c0_88 = arith.constant 0 : index
    %c0_89 = arith.constant 0 : index
    %188 = vector.load %arg15[%c0_87, %c0_88, %c0_89] : memref<2x2x16xf32, #tpu.memory_space<vmem>>, vector<1x2x16xf32>
    %189 = vector.shape_cast %188 : vector<1x2x16xf32> to vector<2x16xf32>
    %c0_90 = arith.constant 0 : index
    %c0_91 = arith.constant 0 : index
    %190 = vector.load %arg13[%c0_90, %c0_91] : memref<72x48xf32, #tpu.memory_space<vmem>>, vector<24x48xf32>
    %cst_92 = arith.constant dense<0.000000e+00> : vector<2x48xf32>
    %191 = tpu.matmul %187, %190, %cst_92 {dimension_numbers = #tpu.dot_dimension_numbers<[1], [0], [0], [1], [0, 0, 1, 1], [], []>} : vector<2x24xf32>, vector<24x48xf32>, vector<2x48xf32> -> vector<2x48xf32>
    %c0_93 = arith.constant 0 : index
    %c2688 = arith.constant 2688 : index
    %192 = vector.load %arg7[%c0_93, %c2688] : memref<1x3200xf32, #tpu.memory_space<vmem>>, vector<1x48xf32>
    %193 = vector.broadcast %192 : vector<1x48xf32> to vector<2x48xf32>
    %194 = arith.addf %191, %193 : vector<2x48xf32>
    %c24 = arith.constant 24 : index
    %c0_94 = arith.constant 0 : index
    %195 = vector.load %arg13[%c24, %c0_94] : memref<72x48xf32, #tpu.memory_space<vmem>>, vector<16x48xf32>
    %cst_95 = arith.constant dense<0.000000e+00> : vector<2x48xf32>
    %196 = tpu.matmul %189, %195, %cst_95 {dimension_numbers = #tpu.dot_dimension_numbers<[1], [0], [0], [1], [0, 0, 1, 1], [], []>} : vector<2x16xf32>, vector<16x48xf32>, vector<2x48xf32> -> vector<2x48xf32>
    %c0_96 = arith.constant 0 : index
    %c2816 = arith.constant 2816 : index
    %197 = vector.load %arg7[%c0_96, %c2816] : memref<1x3200xf32, #tpu.memory_space<vmem>>, vector<1x48xf32>
    %198 = vector.broadcast %197 : vector<1x48xf32> to vector<2x48xf32>
    %199 = arith.addf %196, %198 : vector<2x48xf32>
    %200 = vector.extract_strided_slice %194 {offsets = [0, 0], sizes = [2, 16], strides = [1, 1]} : vector<2x48xf32> to vector<2x16xf32>
    %201 = vector.extract_strided_slice %199 {offsets = [0, 0], sizes = [2, 16], strides = [1, 1]} : vector<2x48xf32> to vector<2x16xf32>
    %202 = arith.addf %200, %201 : vector<2x16xf32>
    %cst_97 = arith.constant 5.000000e-01 : f32
    %203 = vector.broadcast %cst_97 : f32 to vector<2x16xf32>
    %204 = arith.mulf %203, %202 : vector<2x16xf32>
    %205 = math.tanh %204 : vector<2x16xf32>
    %cst_98 = arith.constant 1.000000e+00 : f32
    %206 = vector.broadcast %cst_98 : f32 to vector<2x16xf32>
    %207 = arith.addf %205, %206 : vector<2x16xf32>
    %cst_99 = arith.constant 5.000000e-01 : f32
    %208 = vector.broadcast %cst_99 : f32 to vector<2x16xf32>
    %209 = arith.mulf %208, %207 : vector<2x16xf32>
    %210 = vector.extract_strided_slice %194 {offsets = [0, 16], sizes = [2, 16], strides = [1, 1]} : vector<2x48xf32> to vector<2x16xf32>
    %211 = vector.extract_strided_slice %199 {offsets = [0, 16], sizes = [2, 16], strides = [1, 1]} : vector<2x48xf32> to vector<2x16xf32>
    %212 = arith.addf %210, %211 : vector<2x16xf32>
    %cst_100 = arith.constant 5.000000e-01 : f32
    %213 = vector.broadcast %cst_100 : f32 to vector<2x16xf32>
    %214 = arith.mulf %213, %212 : vector<2x16xf32>
    %215 = math.tanh %214 : vector<2x16xf32>
    %cst_101 = arith.constant 1.000000e+00 : f32
    %216 = vector.broadcast %cst_101 : f32 to vector<2x16xf32>
    %217 = arith.addf %215, %216 : vector<2x16xf32>
    %cst_102 = arith.constant 5.000000e-01 : f32
    %218 = vector.broadcast %cst_102 : f32 to vector<2x16xf32>
    %219 = arith.mulf %218, %217 : vector<2x16xf32>
    %220 = vector.extract_strided_slice %194 {offsets = [0, 32], sizes = [2, 16], strides = [1, 1]} : vector<2x48xf32> to vector<2x16xf32>
    %221 = vector.extract_strided_slice %199 {offsets = [0, 32], sizes = [2, 16], strides = [1, 1]} : vector<2x48xf32> to vector<2x16xf32>
    %222 = arith.mulf %209, %221 : vector<2x16xf32>
    %223 = arith.addf %220, %222 : vector<2x16xf32>
    %224 = math.tanh %223 : vector<2x16xf32>
    %cst_103 = arith.constant 1.000000e+00 : f32
    %225 = vector.broadcast %cst_103 : f32 to vector<2x16xf32>
    %226 = arith.subf %225, %219 : vector<2x16xf32>
    %227 = arith.mulf %226, %224 : vector<2x16xf32>
    %228 = arith.mulf %219, %189 : vector<2x16xf32>
    %229 = arith.addf %227, %228 : vector<2x16xf32>
    %c0_104 = arith.constant 0 : index
    %c0_105 = arith.constant 0 : index
    %c0_106 = arith.constant 0 : index
    %230 = vector.load %arg17[%c0_104, %c0_105, %c0_106] : memref<2x2x16xf32, #tpu.memory_space<vmem>>, vector<1x2x16xf32>
    %231 = vector.shape_cast %230 : vector<1x2x16xf32> to vector<2x16xf32>
    %232 = vector.shape_cast %229 : vector<2x16xf32> to vector<1x2x16xf32>
    tpu.vector_store %arg17[%c0_104, %c0_105, %c0_106], %232 {strides = array<i32>} : memref<2x2x16xf32, #tpu.memory_space<vmem>>, vector<1x2x16xf32>,
    %c1_107 = arith.constant 1 : index
    %c0_108 = arith.constant 0 : index
    %c0_109 = arith.constant 0 : index
    %233 = vector.load %arg15[%c1_107, %c0_108, %c0_109] : memref<2x2x16xf32, #tpu.memory_space<vmem>>, vector<1x2x16xf32>
    %234 = vector.shape_cast %233 : vector<1x2x16xf32> to vector<2x16xf32>
    %c40 = arith.constant 40 : index
    %c0_110 = arith.constant 0 : index
    %235 = vector.load %arg13[%c40, %c0_110] : memref<72x48xf32, #tpu.memory_space<vmem>>, vector<16x48xf32>
    %cst_111 = arith.constant dense<0.000000e+00> : vector<2x48xf32>
    %236 = tpu.matmul %229, %235, %cst_111 {dimension_numbers = #tpu.dot_dimension_numbers<[1], [0], [0], [1], [0, 0, 1, 1], [], []>} : vector<2x16xf32>, vector<16x48xf32>, vector<2x48xf32> -> vector<2x48xf32>
    %c0_112 = arith.constant 0 : index
    %c2944 = arith.constant 2944 : index
    %237 = vector.load %arg7[%c0_112, %c2944] : memref<1x3200xf32, #tpu.memory_space<vmem>>, vector<1x48xf32>
    %238 = vector.broadcast %237 : vector<1x48xf32> to vector<2x48xf32>
    %239 = arith.addf %236, %238 : vector<2x48xf32>
    %c56 = arith.constant 56 : index
    %c0_113 = arith.constant 0 : index
    %240 = vector.load %arg13[%c56, %c0_113] : memref<72x48xf32, #tpu.memory_space<vmem>>, vector<16x48xf32>
    %cst_114 = arith.constant dense<0.000000e+00> : vector<2x48xf32>
    %241 = tpu.matmul %234, %240, %cst_114 {dimension_numbers = #tpu.dot_dimension_numbers<[1], [0], [0], [1], [0, 0, 1, 1], [], []>} : vector<2x16xf32>, vector<16x48xf32>, vector<2x48xf32> -> vector<2x48xf32>
    %c0_115 = arith.constant 0 : index
    %c3072 = arith.constant 3072 : index
    %242 = vector.load %arg7[%c0_115, %c3072] : memref<1x3200xf32, #tpu.memory_space<vmem>>, vector<1x48xf32>
    %243 = vector.broadcast %242 : vector<1x48xf32> to vector<2x48xf32>
    %244 = arith.addf %241, %243 : vector<2x48xf32>
    %245 = vector.extract_strided_slice %239 {offsets = [0, 0], sizes = [2, 16], strides = [1, 1]} : vector<2x48xf32> to vector<2x16xf32>
    %246 = vector.extract_strided_slice %244 {offsets = [0, 0], sizes = [2, 16], strides = [1, 1]} : vector<2x48xf32> to vector<2x16xf32>
    %247 = arith.addf %245, %246 : vector<2x16xf32>
    %cst_116 = arith.constant 5.000000e-01 : f32
    %248 = vector.broadcast %cst_116 : f32 to vector<2x16xf32>
    %249 = arith.mulf %248, %247 : vector<2x16xf32>
    %250 = math.tanh %249 : vector<2x16xf32>
    %cst_117 = arith.constant 1.000000e+00 : f32
    %251 = vector.broadcast %cst_117 : f32 to vector<2x16xf32>
    %252 = arith.addf %250, %251 : vector<2x16xf32>
    %cst_118 = arith.constant 5.000000e-01 : f32
    %253 = vector.broadcast %cst_118 : f32 to vector<2x16xf32>
    %254 = arith.mulf %253, %252 : vector<2x16xf32>
    %255 = vector.extract_strided_slice %239 {offsets = [0, 16], sizes = [2, 16], strides = [1, 1]} : vector<2x48xf32> to vector<2x16xf32>
    %256 = vector.extract_strided_slice %244 {offsets = [0, 16], sizes = [2, 16], strides = [1, 1]} : vector<2x48xf32> to vector<2x16xf32>
    %257 = arith.addf %255, %256 : vector<2x16xf32>
    %cst_119 = arith.constant 5.000000e-01 : f32
    %258 = vector.broadcast %cst_119 : f32 to vector<2x16xf32>
    %259 = arith.mulf %258, %257 : vector<2x16xf32>
    %260 = math.tanh %259 : vector<2x16xf32>
    %cst_120 = arith.constant 1.000000e+00 : f32
    %261 = vector.broadcast %cst_120 : f32 to vector<2x16xf32>
    %262 = arith.addf %260, %261 : vector<2x16xf32>
    %cst_121 = arith.constant 5.000000e-01 : f32
    %263 = vector.broadcast %cst_121 : f32 to vector<2x16xf32>
    %264 = arith.mulf %263, %262 : vector<2x16xf32>
    %265 = vector.extract_strided_slice %239 {offsets = [0, 32], sizes = [2, 16], strides = [1, 1]} : vector<2x48xf32> to vector<2x16xf32>
    %266 = vector.extract_strided_slice %244 {offsets = [0, 32], sizes = [2, 16], strides = [1, 1]} : vector<2x48xf32> to vector<2x16xf32>
    %267 = arith.mulf %254, %266 : vector<2x16xf32>
    %268 = arith.addf %265, %267 : vector<2x16xf32>
    %269 = math.tanh %268 : vector<2x16xf32>
    %cst_122 = arith.constant 1.000000e+00 : f32
    %270 = vector.broadcast %cst_122 : f32 to vector<2x16xf32>
    %271 = arith.subf %270, %264 : vector<2x16xf32>
    %272 = arith.mulf %271, %269 : vector<2x16xf32>
    %273 = arith.mulf %264, %234 : vector<2x16xf32>
    %274 = arith.addf %272, %273 : vector<2x16xf32>
    %c1_123 = arith.constant 1 : index
    %c0_124 = arith.constant 0 : index
    %c0_125 = arith.constant 0 : index
    %275 = vector.load %arg17[%c1_123, %c0_124, %c0_125] : memref<2x2x16xf32, #tpu.memory_space<vmem>>, vector<1x2x16xf32>
    %276 = vector.shape_cast %275 : vector<1x2x16xf32> to vector<2x16xf32>
    %277 = vector.shape_cast %274 : vector<2x16xf32> to vector<1x2x16xf32>
    tpu.vector_store %arg17[%c1_123, %c0_124, %c0_125], %277 {strides = array<i32>} : memref<2x2x16xf32, #tpu.memory_space<vmem>>, vector<1x2x16xf32>,
    %c0_126 = arith.constant 0 : index
    %c0_127 = arith.constant 0 : index
    %278 = vector.load %arg14[%c0_126, %c0_127] : memref<40x1xf32, #tpu.memory_space<vmem>>, vector<16x1xf32>
    %cst_128 = arith.constant dense<0.000000e+00> : vector<2x1xf32>
    %279 = tpu.matmul %274, %278, %cst_128 {dimension_numbers = #tpu.dot_dimension_numbers<[1], [0], [0], [1], [0, 0, 1, 1], [], []>} : vector<2x16xf32>, vector<16x1xf32>, vector<2x1xf32> -> vector<2x1xf32>
    %c16 = arith.constant 16 : index
    %c0_129 = arith.constant 0 : index
    %280 = vector.load %arg14[%c16, %c0_129] : memref<40x1xf32, #tpu.memory_space<vmem>>, vector<24x1xf32>
    %cst_130 = arith.constant dense<0.000000e+00> : vector<2x1xf32>
    %281 = tpu.matmul %187, %280, %cst_130 {dimension_numbers = #tpu.dot_dimension_numbers<[1], [0], [0], [1], [0, 0, 1, 1], [], []>} : vector<2x24xf32>, vector<24x1xf32>, vector<2x1xf32> -> vector<2x1xf32>
    %282 = arith.addf %279, %281 : vector<2x1xf32>
    %c0_131 = arith.constant 0 : index
    %c2560 = arith.constant 2560 : index
    %283 = vector.load %arg7[%c0_131, %c2560] : memref<1x3200xf32, #tpu.memory_space<vmem>>, vector<1x1xf32>
    %284 = vector.broadcast %283 : vector<1x1xf32> to vector<2x1xf32>
    %285 = arith.addf %282, %284 : vector<2x1xf32>
    %cst_132 = arith.constant 5.000000e-01 : f32
    %286 = vector.broadcast %cst_132 : f32 to vector<2x1xf32>
    %287 = arith.mulf %286, %285 : vector<2x1xf32>
    %288 = math.tanh %287 : vector<2x1xf32>
    %cst_133 = arith.constant 1.000000e+00 : f32
    %289 = vector.broadcast %cst_133 : f32 to vector<2x1xf32>
    %290 = arith.addf %288, %289 : vector<2x1xf32>
    %cst_134 = arith.constant 5.000000e-01 : f32
    %291 = vector.broadcast %cst_134 : f32 to vector<2x1xf32>
    %292 = arith.mulf %291, %290 : vector<2x1xf32>
    %c0_135 = arith.constant 0 : index
    %c0_136 = arith.constant 0 : index
    %293 = vector.load %arg16[%c0_135, %c0_136] : memref<2x1xf32, #tpu.memory_space<vmem>>, vector<2x1xf32>
    tpu.vector_store %arg16[%c0_135, %c0_136], %292 {strides = array<i32>} : memref<2x1xf32, #tpu.memory_space<vmem>>, vector<2x1xf32>,
    return
  }
}

</mosaic_0001>

<bundles_post_ra>
// kernel: _lambda_.1
= control target key start
LH: loop header
LB: loop body
LE: loop exit
PB: predicated region body
PF: predicated region fallthrough
CT: control target
= control target key end

     0   :  { %s7277_s0 = inlined_call_operand.vmem [shape: f32[16,64], index: 0, kind: input, shape index: {}]   ;;  %s7278_s1 = inlined_call_operand.vmem [shape: f32[64,668], index: 1, kind: input, shape index: {}]   ;;  %s7279_s2 = inlined_call_operand.vmem [shape: f32[668,316], index: 2, kind: input, shape index: {}]   ;;  %s7280_s3 = inlined_call_operand.vmem [shape: f32[316,316], index: 3, kind: input, shape index: {}]   ;;  %s7281_s4 = inlined_call_operand.vmem [shape: f32[316,316], index: 4, kind: input, shape index: {}]   ;;  %s7282_s5 = inlined_call_operand.vmem [shape: f32[316,156], index: 5, kind: input, shape index: {}]   ;;  %s7283_s6 = inlined_call_operand.vmem [shape: f32[156,156], index: 6, kind: input, shape index: {}]   ;;  %s7284_s7 = inlined_call_operand.vmem [shape: f32[1,3200], index: 7, kind: input, shape index: {}]   ;;  %s7285_s8 = inlined_call_operand.vmem [shape: f32[16,384], index: 8, kind: input, shape index: {}]   ;;  %s7286_s9 = inlined_call_operand.vmem [shape: f32[6,16], index: 9, kind: input, shape index: {}]   ;;  %s7287_s10 = inlined_call_operand.vmem [shape: f32[6,512], index: 10, kind: input, shape index: {}]   ;;  %s7288_s11 = inlined_call_operand.vmem [shape: f32[156,8], index: 11, kind: input, shape index: {}]   ;;  %s7289_s12 = inlined_call_operand.vmem [shape: f32[3,2,6], index: 12, kind: input, shape index: {}]   ;;  %s7290_s13 = inlined_call_operand.vmem [shape: f32[72,48], index: 13, kind: input, shape index: {}]   ;;  %s7291_s14 = inlined_call_operand.vmem [shape: f32[40,1], index: 14, kind: input, shape index: {}]   ;;  %s7292_s15 = inlined_call_operand.vmem [shape: f32[2,2,16], index: 15, kind: input, shape index: {}]   ;;  %s7293_s16 = inlined_call_operand.vmem [shape: f32[2,1], index: 16, kind: output, shape index: {0}]   ;;  %s7294_s17 = inlined_call_operand.hbm [shape: f32[2,2,16], index: 17, kind: output, shape index: {1}]  }
   0x1   :  { %7297 = sst [smem:[#allocation5_spill]] %s7277_s0 }
   0x2   :  { %7298 = sst [smem:[#allocation6_spill]] %s7278_s1 }
   0x3   :  { %s7299_s26 = sld [smem:[#allocation6_spill]]  ;;  %vm138_vm0 = vcmask 523264   ;;  %v4561_v33 = vmov 0.0   ;;  %v434_v37 = vld [vmem:[%s7279_s2 + $0x170] sm:$0xff]  ;;  %v433_v43 = vld [vmem:[%s7279_s2 + $0x168] sm:$0xff]  ;;  %v431_v45 = vld [vmem:[%s7279_s2 + $0x158] sm:$0xff] }
   0x4   :  { %s7300_s20 = sld [smem:[#allocation5_spill]]  ;;  %209 = vmatprep.mubr.f32.mxu0 %v4561_v33  ;;  %286 = vmatprep.mubr.f32.mxu1 %v4561_v33  ;;  %v430_v47 = vld [vmem:[%s7279_s2 + $0x150] sm:$0xff]  ;;  %v428_v49 = vld [vmem:[%s7279_s2 + $0x140] sm:$0xff]  ;;  %v427_v51 = vld [vmem:[%s7279_s2 + $0x138] sm:$0xff] }
   0x5   :  { %v425_v53 = vld [vmem:[%s7279_s2 + $0x128] sm:$0xff]  ;;  %v424_v55 = vld [vmem:[%s7279_s2 + $0x120] sm:$0xff]  ;;  %v422_v57 = vld [vmem:[%s7279_s2 + $0x110] sm:$0xff] }
   0x6   :  { %v421_v59 = vld [vmem:[%s7279_s2 + $0x108] sm:$0xff]  ;;  %v419_v61 = vld [vmem:[%s7279_s2 + $0xf8] sm:$0xff]  ;;  %v530_v62 = vld [vmem:[%s7279_s2 + $0x470] sm:$0xff] }
   0x7   :  { %v529_v63 = vld [vmem:[%s7279_s2 + $0x468] sm:$0xff] }
   0x9   :  { %v101_v0 = vld [vmem:[%s7299_s26 + $0x158] sm:$0xff]  ;;  %v103_v1 = vld [vmem:[%s7299_s26 + $0x168] sm:$0xff]  ;;  %v100_v2 = vld [vmem:[%s7299_s26 + $0x150] sm:$0xff] }
   0xa   :  { %161 = vmatprep.subr.mxu0 %v101_v0  ;;  %238 = vmatprep.subr.mxu1 %v103_v1  ;;  %v102_v3 = vld [vmem:[%s7299_s26 + $0x160] sm:$0xff]  ;;  %v95_v4 = vld [vmem:[%s7299_s26 + $0x128] sm:$0xff]  ;;  %v97_v5 = vld [vmem:[%s7299_s26 + $0x138] sm:$0xff] }
   0xb   :  { %162 = vmatpush1.msra.mxu0 %v100_v2  ;;  %239 = vmatpush1.msra.mxu1 %v102_v3  ;;  %v94_v6 = vld [vmem:[%s7299_s26 + $0x120] sm:$0xff]  ;;  %v96_v7 = vld [vmem:[%s7299_s26 + $0x130] sm:$0xff]  ;;  %v89_v8 = vld [vmem:[%s7299_s26 + $0xf8] sm:$0xff] }
   0xc   :  { %163 = vmatprep.subr.mxu0 %v95_v4  ;;  %240 = vmatprep.subr.mxu1 %v97_v5  ;;  %v91_v9 = vld [vmem:[%s7299_s26 + $0x108] sm:$0xff]  ;;  %v88_v10 = vld [vmem:[%s7299_s26 + $0xf0] sm:$0xff]  ;;  %v90_v11 = vld [vmem:[%s7299_s26 + $0x100] sm:$0xff] }
   0xd   :  { %164 = vmatpush1.msra.mxu0 %v94_v6  ;;  %241 = vmatpush1.msra.mxu1 %v96_v7  ;;  %v83_v12 = vld [vmem:[%s7299_s26 + $0xc8] sm:$0xff]  ;;  %v85_v13 = vld [vmem:[%s7299_s26 + $0xd8] sm:$0xff]  ;;  %v82_v14 = vld [vmem:[%s7299_s26 + $0xc0] sm:$0xff] }
   0xe   :  { %165 = vmatprep.subr.mxu0 %v89_v8  ;;  %242 = vmatprep.subr.mxu1 %v91_v9  ;;  %v84_v15 = vld [vmem:[%s7299_s26 + $0xd0] sm:$0xff]  ;;  %v77_v16 = vld [vmem:[%s7299_s26 + $0x98] sm:$0xff]  ;;  %v79_v17 = vld [vmem:[%s7299_s26 + $0xa8] sm:$0xff] }
   0xf   :  { %166 = vmatpush1.msra.mxu0 %v88_v10  ;;  %243 = vmatpush1.msra.mxu1 %v90_v11  ;;  %v76_v18 = vld [vmem:[%s7299_s26 + $0x90] sm:$0xff]  ;;  %v78_v19 = vld [vmem:[%s7299_s26 + $0xa0] sm:$0xff]  ;;  %v71_v20 = vld [vmem:[%s7299_s26 + $0x68] sm:$0xff] }
  0x10   :  { %167 = vmatprep.subr.mxu0 %v83_v12  ;;  %244 = vmatprep.subr.mxu1 %v85_v13  ;;  %v73_v21 = vld [vmem:[%s7299_s26 + $0x78] sm:$0xff]  ;;  %v70_v22 = vld [vmem:[%s7299_s26 + $0x60] sm:$0xff]  ;;  %v72_v23 = vld [vmem:[%s7299_s26 + $0x70] sm:$0xff] }
  0x11   :  { %168 = vmatpush1.msra.mxu0 %v82_v14  ;;  %245 = vmatpush1.msra.mxu1 %v84_v15  ;;  %v65_v24 = vld [vmem:[%s7299_s26 + $0x38] sm:$0xff]  ;;  %v67_v25 = vld [vmem:[%s7299_s26 + $0x48] sm:$0xff]  ;;  %v64_v26 = vld [vmem:[%s7299_s26 + $0x30] sm:$0xff] }
  0x12   :  { %169 = vmatprep.subr.mxu0 %v77_v16  ;;  %246 = vmatprep.subr.mxu1 %v79_v17  ;;  %v66_v27 = vld [vmem:[%s7299_s26 + $0x40] sm:$0xff]  ;;  %v59_v28 = vld [vmem:[%s7299_s26 + $0x8] sm:$0xff]  ;;  %v61_v29 = vld [vmem:[%s7299_s26 + $0x18] sm:$0xff] }
  0x13   :  { %170 = vmatpush1.msra.mxu0 %v76_v18  ;;  %247 = vmatpush1.msra.mxu1 %v78_v19  ;;  %v58_v30 = vld [vmem:[%s7299_s26] sm:$0xff]  ;;  %v60_v31 = vld [vmem:[%s7299_s26 + $0x10] sm:$0xff]  ;;  %v105_v34 = vld [vmem:[%s7299_s26 + $0x178] sm:$0xff] }
  0x14   :  { %171 = vmatprep.subr.mxu0 %v71_v20  ;;  %248 = vmatprep.subr.mxu1 %v73_v21  ;;  %v4764_v32 = vld [vmem:[%s7300_s20] sm:$0xff]  ;;  %v104_v35 = vld [vmem:[%s7299_s26 + $0x170] sm:$0xff]  ;;  %v99_v36 = vld [vmem:[%s7299_s26 + $0x148] sm:$0xff] }
  0x15   :  { %172 = vmatpush1.msra.mxu0 %v70_v22  ;;  %249 = vmatpush1.msra.mxu1 %v72_v23  ;;  %v4788_v38 = vld [vmem:[%s7300_s20 + $0x8] sm:$0xff]  ;;  %v98_v39 = vld [vmem:[%s7299_s26 + $0x140] sm:$0xff]  ;;  %v93_v40 = vld [vmem:[%s7299_s26 + $0x118] sm:$0xff] }
  0x16   :  { %173 = vmatprep.subr.mxu0 %v65_v24  ;;  %250 = vmatprep.subr.mxu1 %v67_v25  ;;  %v92_v41 = vld [vmem:[%s7299_s26 + $0x110] sm:$0xff]  ;;  %v87_v42 = vld [vmem:[%s7299_s26 + $0xe8] sm:$0xff]  ;;  %v86_v44 = vld [vmem:[%s7299_s26 + $0xe0] sm:$0xff] }
  0x17   :  { %174 = vmatpush1.msra.mxu0 %v64_v26  ;;  %251 = vmatpush1.msra.mxu1 %v66_v27  ;;  %v81_v46 = vld [vmem:[%s7299_s26 + $0xb8] sm:$0xff]  ;;  %v80_v48 = vld [vmem:[%s7299_s26 + $0xb0] sm:$0xff]  ;;  %v75_v50 = vld [vmem:[%s7299_s26 + $0x88] sm:$0xff] }
  0x18   :  { %175 = vmatprep.subr.mxu0 %v59_v28  ;;  %252 = vmatprep.subr.mxu1 %v61_v29  ;;  %v74_v52 = vld [vmem:[%s7299_s26 + $0x80] sm:$0xff]  ;;  %v69_v54 = vld [vmem:[%s7299_s26 + $0x58] sm:$0xff]  ;;  %v68_v56 = vld [vmem:[%s7299_s26 + $0x50] sm:$0xff] }
  0x19   :  { %176 = vmatpush1.msra.mxu0 %v58_v30  ;;  %253 = vmatpush1.msra.mxu1 %v60_v31  ;;  %v63_v58 = vld [vmem:[%s7299_s26 + $0x28] sm:$0xff]  ;;  %v62_v60 = vld [vmem:[%s7299_s26 + $0x20] sm:$0xff]  ;;  %v527_v0 = vld [vmem:[%s7279_s2 + $0x458] sm:$0xff] }
  0x1a   :  { %4102 = vmatmul.mubr.msk.f32.vlgmr.msra.gmra.mxu0 %vm138_vm0, %v4764_v32  ;;  %4104 = vmatmul.mubr.msk.f32.vlgmr.msra.gmra.mxu1 %vm138_vm0, %v4764_v32  ;;  %v418_v1 = vld [vmem:[%s7279_s2 + $0xf0] sm:$0xff]  ;;  %v416_v3 = vld [vmem:[%s7279_s2 + $0xe0] sm:$0xff]  ;;  %v523_v5 = vld [vmem:[%s7279_s2 + $0x438] sm:$0xff] }
  0x1b   :  { %292 = vmatprep.mubr.f32.mxu1 %v4561_v33  ;;  %315 = vmatprep.subr.mxu0 %v105_v34  ;;  %v526_v2 = vld [vmem:[%s7279_s2 + $0x450] sm:$0xff]  ;;  %v524_v4 = vld [vmem:[%s7279_s2 + $0x440] sm:$0xff]  ;;  %v415_v6 = vld [vmem:[%s7279_s2 + $0xd8] sm:$0xff] }
  0x1c   :  { %316 = vmatpush1.msra.mxu0 %v104_v35  ;;  %215 = vmatprep.mubr.f32.mxu0 %v4561_v33  ;;  %v521_v7 = vld [vmem:[%s7279_s2 + $0x428] sm:$0xff]  ;;  %v520_v9 = vld [vmem:[%s7279_s2 + $0x420] sm:$0xff]  ;;  %v518_v11 = vld [vmem:[%s7279_s2 + $0x410] sm:$0xff] }
  0x1d   :  { %317 = vmatprep.subr.mxu0 %v99_v36  ;;  %657 = vmatprep.subr.mxu1 %v434_v37  ;;  %v413_v8 = vld [vmem:[%s7279_s2 + $0xc8] sm:$0xff]  ;;  %v412_v10 = vld [vmem:[%s7279_s2 + $0xc0] sm:$0xff]  ;;  %v410_v12 = vld [vmem:[%s7279_s2 + $0xb0] sm:$0xff] }
  0x1e   :  { %4105 = vmatmul.mubr.msk.f32.gmra.mxu1 %vm138_vm0, %v4788_v38  ;;  %318 = vmatpush1.msra.mxu0 %v98_v39  ;;  %v517_v13 = vld [vmem:[%s7279_s2 + $0x408] sm:$0xff]  ;;  %v515_v15 = vld [vmem:[%s7279_s2 + $0x3f8] sm:$0xff]  ;;  %v514_v17 = vld [vmem:[%s7279_s2 + $0x3f0] sm:$0xff] }
  0x1f   :  { %319 = vmatprep.subr.mxu0 %v93_v40  ;;  %4103 = vmatmul.mubr.msk.f32.gmra.mxu0 %vm138_vm0, %v4788_v38  ;;  %v409_v14 = vld [vmem:[%s7279_s2 + $0xa8] sm:$0xff]  ;;  %v407_v16 = vld [vmem:[%s7279_s2 + $0x98] sm:$0xff]  ;;  %v406_v18 = vld [vmem:[%s7279_s2 + $0x90] sm:$0xff] }
  0x20   :  { %320 = vmatpush1.msra.mxu0 %v92_v41  ;;  %363 = vmatprep.mubr.f32.mxu0 %v4561_v33  ;;  %v512_v19 = vld [vmem:[%s7279_s2 + $0x3e0] sm:$0xff]  ;;  %v511_v21 = vld [vmem:[%s7279_s2 + $0x3d8] sm:$0xff]  ;;  %v509_v23 = vld [vmem:[%s7279_s2 + $0x3c8] sm:$0xff] }
  0x21   :  { %321 = vmatprep.subr.mxu0 %v87_v42  ;;  %658 = vmatpush1.msra.mxu1 %v433_v43  ;;  %v404_v20 = vld [vmem:[%s7279_s2 + $0x80] sm:$0xff]  ;;  %v403_v22 = vld [vmem:[%s7279_s2 + $0x78] sm:$0xff]  ;;  %v401_v24 = vld [vmem:[%s7279_s2 + $0x68] sm:$0xff] }
  0x22   :  { %322 = vmatpush1.msra.mxu0 %v86_v44  ;;  %659 = vmatprep.subr.mxu1 %v431_v45  ;;  %v508_v25 = vld [vmem:[%s7279_s2 + $0x3c0] sm:$0xff]  ;;  %v506_v27 = vld [vmem:[%s7279_s2 + $0x3b0] sm:$0xff]  ;;  %v505_v29 = vld [vmem:[%s7279_s2 + $0x3a8] sm:$0xff] }
  0x23   :  { %323 = vmatprep.subr.mxu0 %v81_v46  ;;  %660 = vmatpush1.msra.mxu1 %v430_v47  ;;  %v400_v26 = vld [vmem:[%s7279_s2 + $0x60] sm:$0xff]  ;;  %v398_v28 = vld [vmem:[%s7279_s2 + $0x50] sm:$0xff]  ;;  %v397_v30 = vld [vmem:[%s7279_s2 + $0x48] sm:$0xff] }
  0x24   :  { %324 = vmatpush1.msra.mxu0 %v80_v48  ;;  %661 = vmatprep.subr.mxu1 %v428_v49  ;;  %v503_v31 = vld [vmem:[%s7279_s2 + $0x398] sm:$0xff]  ;;  %v502_v34 = vld [vmem:[%s7279_s2 + $0x390] sm:$0xff]  ;;  %v500_v36 = vld [vmem:[%s7279_s2 + $0x380] sm:$0xff] }
  0x25   :  { %325 = vmatprep.subr.mxu0 %v75_v50  ;;  %662 = vmatpush1.msra.mxu1 %v427_v51  ;;  %v394_v35 = vld [vmem:[%s7279_s2 + $0x30] sm:$0xff]  ;;  %v392_v37 = vld [vmem:[%s7279_s2 + $0x20] sm:$0xff]  ;;  %v391_v39 = vld [vmem:[%s7279_s2 + $0x18] sm:$0xff] }
  0x26   :  { %326 = vmatpush1.msra.mxu0 %v74_v52  ;;  %663 = vmatprep.subr.mxu1 %v425_v53  ;;  %v497_v40 = vld [vmem:[%s7279_s2 + $0x368] sm:$0xff]  ;;  %v496_v42 = vld [vmem:[%s7279_s2 + $0x360] sm:$0xff] }
  0x27   :  { %327 = vmatprep.subr.mxu0 %v69_v54  ;;  %664 = vmatpush1.msra.mxu1 %v424_v55  ;;  %v389_v41 = vld [vmem:[%s7279_s2 + $0x8] sm:$0xff]  ;;  %v388_v43 = vld [vmem:[%s7279_s2] sm:$0xff] }
  0x28   :  { %328 = vmatpush1.msra.mxu0 %v68_v56  ;;  %665 = vmatprep.subr.mxu1 %v422_v57 }
  0x29   :  { %329 = vmatprep.subr.mxu0 %v63_v58  ;;  %666 = vmatpush1.msra.mxu1 %v421_v59 }
  0x2a   :  { %330 = vmatpush1.msra.mxu0 %v62_v60  ;;  %667 = vmatprep.subr.mxu1 %v419_v61 }
  0x2b   :  { %4106 = vmatmul.mubr.msk.f32.vlgmr.msra.gmra.mxu0 %vm138_vm0, %v4764_v32  ;;  %734 = vmatprep.subr.mxu0 %v530_v62  ;;  %v395_v32 = vld [vmem:[%s7279_s2 + $0x38] sm:$0xff] }
  0x2c   :  { %369 = vmatprep.mubr.f32.mxu0 %v4561_v33  ;;  %735 = vmatpush1.msra.mxu0 %v529_v63 }
  0x2d   :  { %736 = vmatprep.subr.mxu0 %v527_v0  ;;  %668 = vmatpush1.msra.mxu1 %v418_v1 }
  0x2e   :  { %737 = vmatpush1.msra.mxu0 %v526_v2  ;;  %669 = vmatprep.subr.mxu1 %v416_v3 }
  0x2f   :  { %4107 = vmatmul.mubr.msk.f32.gmra.mxu0 %vm138_vm0, %v4788_v38  ;;  %738 = vmatprep.subr.mxu0 %v524_v4  ;;  %v499_v38 = vld [vmem:[%s7279_s2 + $0x378] sm:$0xff] }
  0x30   :  { %739 = vmatpush1.msra.mxu0 %v523_v5  ;;  %670 = vmatpush1.msra.mxu1 %v415_v6 }
  0x31   :  { %740 = vmatprep.subr.mxu0 %v521_v7  ;;  %671 = vmatprep.subr.mxu1 %v413_v8 }
  0x32   :  { %741 = vmatpush1.msra.mxu0 %v520_v9  ;;  %672 = vmatpush1.msra.mxu1 %v412_v10 }
  0x33   :  { %742 = vmatprep.subr.mxu0 %v518_v11  ;;  %673 = vmatprep.subr.mxu1 %v410_v12 }
  0x34   :  { %743 = vmatpush1.msra.mxu0 %v517_v13  ;;  %674 = vmatpush1.msra.mxu1 %v409_v14 }
  0x35   :  { %744 = vmatprep.subr.mxu0 %v515_v15  ;;  %675 = vmatprep.subr.mxu1 %v407_v16 }
  0x36   :  { %745 = vmatpush1.msra.mxu0 %v514_v17  ;;  %676 = vmatpush1.msra.mxu1 %v406_v18 }
  0x37   :  { %746 = vmatprep.subr.mxu0 %v512_v19  ;;  %677 = vmatprep.subr.mxu1 %v404_v20 }
  0x38   :  { %747 = vmatpush1.msra.mxu0 %v511_v21  ;;  %678 = vmatpush1.msra.mxu1 %v403_v22 }
  0x39   :  { %748 = vmatprep.subr.mxu0 %v509_v23  ;;  %679 = vmatprep.subr.mxu1 %v401_v24 }
  0x3a   :  { %749 = vmatpush1.msra.mxu0 %v508_v25  ;;  %680 = vmatpush1.msra.mxu1 %v400_v26 }
  0x3b   :  { %750 = vmatprep.subr.mxu0 %v506_v27  ;;  %681 = vmatprep.subr.mxu1 %v398_v28 }
  0x3c   :  { %751 = vmatpush1.msra.mxu0 %v505_v29  ;;  %682 = vmatpush1.msra.mxu1 %v397_v30 }
  0x3d   :  { %752 = vmatprep.subr.mxu0 %v503_v31  ;;  %683 = vmatprep.subr.mxu1 %v395_v32 }
  0x3e   :  { %753 = vmatpush1.msra.mxu0 %v502_v34  ;;  %684 = vmatpush1.msra.mxu1 %v394_v35 }
  0x3f   :  { %754 = vmatprep.subr.mxu0 %v500_v36  ;;  %685 = vmatprep.subr.mxu1 %v392_v37 }
  0x40   :  { %23 = vsyncpa [#allocation3], 0  ;;  %755 = vmatpush1.msra.mxu0 %v499_v38  ;;  %v494_v44 = vld [vmem:[%s7279_s2 + $0x350] sm:$0xff]  ;;  %686 = vmatpush1.msra.mxu1 %v391_v39  ;;  %v493_v46 = vld [vmem:[%s7279_s2 + $0x348] sm:$0xff]  ;;  %vm647_vm1 = vcmask 1043456   ;;  %vm640_vm2 = vcmask 228352  }
  0x41   :  { %v482_v45 = vld [vmem:[%s7279_s2 + $0x2f0] sm:$0xff]  ;;  %756 = vmatprep.subr.mxu0 %v497_v40  ;;  %687 = vmatprep.subr.mxu1 %v389_v41  ;;  %v481_v47 = vld [vmem:[%s7279_s2 + $0x2e8] sm:$0xff]  ;;  %v491_v48 = vld [vmem:[%s7279_s2 + $0x338] sm:$0xff]  ;;  %vm1313_vm3 = vcmask 1040384   ;;  %vm1267_vm4 = vcmask 490496   ;;  %vm4562_vm5 = vmmov 0  }
  0x42   :  { %757 = vmatpush1.msra.mxu0 %v496_v42  ;;  %688 = vmatpush1.msra.mxu1 %v388_v43  ;;  %v479_v49 = vld [vmem:[%s7279_s2 + $0x2d8] sm:$0xff]  ;;  %v490_v50 = vld [vmem:[%s7279_s2 + $0x330] sm:$0xff]  ;;  %v488_v52 = vld [vmem:[%s7279_s2 + $0x320] sm:$0xff]  ;;  %vm2688_vm12 = vcmask 130048   ;;  %vm2861_vm13 = vcmask 1045504   ;;  %vm2863_vm14 = vcmask 226304  }
  0x43   :  { %758 = vmatprep.subr.mxu0 %v494_v44  ;;  %689 = vmatprep.subr.mxu1 %v482_v45  ;;  %v478_v51 = vld [vmem:[%s7279_s2 + $0x2d0] sm:$0xff]  ;;  %v476_v53 = vld [vmem:[%s7279_s2 + $0x2c0] sm:$0xff]  ;;  %v487_v54 = vld [vmem:[%s7279_s2 + $0x318] sm:$0xff]  ;;  %s4564_s21 = smov 1   ;;  %vm2878_vm15 = vcmask 7168   ;;  %vm2880_vm0 = vcmask 48128  }
  0x44   :  { %759 = vmatpush1.msra.mxu0 %v493_v46  ;;  %690 = vmatpush2.msra.mxu1 %v481_v47  ;;  %v475_v55 = vld [vmem:[%s7279_s2 + $0x2b8] sm:$0xff]  ;;  %v485_v56 = vld [vmem:[%s7279_s2 + $0x308] sm:$0xff]  ;;  %v484_v58 = vld [vmem:[%s7279_s2 + $0x300] sm:$0xff]  ;;  %s4566_s24 = smov 127   ;;  %s4568_s30 = smov 8  }
  0x45   :  { %760 = vmatprep.subr.mxu0 %v491_v48  ;;  %691 = vmatprep.subr.mxu1 %v479_v49  ;;  %v473_v57 = vld [vmem:[%s7279_s2 + $0x2a8] sm:$0xff]  ;;  %v472_v59 = vld [vmem:[%s7279_s2 + $0x2a0] sm:$0xff]  ;;  %v578_v60 = vld [vmem:[%s7279_s2 + $0x5f0] sm:$0xff]  ;;  %s4569_s18 = smov 16   ;;  %s4572_s27 = smov 112  }
  0x46   :  { %761 = vmatpush1.msra.mxu0 %v490_v50  ;;  %692 = vmatpush2.msra.mxu1 %v478_v51  ;;  %v470_v61 = vld [vmem:[%s7279_s2 + $0x290] sm:$0xff]  ;;  %v577_v62 = vld [vmem:[%s7279_s2 + $0x5e8] sm:$0xff]  ;;  %v575_v0 = vld [vmem:[%s7279_s2 + $0x5d8] sm:$0xff] }
  0x47   :  { %762 = vmatprep.subr.mxu0 %v488_v52  ;;  %693 = vmatprep.subr.mxu1 %v476_v53  ;;  %v469_v63 = vld [vmem:[%s7279_s2 + $0x288] sm:$0xff]  ;;  %v467_v1 = vld [vmem:[%s7279_s2 + $0x278] sm:$0xff]  ;;  %v574_v2 = vld [vmem:[%s7279_s2 + $0x5d0] sm:$0xff] }
  0x48   :  { %763 = vmatpush1.msra.mxu0 %v487_v54  ;;  %694 = vmatpush2.msra.mxu1 %v475_v55  ;;  %v466_v3 = vld [vmem:[%s7279_s2 + $0x270] sm:$0xff]  ;;  %v572_v4 = vld [vmem:[%s7279_s2 + $0x5c0] sm:$0xff]  ;;  %v571_v6 = vld [vmem:[%s7279_s2 + $0x5b8] sm:$0xff]  ;;  %v108_v55 = vlaneseq }
  0x49   :  { %764 = vmatprep.subr.mxu0 %v485_v56  ;;  %695 = vmatprep.subr.mxu1 %v473_v57  ;;  %v464_v5 = vld [vmem:[%s7279_s2 + $0x260] sm:$0xff]  ;;  %v463_v7 = vld [vmem:[%s7279_s2 + $0x258] sm:$0xff]  ;;  %v569_v8 = vld [vmem:[%s7279_s2 + $0x5a8] sm:$0xff] }
  0x4a   :  { %765 = vmatpush1.msra.mxu0 %v484_v58  ;;  %696 = vmatpush2.msra.mxu1 %v472_v59  ;;  %v461_v9 = vld [vmem:[%s7279_s2 + $0x248] sm:$0xff]  ;;  %v568_v10 = vld [vmem:[%s7279_s2 + $0x5a0] sm:$0xff]  ;;  %v566_v12 = vld [vmem:[%s7279_s2 + $0x590] sm:$0xff]  ;;  %v5227_v56 = vshrl.u32 %v108_v55, 7 }
  0x4b   :  { %766 = vmatprep.subr.mxu0 %v578_v60  ;;  %697 = vmatprep.subr.mxu1 %v470_v61  ;;  %v460_v11 = vld [vmem:[%s7279_s2 + $0x240] sm:$0xff]  ;;  %v458_v13 = vld [vmem:[%s7279_s2 + $0x230] sm:$0xff]  ;;  %v565_v14 = vld [vmem:[%s7279_s2 + $0x588] sm:$0xff] }
  0x4c   :  { %767 = vmatpush2.msra.mxu0 %v577_v62  ;;  %698 = vmatpush2.msra.mxu1 %v469_v63  ;;  %v457_v15 = vld [vmem:[%s7279_s2 + $0x228] sm:$0xff]  ;;  %v563_v16 = vld [vmem:[%s7279_s2 + $0x578] sm:$0xff]  ;;  %v562_v18 = vld [vmem:[%s7279_s2 + $0x570] sm:$0xff]  ;;  %v5230_v57 = vsub.s32 2, %v5227_v56  ;;  %v5233_v58 = vsub.s32 0, %v5227_v56  ;;  %v5241_v60 = vsub.s32 1, %v5227_v56 }
  0x4d   :  { %768 = vmatprep.subr.mxu0 %v575_v0  ;;  %699 = vmatprep.subr.mxu1 %v467_v1  ;;  %v455_v17 = vld [vmem:[%s7279_s2 + $0x218] sm:$0xff]  ;;  %v454_v19 = vld [vmem:[%s7279_s2 + $0x210] sm:$0xff]  ;;  %v560_v20 = vld [vmem:[%s7279_s2 + $0x560] sm:$0xff]  ;;  %v122_v61 = vsub.s32 3, %v5227_v56 }
  0x4e   :  { %769 = vmatpush2.msra.mxu0 %v574_v2  ;;  %700 = vmatpush2.msra.mxu1 %v466_v3  ;;  %v452_v21 = vld [vmem:[%s7279_s2 + $0x200] sm:$0xff]  ;;  %v559_v22 = vld [vmem:[%s7279_s2 + $0x558] sm:$0xff]  ;;  %v557_v24 = vld [vmem:[%s7279_s2 + $0x548] sm:$0xff] }
  0x4f   :  { %770 = vmatprep.subr.mxu0 %v572_v4  ;;  %701 = vmatprep.subr.mxu1 %v464_v5  ;;  %v451_v23 = vld [vmem:[%s7279_s2 + $0x1f8] sm:$0xff]  ;;  %v449_v25 = vld [vmem:[%s7279_s2 + $0x1e8] sm:$0xff]  ;;  %v556_v26 = vld [vmem:[%s7279_s2 + $0x540] sm:$0xff] }
  0x50   :  { %771 = vmatpush2.msra.mxu0 %v571_v6  ;;  %702 = vmatpush2.msra.mxu1 %v463_v7  ;;  %v448_v27 = vld [vmem:[%s7279_s2 + $0x1e0] sm:$0xff]  ;;  %v554_v28 = vld [vmem:[%s7279_s2 + $0x530] sm:$0xff]  ;;  %v553_v30 = vld [vmem:[%s7279_s2 + $0x528] sm:$0xff] }
  0x51   :  { %772 = vmatprep.subr.mxu0 %v569_v8  ;;  %703 = vmatprep.subr.mxu1 %v461_v9  ;;  %v446_v29 = vld [vmem:[%s7279_s2 + $0x1d0] sm:$0xff]  ;;  %v445_v31 = vld [vmem:[%s7279_s2 + $0x1c8] sm:$0xff]  ;;  %v551_v32 = vld [vmem:[%s7279_s2 + $0x518] sm:$0xff] }
  0x52   :  { %773 = vmatpush2.msra.mxu0 %v568_v10  ;;  %704 = vmatpush2.msra.mxu1 %v460_v11  ;;  %v443_v34 = vld [vmem:[%s7279_s2 + $0x1b8] sm:$0xff]  ;;  %v550_v35 = vld [vmem:[%s7279_s2 + $0x510] sm:$0xff]  ;;  %v548_v37 = vld [vmem:[%s7279_s2 + $0x500] sm:$0xff] }
  0x53   :  { %774 = vmatprep.subr.mxu0 %v566_v12  ;;  %705 = vmatprep.subr.mxu1 %v458_v13  ;;  %v442_v36 = vld [vmem:[%s7279_s2 + $0x1b0] sm:$0xff]  ;;  %v440_v38 = vld [vmem:[%s7279_s2 + $0x1a0] sm:$0xff]  ;;  %v547_v39 = vld [vmem:[%s7279_s2 + $0x4f8] sm:$0xff] }
  0x54   :  { %775 = vmatpush2.msra.mxu0 %v565_v14  ;;  %706 = vmatpush2.msra.mxu1 %v457_v15  ;;  %v439_v40 = vld [vmem:[%s7279_s2 + $0x198] sm:$0xff]  ;;  %v545_v41 = vld [vmem:[%s7279_s2 + $0x4e8] sm:$0xff]  ;;  %v544_v43 = vld [vmem:[%s7279_s2 + $0x4e0] sm:$0xff] }
  0x55   :  { %776 = vmatprep.subr.mxu0 %v563_v16  ;;  %707 = vmatprep.subr.mxu1 %v455_v17  ;;  %v437_v42 = vld [vmem:[%s7279_s2 + $0x188] sm:$0xff]  ;;  %v436_v44 = vld [vmem:[%s7279_s2 + $0x180] sm:$0xff]  ;;  %v542_v45 = vld [vmem:[%s7279_s2 + $0x4d0] sm:$0xff] }
  0x56   :  { %777 = vmatpush2.msra.mxu0 %v562_v18  ;;  %708 = vmatpush2.msra.mxu1 %v454_v19  ;;  %v626_v46 = vld [vmem:[%s7279_s2 + $0x770] sm:$0xff]  ;;  %v541_v47 = vld [vmem:[%s7279_s2 + $0x4c8] sm:$0xff]  ;;  %v539_v48 = vld [vmem:[%s7279_s2 + $0x4b8] sm:$0xff] }
  0x57   :  { %778 = vmatprep.subr.mxu0 %v560_v20  ;;  %709 = vmatprep.subr.mxu1 %v452_v21  ;;  %v538_v49 = vld [vmem:[%s7279_s2 + $0x4b0] sm:$0xff]  ;;  %v536_v50 = vld [vmem:[%s7279_s2 + $0x4a0] sm:$0xff]  ;;  %v535_v51 = vld [vmem:[%s7279_s2 + $0x498] sm:$0xff] }
  0x58   :  { %779 = vmatpush2.msra.mxu0 %v559_v22  ;;  %710 = vmatpush2.msra.mxu1 %v451_v23  ;;  %v533_v52 = vld [vmem:[%s7279_s2 + $0x488] sm:$0xff]  ;;  %v532_v53 = vld [vmem:[%s7279_s2 + $0x480] sm:$0xff]  ;;  %v483_v54 = vld [vmem:[%s7279_s2 + $0x2f8] sm:$0xff] }
  0x59   :  { %780 = vmatprep.subr.mxu0 %v557_v24  ;;  %711 = vmatprep.subr.mxu1 %v449_v25  ;;  %v5238_v59 = vld [vmem:[%s7284_s7] sm:$0x3f]  ;;  %v625_v17 = vld [vmem:[%s7279_s2 + $0x768] sm:$0xff]  ;;  %v435_v18 = vld [vmem:[%s7279_s2 + $0x178] sm:$0xff] }
  0x5a   :  { %781 = vmatpush2.msra.mxu0 %v556_v26  ;;  %712 = vmatpush2.msra.mxu1 %v448_v27  ;;  %v119_v62 = vrot.slane %v5238_v59, %v5230_v57  ;;  %v5248_v63 = vrot.slane %v5238_v59, %v5233_v58  ;;  %v5252_v0 = vrot.slane %v5238_v59, %v5241_v60  ;;  %v623_v20 = vld [vmem:[%s7279_s2 + $0x758] sm:$0xff]  ;;  %v480_v21 = vld [vmem:[%s7279_s2 + $0x2e0] sm:$0xff]  ;;  %v622_v22 = vld [vmem:[%s7279_s2 + $0x750] sm:$0xff] }
  0x5b   :  { %782 = vmatprep.subr.mxu0 %v554_v28  ;;  %713 = vmatprep.subr.mxu1 %v446_v29  ;;  %v123_v1 = vrot.slane %v5238_v59, %v122_v61  ;;  %v432_v23 = vld [vmem:[%s7279_s2 + $0x160] sm:$0xff]  ;;  %v477_v27 = vld [vmem:[%s7279_s2 + $0x2c8] sm:$0xff]  ;;  %v619_v28 = vld [vmem:[%s7279_s2 + $0x738] sm:$0xff] }
  0x5c   :  { %783 = vmatpush2.msra.mxu0 %v553_v30  ;;  %714 = vmatpush2.msra.mxu1 %v445_v31  ;;  %v620_v26 = vld [vmem:[%s7279_s2 + $0x740] sm:$0xff]  ;;  %v429_v29 = vld [vmem:[%s7279_s2 + $0x148] sm:$0xff]  ;;  %v474_v31 = vld [vmem:[%s7279_s2 + $0x2b0] sm:$0xff] }
  0x5d   :  { %784 = vmatprep.subr.mxu0 %v551_v32  ;;  %715 = vmatprep.subr.mxu1 %v443_v34  ;;  %v617_v30 = vld [vmem:[%s7279_s2 + $0x728] sm:$0xff]  ;;  %v616_v32 = vld [vmem:[%s7279_s2 + $0x720] sm:$0xff]  ;;  %v426_v34 = vld [vmem:[%s7279_s2 + $0x130] sm:$0xff] }
  0x5e   :  { %785 = vmatpush2.msra.mxu0 %v550_v35  ;;  %716 = vmatpush2.msra.mxu1 %v442_v36  ;;  %v614_v35 = vld [vmem:[%s7279_s2 + $0x710] sm:$0xff]  ;;  %v471_v36 = vld [vmem:[%s7279_s2 + $0x298] sm:$0xff] }
  0x5f   :  { %786 = vmatprep.subr.mxu0 %v548_v37  ;;  %717 = vmatprep.subr.mxu1 %v440_v38  ;;  %v613_v37 = vld [vmem:[%s7279_s2 + $0x708] sm:$0xff]  ;;  %v423_v38 = vld [vmem:[%s7279_s2 + $0x118] sm:$0xff] }
  0x60   :  { %787 = vmatpush2.msra.mxu0 %v547_v39  ;;  %718 = vmatpush2.msra.mxu1 %v439_v40  ;;  %v611_v39 = vld [vmem:[%s7279_s2 + $0x6f8] sm:$0xff]  ;;  %v468_v40 = vld [vmem:[%s7279_s2 + $0x280] sm:$0xff] }
  0x61   :  { %788 = vmatprep.subr.mxu0 %v545_v41  ;;  %719 = vmatprep.subr.mxu1 %v437_v42  ;;  %v610_v41 = vld [vmem:[%s7279_s2 + $0x6f0] sm:$0xff]  ;;  %v420_v42 = vld [vmem:[%s7279_s2 + $0x100] sm:$0xff]  ;;  %v411_v55 = vld [vmem:[%s7279_s2 + $0xb8] sm:$0xff] }
  0x62   :  { %789 = vmatpush2.msra.mxu0 %v544_v43  ;;  %720 = vmatpush2.msra.mxu1 %v436_v44  ;;  %v608_v43 = vld [vmem:[%s7279_s2 + $0x6e0] sm:$0xff]  ;;  %v465_v44 = vld [vmem:[%s7279_s2 + $0x268] sm:$0xff]  ;;  %v599_v61 = vld [vmem:[%s7279_s2 + $0x698] sm:$0xff] }
  0x63   :  { %790 = vmatprep.subr.mxu0 %v542_v45  ;;  %811 = vmatprep.subr.mxu1 %v626_v46  ;;  %v607_v45 = vld [vmem:[%s7279_s2 + $0x6d8] sm:$0xff]  ;;  %v417_v46 = vld [vmem:[%s7279_s2 + $0xe8] sm:$0xff] }
  0x64   :  { %791 = vmatpush2.msra.mxu0 %v541_v47  ;;  %v605_v47 = vld [vmem:[%s7279_s2 + $0x6c8] sm:$0xff] }
  0x65   :  { %792 = vmatprep.subr.mxu0 %v539_v48  ;;  %v462_v48 = vld [vmem:[%s7279_s2 + $0x250] sm:$0xff] }
  0x66   :  { %793 = vmatpush2.msra.mxu0 %v538_v49  ;;  %v604_v49 = vld [vmem:[%s7279_s2 + $0x6c0] sm:$0xff] }
  0x67   :  { %794 = vmatprep.subr.mxu0 %v536_v50  ;;  %v414_v50 = vld [vmem:[%s7279_s2 + $0xd0] sm:$0xff] }
  0x68   :  { %795 = vmatpush2.msra.mxu0 %v535_v51  ;;  %v602_v51 = vld [vmem:[%s7279_s2 + $0x6b0] sm:$0xff] }
  0x69   :  { %796 = vmatprep.subr.mxu0 %v533_v52  ;;  %v459_v52 = vld [vmem:[%s7279_s2 + $0x238] sm:$0xff] }
  0x6a   :  { %797 = vmatpush2.msra.mxu0 %v532_v53  ;;  %v601_v53 = vld [vmem:[%s7279_s2 + $0x6a8] sm:$0xff] }
  0x6b   :  { %4166 = vmatprep.subr.mxu0 %v483_v54 }
  0xda   :  { %v211_v2 = vpop.f32.mrf.mxu0  ;;  %v288_v3 = vpop.f32.mrf.mxu1 }
  0xdb   :  { %v289_v4 = vadd.f32 %v288_v3, %v119_v62  ;;  %v212_v5 = vadd.f32 %v211_v2, %v5248_v63  ;;  %v408_v2 = vld [vmem:[%s7279_s2 + $0xa0] sm:$0xff] }
  0xdc   :  { %v213_v6 = vpop.f32.mrf.mxu0  ;;  %v290_v7 = vpop.f32.mrf.mxu1  ;;  %v596_v3 = vld [vmem:[%s7279_s2 + $0x680] sm:$0xff] }
  0xdd   :  { %v214_v8 = vadd.f32 %v213_v6, %v5252_v0  ;;  %v291_v9 = vadd.f32 %v290_v7, %v123_v1  ;;  %v5257_v10 = vmul.f32 %v289_v4, %v289_v4  ;;  %v5261_v15 = vmul.f32 %v212_v5, %v212_v5  ;;  %v453_v4 = vld [vmem:[%s7279_s2 + $0x208] sm:$0xff]  ;;  %v595_v5 = vld [vmem:[%s7279_s2 + $0x678] sm:$0xff] }
  0xde   :  { %v294_v11 = vpop.f32.mrf.mxu1  ;;  %v405_v7 = vld [vmem:[%s7279_s2 + $0x88] sm:$0xff] }
  0xdf   :  { %v377_v12 = vmul.f32 %v214_v8, %v214_v8  ;;  %v5259_v13 = vmul.f32 %v291_v9, %v291_v9  ;;  %v295_v14 = vadd.f32 %v294_v11, %v119_v62  ;;  %v217_v54 = vpop.f32.mrf.mxu0  ;;  %v456_v62 = vld [vmem:[%s7279_s2 + $0x220] sm:$0xff]  ;;  %v593_v8 = vld [vmem:[%s7279_s2 + $0x668] sm:$0xff]  ;;  %v450_v9 = vld [vmem:[%s7279_s2 + $0x1f0] sm:$0xff] }
  0xe0   :  { %v296_v16 = vpop.f32.mrf.mxu1  ;;  %v592_v11 = vld [vmem:[%s7279_s2 + $0x660] sm:$0xff] }
  0xe1   :  { %v297_v19 = vadd.f32 %v296_v16, %v123_v1  ;;  %721 = vmatprep.mubr.f32.mxu1 %v377_v12  ;;  %798 = vmatprep.mubr.f32.mxu0 %v5259_v13  ;;  %v5284_v24 = vmul.f32 %v295_v14, %v295_v14  ;;  %v598_v1 = vld [vmem:[%s7279_s2 + $0x690] sm:$0xff]  ;;  %v219_v6 = vpop.f32.mrf.mxu0 }
  0xe2   :  { %722 = vmatmul.mubr.f32.vlgmr.msra.gmra.mxu1 %v5261_v15  ;;  %799 = vmatmul.mubr.f32.vlgmr.msra.gmra.mxu0 %v5257_v10  ;;  %v220_v14 = vadd.f32 %v219_v6, %v5252_v0  ;;  %v590_v16 = vld [vmem:[%s7279_s2 + $0x650] sm:$0xff]  ;;  %v399_v0 = vld [vmem:[%s7279_s2 + $0x58] sm:$0xff]  ;;  %v576_v6 = vld [vmem:[%s7279_s2 + $0x5e0] sm:$0xff] }
  0xe3   :  { %v5286_v25 = vmul.f32 %v297_v19, %v297_v19  ;;  %812 = vmatpush1.msra.mxu1 %v625_v17  ;;  %4167 = vmatpush3.msra.mxu0 %v435_v18  ;;  %v447_v17 = vld [vmem:[%s7279_s2 + $0x1d8] sm:$0xff]  ;;  %v589_v18 = vld [vmem:[%s7279_s2 + $0x648] sm:$0xff]  ;;  %v218_v19 = vadd.f32 %v217_v54, %v5248_v63  ;;  %v586_v63 = vld [vmem:[%s7279_s2 + $0x630] sm:$0xff] }
  0xe4   :  { %813 = vmatprep.subr.mxu1 %v623_v20  ;;  %4168 = vmatprep.subr.mxu0 %v480_v21  ;;  %v587_v20 = vld [vmem:[%s7279_s2 + $0x638] sm:$0xff]  ;;  %v444_v21 = vld [vmem:[%s7279_s2 + $0x1c0] sm:$0xff] }
  0xe5   :  { %814 = vmatpush1.msra.mxu1 %v622_v22  ;;  %4169 = vmatpush3.msra.mxu0 %v432_v23  ;;  %v383_v23 = vmul.f32 %v220_v14, %v220_v14  ;;  %v609_v14 = vld [vmem:[%s7279_s2 + $0x6e8] sm:$0xff] }
  0xe6   :  { %804 = vmatprep.mubr.f32.mxu0 %v5286_v25  ;;  %815 = vmatprep.subr.mxu1 %v620_v26  ;;  %v396_v26 = vld [vmem:[%s7279_s2 + $0x40] sm:$0xff] }
  0xe7   :  { %4170 = vmatprep.subr.mxu0 %v477_v27  ;;  %805 = vmatmul.mubr.f32.gmra.mxu0 %v5284_v24  ;;  %v584_v27 = vld [vmem:[%s7279_s2 + $0x620] sm:$0xff] }
  0xe8   :  { %816 = vmatpush1.msra.mxu1 %v619_v28  ;;  %4171 = vmatpush3.msra.mxu0 %v429_v29  ;;  %v130_v28 = vsub.s32 5, %v5227_v56  ;;  %v441_v29 = vld [vmem:[%s7279_s2 + $0x1a8] sm:$0xff] }
  0xe9   :  { %817 = vmatprep.subr.mxu1 %v617_v30  ;;  %4172 = vmatprep.subr.mxu0 %v474_v31  ;;  %v382_v30 = vmul.f32 %v218_v19, %v218_v19  ;;  %v583_v31 = vld [vmem:[%s7279_s2 + $0x618] sm:$0xff] }
  0xea   :  { %952 = vmatprep.mubr.f32.mxu0 %v377_v12  ;;  %818 = vmatpush1.msra.mxu1 %v616_v32  ;;  %v402_v12 = vld [vmem:[%s7279_s2 + $0x70] sm:$0xff]  ;;  %v393_v32 = vld [vmem:[%s7279_s2 + $0x28] sm:$0xff]  ;;  %v567_v19 = vld [vmem:[%s7279_s2 + $0x598] sm:$0xff] }
  0xeb   :  { %4173 = vmatpush3.msra.mxu0 %v426_v34  ;;  %819 = vmatprep.subr.mxu1 %v614_v35  ;;  %v365_v22 = vpop.f32.mrf.mxu0  ;;  %v581_v34 = vld [vmem:[%s7279_s2 + $0x608] sm:$0xff] }
  0xec   :  { %4174 = vmatprep.subr.mxu0 %v471_v36  ;;  %820 = vmatpush1.msra.mxu1 %v613_v37  ;;  %v438_v36 = vld [vmem:[%s7279_s2 + $0x190] sm:$0xff]  ;;  %v580_v37 = vld [vmem:[%s7279_s2 + $0x600] sm:$0xff] }
  0xed   :  { %4175 = vmatpush3.msra.mxu0 %v423_v38  ;;  %821 = vmatprep.subr.mxu1 %v611_v39  ;;  %v367_v35 = vpop.f32.mrf.mxu0  ;;  %v131_v38 = vrot.slane %v5238_v59, %v130_v28  ;;  %v126_v39 = vsub.s32 4, %v5227_v56  ;;  %v627_v56 = vld [vmem:[%s7279_s2 + $0x778] sm:$0xff]  ;;  %v510_v28 = vld [vmem:[%s7279_s2 + $0x3d0] sm:$0xff] }
  0xee   :  { %4176 = vmatprep.subr.mxu0 %v468_v40  ;;  %822 = vmatpush1.msra.mxu1 %v610_v41  ;;  %v390_v40 = vld [vmem:[%s7279_s2 + $0x10] sm:$0xff] }
  0xef   :  { %4177 = vmatpush3.msra.mxu0 %v420_v42  ;;  %823 = vmatprep.subr.mxu1 %v608_v43  ;;  %v638_v41 = vld [vmem:[%s7279_s2 + $0x7d0] sm:$0xf]  ;;  %v637_v42 = vld [vmem:[%s7279_s2 + $0x7c8] sm:$0xf]  ;;  %v371_v43 = vpop.f32.mrf.mxu0 }
  0xf0   :  { %4178 = vmatprep.subr.mxu0 %v465_v44  ;;  %824 = vmatpush1.msra.mxu1 %v607_v45  ;;  %v368_v44 = vadd.f32 %v367_v35, %v131_v38  ;;  %v635_v45 = vld [vmem:[%s7279_s2 + $0x7b8] sm:$0xff]  ;;  %v504_v35 = vld [vmem:[%s7279_s2 + $0x3a0] sm:$0xff] }
  0xf1   :  { %4179 = vmatpush3.msra.mxu0 %v417_v46  ;;  %825 = vmatprep.subr.mxu1 %v605_v47  ;;  %v127_v46 = vrot.slane %v5238_v59, %v126_v39  ;;  %v634_v47 = vld [vmem:[%s7279_s2 + $0x7b0] sm:$0xff]  ;;  %v373_v59 = vpop.f32.mrf.mxu0  ;;  %v585_v39 = vld [vmem:[%s7279_s2 + $0x628] sm:$0xff] }
  0xf2   :  { %4180 = vmatprep.subr.mxu0 %v462_v48  ;;  %826 = vmatpush1.msra.mxu1 %v604_v49  ;;  %v624_v48 = vld [vmem:[%s7279_s2 + $0x760] sm:$0xff]  ;;  %v374_v54 = vadd.f32 %v373_v59, %v131_v38  ;;  %v501_v38 = vld [vmem:[%s7279_s2 + $0x388] sm:$0xff] }
  0xf3   :  { %4181 = vmatpush3.msra.mxu0 %v414_v50  ;;  %827 = vmatprep.subr.mxu1 %v602_v51  ;;  %v632_v49 = vld [vmem:[%s7279_s2 + $0x7a0] sm:$0xff]  ;;  %v631_v50 = vld [vmem:[%s7279_s2 + $0x798] sm:$0xff]  ;;  %v621_v51 = vld [vmem:[%s7279_s2 + $0x748] sm:$0xff] }
  0xf4   :  { %4182 = vmatprep.subr.mxu0 %v459_v52  ;;  %828 = vmatpush1.msra.mxu1 %v601_v53  ;;  %v366_v52 = vadd.f32 %v365_v22, %v127_v46  ;;  %v629_v53 = vld [vmem:[%s7279_s2 + $0x788] sm:$0xff] }
  0xf5   :  { %4183 = vmatpush3.msra.mxu0 %v411_v55  ;;  %829 = vmatprep.subr.mxu1 %v599_v61  ;;  %v628_v55 = vld [vmem:[%s7279_s2 + $0x780] sm:$0xff]  ;;  %v618_v61 = vld [vmem:[%s7279_s2 + $0x730] sm:$0xff]  ;;  %v561_v22 = vld [vmem:[%s7279_s2 + $0x568] sm:$0xff] }
  0xf6   :  { %4184 = vmatprep.subr.mxu0 %v456_v62  ;;  %830 = vmatpush1.msra.mxu1 %v598_v1  ;;  %v372_v62 = vadd.f32 %v371_v43, %v127_v46  ;;  %v579_v1 = vld [vmem:[%s7279_s2 + $0x5f8] sm:$0xff]  ;;  %v492_v46 = vld [vmem:[%s7279_s2 + $0x340] sm:$0xff]  ;;  %v633_v59 = vld [vmem:[%s7279_s2 + $0x7a8] sm:$0xff] }
  0xf7   :  { %4185 = vmatpush3.msra.mxu0 %v408_v2  ;;  %831 = vmatprep.subr.mxu1 %v596_v3  ;;  %v5510_v2 = vmul.f32 %v366_v52, %v366_v52  ;;  %v531_v3 = vld [vmem:[%s7279_s2 + $0x478] sm:$0xff]  ;;  %v1177_v52 = vld [vmem:[%s7280_s3 + $0x170] sm:$0xff] }
  0xf8   :  { %4186 = vmatprep.subr.mxu0 %v453_v4  ;;  %832 = vmatpush1.msra.mxu1 %v595_v5  ;;  %v5517_v4 = vmul.f32 %v374_v54, %v374_v54  ;;  %v615_v5 = vld [vmem:[%s7279_s2 + $0x718] sm:$0xff] }
  0xf9   :  { %4187 = vmatpush3.msra.mxu0 %v405_v7  ;;  %833 = vmatprep.subr.mxu1 %v593_v8  ;;  %v5526_v7 = vmul.f32 %v372_v62, %v372_v62  ;;  %v528_v8 = vld [vmem:[%s7279_s2 + $0x460] sm:$0xff]  ;;  %v495_v43 = vld [vmem:[%s7279_s2 + $0x358] sm:$0xff]  ;;  %v1165_v62 = vld [vmem:[%s7280_s3 + $0x110] sm:$0xff] }
  0xfa   :  { %4188 = vmatprep.subr.mxu0 %v450_v9  ;;  %834 = vmatpush1.msra.mxu1 %v592_v11  ;;  %v612_v9 = vld [vmem:[%s7279_s2 + $0x700] sm:$0xff]  ;;  %v573_v11 = vld [vmem:[%s7279_s2 + $0x5c8] sm:$0xff]  ;;  %v1174_v54 = vld [vmem:[%s7280_s3 + $0x158] sm:$0xff] }
  0xfb   :  { %4189 = vmatpush3.msra.mxu0 %v402_v12  ;;  %835 = vmatprep.subr.mxu1 %v590_v16  ;;  %v525_v12 = vld [vmem:[%s7279_s2 + $0x448] sm:$0xff]  ;;  %v570_v16 = vld [vmem:[%s7279_s2 + $0x5b0] sm:$0xff] }
  0xfc   :  { %4190 = vmatprep.subr.mxu0 %v447_v17  ;;  %836 = vmatpush1.msra.mxu1 %v589_v18  ;;  %v522_v17 = vld [vmem:[%s7279_s2 + $0x430] sm:$0xff] }
  0xfd   :  { %4191 = vmatpush3.msra.mxu0 %v399_v0  ;;  %837 = vmatprep.subr.mxu1 %v587_v20  ;;  %v606_v18 = vld [vmem:[%s7279_s2 + $0x6d0] sm:$0xff]  ;;  %v519_v0 = vld [vmem:[%s7279_s2 + $0x418] sm:$0xff] }
  0xfe   :  { %4192 = vmatprep.subr.mxu0 %v444_v21  ;;  %838 = vmatpush1.msra.mxu1 %v586_v63  ;;  %v603_v20 = vld [vmem:[%s7279_s2 + $0x6b8] sm:$0xff]  ;;  %v516_v21 = vld [vmem:[%s7279_s2 + $0x400] sm:$0xff] }
  0xff   :  { %4193 = vmatpush3.msra.mxu0 %v396_v26  ;;  %839 = vmatprep.subr.mxu1 %v584_v27  ;;  %v600_v63 = vld [vmem:[%s7279_s2 + $0x6a0] sm:$0xff]  ;;  %v597_v26 = vld [vmem:[%s7279_s2 + $0x688] sm:$0xff]  ;;  %v558_v27 = vld [vmem:[%s7279_s2 + $0x550] sm:$0xff] }
 0x100   :  { %4194 = vmatprep.subr.mxu0 %v441_v29  ;;  %727 = vmatprep.mubr.f32.mxu1 %v383_v23  ;;  %v594_v29 = vld [vmem:[%s7279_s2 + $0x670] sm:$0xff] }
 0x101   :  { %840 = vmatpush1.msra.mxu1 %v583_v31  ;;  %4195 = vmatpush3.msra.mxu0 %v393_v32  ;;  %v507_v31 = vld [vmem:[%s7279_s2 + $0x3b8] sm:$0xff] }
 0x102   :  { %728 = vmatmul.mubr.f32.gmra.mxu1 %v382_v30  ;;  %841 = vmatprep.subr.mxu1 %v581_v34  ;;  %v591_v32 = vld [vmem:[%s7279_s2 + $0x658] sm:$0xff]  ;;  %v552_v34 = vld [vmem:[%s7279_s2 + $0x520] sm:$0xff] }
 0x103   :  { %4196 = vmatprep.subr.mxu0 %v438_v36  ;;  %842 = vmatpush1.msra.mxu1 %v580_v37  ;;  %v588_v36 = vld [vmem:[%s7279_s2 + $0x640] sm:$0xff]  ;;  %v549_v37 = vld [vmem:[%s7279_s2 + $0x508] sm:$0xff] }
 0x104   :  { %4197 = vmatpush3.msra.mxu0 %v390_v40  ;;  %4108 = vmatprep.subr.msk.mxu1 %vm647_vm1, %v638_v41  ;;  %v546_v40 = vld [vmem:[%s7279_s2 + $0x4f0] sm:$0xff] }
 0x105   :  { %953 = vmatmul.mubr.f32.vlgmr.msra.gmra.mxu0 %v5261_v15  ;;  %1038 = vmatprep.subr.mxu0 %v4561_v33  ;;  %v381_v15 = vmul.f32 %v368_v44, %v368_v44  ;;  %v498_v41 = vld [vmem:[%s7279_s2 + $0x370] sm:$0xff]  ;;  %v639_v44 = vld [vmem:[%s7279_s2 + $0x7d8] sm:$0xf] }
 0x106   :  { %4109 = vmatpush2.msk.msra.mxu1 %vm647_vm1, %v637_v42  ;;  %1039 = vmatpush1.msra.mxu0 %v627_v56  ;;  %v582_v42 = vld [vmem:[%s7279_s2 + $0x610] sm:$0xff]  ;;  %v543_v56 = vld [vmem:[%s7279_s2 + $0x4d8] sm:$0xff] }
 0x107   :  { %869 = vmatprep.subr.mxu1 %v635_v45  ;;  %957 = vmatprep.mubr.f32.mxu0 %v383_v23  ;;  %v513_v23 = vld [vmem:[%s7279_s2 + $0x3e8] sm:$0xff]  ;;  %v540_v45 = vld [vmem:[%s7279_s2 + $0x4c0] sm:$0xff] }
 0x108   :  { %1040 = vmatprep.subr.mxu0 %v4561_v33  ;;  %870 = vmatpush2.msra.mxu1 %v634_v47  ;;  %v636_v47 = vld [vmem:[%s7279_s2 + $0x7c0] sm:$0xff] }
 0x109   :  { %1041 = vmatpush1.msra.mxu0 %v624_v48  ;;  %871 = vmatprep.subr.mxu1 %v632_v49  ;;  %v537_v48 = vld [vmem:[%s7279_s2 + $0x4a8] sm:$0xff] }
 0x10a   :  { %958 = vmatmul.mubr.f32.gmra.mxu0 %v382_v30  ;;  %1042 = vmatprep.subr.mxu0 %v4561_v33  ;;  %v555_v30 = vld [vmem:[%s7279_s2 + $0x538] sm:$0xff]  ;;  %v489_v49 = vld [vmem:[%s7279_s2 + $0x328] sm:$0xff] }
 0x10b   :  { %872 = vmatpush2.msra.mxu1 %v631_v50  ;;  %1043 = vmatpush1.msra.mxu0 %v621_v51  ;;  %v486_v50 = vld [vmem:[%s7279_s2 + $0x310] sm:$0xff] }
 0x10c   :  { %873 = vmatprep.subr.mxu1 %v629_v53  ;;  %4110 = vmatprep.mubr.msk.f32.mxu1 %vm640_vm2, %v381_v15  ;;  %v630_v51 = vld [vmem:[%s7279_s2 + $0x790] sm:$0xff]  ;;  %v1176_v53 = vld [vmem:[%s7280_s3 + $0x168] sm:$0xff] }
 0x10d   :  { %1044 = vmatprep.subr.mxu0 %v4561_v33  ;;  %4113 = vmatprep.mubr.msk.f32.mxu0 %vm640_vm2, %v381_v15  ;;  %v534_v15 = vld [vmem:[%s7279_s2 + $0x490] sm:$0xff] }
 0x10e   :  { %874 = vmatpush2.msra.mxu1 %v628_v55  ;;  %1045 = vmatpush1.msra.mxu0 %v618_v61  ;;  %v1170_v55 = vld [vmem:[%s7280_s3 + $0x138] sm:$0xff]  ;;  %v1168_v61 = vld [vmem:[%s7280_s3 + $0x128] sm:$0xff] }
 0x10f   :  { %876 = vmatmul.mubr.f32.vlgmr.msra.gmra.mxu1 %v5510_v2  ;;  %4204 = vmatprep.subr.mxu1 %v579_v1  ;;  %v1164_v1 = vld [vmem:[%s7280_s3 + $0x108] sm:$0xff] }
 0x110   :  { %1046 = vmatprep.subr.mxu0 %v4561_v33  ;;  %4205 = vmatpush3.msra.mxu1 %v531_v3  ;;  %v1161_v3 = vld [vmem:[%s7280_s3 + $0xf0] sm:$0xff] }
 0x111   :  { %1047 = vmatpush1.msra.mxu0 %v615_v5  ;;  %4206 = vmatprep.subr.mxu1 %v576_v6  ;;  %v1158_v5 = vld [vmem:[%s7280_s3 + $0xd8] sm:$0xff]  ;;  %v1156_v6 = vld [vmem:[%s7280_s3 + $0xc8] sm:$0xff] }
 0x112   :  { %1048 = vmatprep.subr.mxu0 %v4561_v33  ;;  %4111 = vmatprep.mubr.msk.f32.mxu1 %vm640_vm2, %v5517_v4 }
 0x113   :  { %4207 = vmatpush3.msra.mxu1 %v528_v8  ;;  %1049 = vmatpush1.msra.mxu0 %v612_v9  ;;  %v1153_v8 = vld [vmem:[%s7280_s3 + $0xb0] sm:$0xff]  ;;  %v1152_v9 = vld [vmem:[%s7280_s3 + $0xa8] sm:$0xff] }
 0x114   :  { %882 = vmatmul.mubr.f32.gmra.mxu1 %v5526_v7  ;;  %4208 = vmatprep.subr.mxu1 %v573_v11  ;;  %v1150_v11 = vld [vmem:[%s7280_s3 + $0x98] sm:$0xff] }
 0x115   :  { %1050 = vmatprep.subr.mxu0 %v4561_v33  ;;  %4209 = vmatpush3.msra.mxu1 %v525_v12  ;;  %v1149_v12 = vld [vmem:[%s7280_s3 + $0x90] sm:$0xff] }
 0x116   :  { %1027 = vmatprep.mubr.f32.mxu1 %v5259_v13  ;;  %1051 = vmatpush1.msra.mxu0 %v609_v14  ;;  %v564_v13 = vld [vmem:[%s7279_s2 + $0x580] sm:$0xff] }
 0x117   :  { %4210 = vmatprep.subr.mxu1 %v570_v16  ;;  %1052 = vmatprep.subr.mxu0 %v4561_v33  ;;  %v1147_v14 = vld [vmem:[%s7280_s3 + $0x80] sm:$0xff]  ;;  %v1146_v16 = vld [vmem:[%s7280_s3 + $0x78] sm:$0xff] }
 0x118   :  { %4211 = vmatpush3.msra.mxu1 %v522_v17  ;;  %1053 = vmatpush1.msra.mxu0 %v606_v18  ;;  %v1144_v17 = vld [vmem:[%s7280_s3 + $0x68] sm:$0xff]  ;;  %v1143_v18 = vld [vmem:[%s7280_s3 + $0x60] sm:$0xff] }
 0x119   :  { %4212 = vmatprep.subr.mxu1 %v567_v19  ;;  %1054 = vmatprep.subr.mxu0 %v4561_v33  ;;  %v1141_v19 = vld [vmem:[%s7280_s3 + $0x50] sm:$0xff] }
 0x11a   :  { %4213 = vmatpush3.msra.mxu1 %v519_v0  ;;  %1055 = vmatpush1.msra.mxu0 %v603_v20  ;;  %v1140_v0 = vld [vmem:[%s7280_s3 + $0x48] sm:$0xff]  ;;  %v1138_v20 = vld [vmem:[%s7280_s3 + $0x38] sm:$0xff] }
 0x11b   :  { %4214 = vmatprep.subr.mxu1 %v564_v13  ;;  %1056 = vmatprep.subr.mxu0 %v4561_v33  ;;  %v1137_v13 = vld [vmem:[%s7280_s3 + $0x30] sm:$0xff] }
 0x11c   :  { %4215 = vmatpush3.msra.mxu1 %v516_v21  ;;  %1057 = vmatpush1.msra.mxu0 %v600_v63  ;;  %v1135_v21 = vld [vmem:[%s7280_s3 + $0x20] sm:$0xff]  ;;  %v1134_v63 = vld [vmem:[%s7280_s3 + $0x18] sm:$0xff] }
 0x11d   :  { %4216 = vmatprep.subr.mxu1 %v561_v22  ;;  %1058 = vmatprep.subr.mxu0 %v4561_v33  ;;  %v1132_v22 = vld [vmem:[%s7280_s3 + $0x8] sm:$0xff] }
 0x11e   :  { %4217 = vmatpush3.msra.mxu1 %v513_v23  ;;  %1059 = vmatpush1.msra.mxu0 %v597_v26  ;;  %v1131_v23 = vld [vmem:[%s7280_s3] sm:$0xff]  ;;  %v1225_v26 = vld [vmem:[%s7280_s3 + $0x2f0] sm:$0xff] }
 0x11f   :  { %4218 = vmatprep.subr.mxu1 %v558_v27  ;;  %1060 = vmatprep.subr.mxu0 %v4561_v33  ;;  %v1224_v27 = vld [vmem:[%s7280_s3 + $0x2e8] sm:$0xff] }
 0x120   :  { %4219 = vmatpush3.msra.mxu1 %v510_v28  ;;  %1061 = vmatpush1.msra.mxu0 %v594_v29  ;;  %v1222_v28 = vld [vmem:[%s7280_s3 + $0x2d8] sm:$0xff]  ;;  %v1221_v29 = vld [vmem:[%s7280_s3 + $0x2d0] sm:$0xff] }
 0x121   :  { %4220 = vmatprep.subr.mxu1 %v555_v30  ;;  %1062 = vmatprep.subr.mxu0 %v4561_v33  ;;  %v1219_v30 = vld [vmem:[%s7280_s3 + $0x2c0] sm:$0xff] }
 0x122   :  { %4221 = vmatpush3.msra.mxu1 %v507_v31  ;;  %1063 = vmatpush1.msra.mxu0 %v591_v32  ;;  %v1218_v31 = vld [vmem:[%s7280_s3 + $0x2b8] sm:$0xff]  ;;  %v1216_v32 = vld [vmem:[%s7280_s3 + $0x2a8] sm:$0xff] }
 0x123   :  { %4222 = vmatprep.subr.mxu1 %v552_v34  ;;  %1064 = vmatprep.subr.mxu0 %v4561_v33  ;;  %v1215_v34 = vld [vmem:[%s7280_s3 + $0x2a0] sm:$0xff] }
 0x124   :  { %4223 = vmatpush3.msra.mxu1 %v504_v35  ;;  %1065 = vmatpush1.msra.mxu0 %v588_v36  ;;  %v1213_v35 = vld [vmem:[%s7280_s3 + $0x290] sm:$0xff]  ;;  %v1212_v36 = vld [vmem:[%s7280_s3 + $0x288] sm:$0xff] }
 0x125   :  { %4224 = vmatprep.subr.mxu1 %v549_v37  ;;  %1066 = vmatprep.subr.mxu0 %v4561_v33  ;;  %v1210_v37 = vld [vmem:[%s7280_s3 + $0x278] sm:$0xff] }
 0x126   :  { %4225 = vmatpush3.msra.mxu1 %v501_v38  ;;  %1067 = vmatpush1.msra.mxu0 %v585_v39  ;;  %v1209_v38 = vld [vmem:[%s7280_s3 + $0x270] sm:$0xff]  ;;  %v1207_v39 = vld [vmem:[%s7280_s3 + $0x260] sm:$0xff] }
 0x127   :  { %4226 = vmatprep.subr.mxu1 %v546_v40  ;;  %1068 = vmatprep.subr.mxu0 %v4561_v33  ;;  %v1206_v40 = vld [vmem:[%s7280_s3 + $0x258] sm:$0xff] }
 0x128   :  { %4227 = vmatpush3.msra.mxu1 %v498_v41  ;;  %1069 = vmatpush1.msra.mxu0 %v582_v42  ;;  %v1204_v41 = vld [vmem:[%s7280_s3 + $0x248] sm:$0xff]  ;;  %v1203_v42 = vld [vmem:[%s7280_s3 + $0x240] sm:$0xff] }
 0x129   :  { %4228 = vmatprep.subr.mxu1 %v543_v56  ;;  %1094 = vmatprep.subr.mxu0 %v4561_v33  ;;  %v1201_v56 = vld [vmem:[%s7280_s3 + $0x230] sm:$0xff] }
 0x12a   :  { %4229 = vmatpush3.msra.mxu1 %v495_v43  ;;  %4112 = vmatpush2.msk.msra.mxu0 %vm647_vm1, %v639_v44  ;;  %v1200_v43 = vld [vmem:[%s7280_s3 + $0x228] sm:$0xff]  ;;  %v1198_v44 = vld [vmem:[%s7280_s3 + $0x218] sm:$0xff] }
 0x12b   :  { %4230 = vmatprep.subr.mxu1 %v540_v45  ;;  %1096 = vmatprep.subr.mxu0 %v4561_v33  ;;  %v1197_v45 = vld [vmem:[%s7280_s3 + $0x210] sm:$0xff] }
 0x12c   :  { %4231 = vmatpush3.msra.mxu1 %v492_v46  ;;  %1097 = vmatpush2.msra.mxu0 %v636_v47  ;;  %v1195_v46 = vld [vmem:[%s7280_s3 + $0x200] sm:$0xff]  ;;  %v1194_v47 = vld [vmem:[%s7280_s3 + $0x1f8] sm:$0xff] }
 0x12d   :  { %4232 = vmatprep.subr.mxu1 %v537_v48  ;;  %1098 = vmatprep.subr.mxu0 %v4561_v33  ;;  %v1192_v48 = vld [vmem:[%s7280_s3 + $0x1e8] sm:$0xff] }
 0x12e   :  { %4233 = vmatpush3.msra.mxu1 %v489_v49  ;;  %1099 = vmatpush2.msra.mxu0 %v633_v59  ;;  %v1191_v49 = vld [vmem:[%s7280_s3 + $0x1e0] sm:$0xff]  ;;  %v1189_v59 = vld [vmem:[%s7280_s3 + $0x1d0] sm:$0xff] }
 0x12f   :  { %4234 = vmatprep.subr.mxu1 %v534_v15  ;;  %1100 = vmatprep.subr.mxu0 %v4561_v33  ;;  %v1188_v15 = vld [vmem:[%s7280_s3 + $0x1c8] sm:$0xff] }
 0x130   :  { %4235 = vmatpush3.msra.mxu1 %v486_v50  ;;  %1101 = vmatpush2.msra.mxu0 %v630_v51  ;;  %v1186_v50 = vld [vmem:[%s7280_s3 + $0x1b8] sm:$0xff]  ;;  %v1185_v51 = vld [vmem:[%s7280_s3 + $0x1b0] sm:$0xff] }
 0x131   :  { %1028 = vmatmul.mubr.f32.vlgmr.msra.gmra.mxu1 %v5257_v10  ;;  %1103 = vmatmul.mubr.f32.vlgmr.msra.gmra.mxu0 %v5510_v2  ;;  %v1173_v10 = vld [vmem:[%s7280_s3 + $0x150] sm:$0xff]  ;;  %v1162_v2 = vld [vmem:[%s7280_s3 + $0xf8] sm:$0xff] }
 0x132   :  { %1032 = vmatprep.mubr.f32.mxu1 %v5286_v25  ;;  %4114 = vmatprep.mubr.msk.f32.mxu0 %vm640_vm2, %v5517_v4  ;;  %v1171_v25 = vld [vmem:[%s7280_s3 + $0x140] sm:$0xff] }
 0x133   :  { %1329 = vmatprep.subr.mxu1 %v1177_v52  ;;  %v1159_v4 = vld [vmem:[%s7280_s3 + $0xe0] sm:$0xff] }
 0x134   :  { %1330 = vmatpush1.msra.mxu1 %v1176_v53  ;;  %v1183_v52 = vld [vmem:[%s7280_s3 + $0x1a0] sm:$0xff]  ;;  %v1182_v53 = vld [vmem:[%s7280_s3 + $0x198] sm:$0xff] }
 0x135   :  { %1033 = vmatmul.mubr.f32.gmra.mxu1 %v5284_v24  ;;  %1108 = vmatmul.mubr.f32.gmra.mxu0 %v5526_v7  ;;  %v1167_v24 = vld [vmem:[%s7280_s3 + $0x120] sm:$0xff] }
 0x136   :  { %1331 = vmatprep.subr.mxu1 %v1174_v54  ;;  %1464 = vmatprep.mubr.f32.mxu0 %v4561_v33  ;;  %v1155_v7 = vld [vmem:[%s7280_s3 + $0xc0] sm:$0xff]  ;;  %v1180_v54 = vld [vmem:[%s7280_s3 + $0x188] sm:$0xff] }
 0x137   :  { %1332 = vmatpush1.msra.mxu1 %v1173_v10  ;;  %v1179_v10 = vld [vmem:[%s7280_s3 + $0x180] sm:$0xff] }
 0x138   :  { %1333 = vmatprep.subr.mxu1 %v1171_v25  ;;  %v1249_v25 = vld [vmem:[%s7280_s3 + $0x3b0] sm:$0xf] }
 0x139   :  { %1334 = vmatpush1.msra.mxu1 %v1170_v55  ;;  %4115 = vmatprep.subr.msk.mxu0 %vm647_vm1, %v1249_v25  ;;  %v1248_v55 = vld [vmem:[%s7280_s3 + $0x3a8] sm:$0xf] }
 0x13a   :  { %1335 = vmatprep.subr.mxu1 %v1168_v61  ;;  %4116 = vmatpush1.msk.msra.mxu0 %vm647_vm1, %v1248_v55  ;;  %v1246_v61 = vld [vmem:[%s7280_s3 + $0x398] sm:$0xff] }
 0x13b   :  { %1336 = vmatpush1.msra.mxu1 %v1167_v24  ;;  %1418 = vmatprep.subr.mxu0 %v1246_v61  ;;  %v1245_v24 = vld [vmem:[%s7280_s3 + $0x390] sm:$0xff] }
 0x13c   :  { %1337 = vmatprep.subr.mxu1 %v1165_v62  ;;  %v1243_v62 = vld [vmem:[%s7280_s3 + $0x380] sm:$0xff]  ;;  %1419 = vmatpush1.msra.mxu0 %v1245_v24 }
 0x13d   :  { %1338 = vmatpush1.msra.mxu1 %v1164_v1  ;;  %v1242_v1 = vld [vmem:[%s7280_s3 + $0x378] sm:$0xff]  ;;  %1420 = vmatprep.subr.mxu0 %v1243_v62 }
 0x13e   :  { %1339 = vmatprep.subr.mxu1 %v1162_v2  ;;  %v1240_v2 = vld [vmem:[%s7280_s3 + $0x368] sm:$0xff]  ;;  %1421 = vmatpush1.msra.mxu0 %v1242_v1 }
 0x13f   :  { %1340 = vmatpush1.msra.mxu1 %v1161_v3  ;;  %v1239_v3 = vld [vmem:[%s7280_s3 + $0x360] sm:$0xff]  ;;  %1422 = vmatprep.subr.mxu0 %v1240_v2 }
 0x140   :  { %1341 = vmatprep.subr.mxu1 %v1159_v4  ;;  %v1237_v4 = vld [vmem:[%s7280_s3 + $0x350] sm:$0xff]  ;;  %1423 = vmatpush1.msra.mxu0 %v1239_v3 }
 0x141   :  { %1342 = vmatpush1.msra.mxu1 %v1158_v5  ;;  %v1236_v5 = vld [vmem:[%s7280_s3 + $0x348] sm:$0xff]  ;;  %1424 = vmatprep.subr.mxu0 %v1237_v4 }
 0x142   :  { %1343 = vmatprep.subr.mxu1 %v1156_v6  ;;  %v1234_v6 = vld [vmem:[%s7280_s3 + $0x338] sm:$0xff]  ;;  %1425 = vmatpush1.msra.mxu0 %v1236_v5 }
 0x143   :  { %1344 = vmatpush1.msra.mxu1 %v1155_v7  ;;  %v1233_v7 = vld [vmem:[%s7280_s3 + $0x330] sm:$0xff]  ;;  %1426 = vmatprep.subr.mxu0 %v1234_v6 }
 0x144   :  { %1345 = vmatprep.subr.mxu1 %v1153_v8  ;;  %v1231_v8 = vld [vmem:[%s7280_s3 + $0x320] sm:$0xff]  ;;  %1427 = vmatpush1.msra.mxu0 %v1233_v7 }
 0x145   :  { %1346 = vmatpush1.msra.mxu1 %v1152_v9  ;;  %v1230_v9 = vld [vmem:[%s7280_s3 + $0x318] sm:$0xff]  ;;  %1428 = vmatprep.subr.mxu0 %v1231_v8 }
 0x146   :  { %1347 = vmatprep.subr.mxu1 %v1150_v11  ;;  %v1228_v11 = vld [vmem:[%s7280_s3 + $0x308] sm:$0xff]  ;;  %1429 = vmatpush1.msra.mxu0 %v1230_v9 }
 0x147   :  { %1348 = vmatpush1.msra.mxu1 %v1149_v12  ;;  %v1227_v12 = vld [vmem:[%s7280_s3 + $0x300] sm:$0xff]  ;;  %1430 = vmatprep.subr.mxu0 %v1228_v11 }
 0x148   :  { %1349 = vmatprep.subr.mxu1 %v1147_v14  ;;  %v1226_v14 = vld [vmem:[%s7280_s3 + $0x2f8] sm:$0xff]  ;;  %1431 = vmatpush1.msra.mxu0 %v1227_v12 }
 0x149   :  { %1350 = vmatpush1.msra.mxu1 %v1146_v16  ;;  %4242 = vmatprep.subr.mxu0 %v1226_v14 }
 0x14a   :  { %1351 = vmatprep.subr.mxu1 %v1144_v17 }
 0x14b   :  { %1352 = vmatpush1.msra.mxu1 %v1143_v18 }
 0x14c   :  { %1353 = vmatprep.subr.mxu1 %v1141_v19 }
 0x14d   :  { %1354 = vmatpush1.msra.mxu1 %v1140_v0 }
 0x14e   :  { %1355 = vmatprep.subr.mxu1 %v1138_v20 }
 0x14f   :  { %1356 = vmatpush1.msra.mxu1 %v1137_v13 }
 0x150   :  { %1357 = vmatprep.subr.mxu1 %v1135_v21 }
 0x151   :  { %1358 = vmatpush1.msra.mxu1 %v1134_v63 }
 0x152   :  { %1359 = vmatprep.subr.mxu1 %v1132_v22 }
 0x153   :  { %1360 = vmatpush1.msra.mxu1 %v1131_v23 }
 0x154   :  { %1361 = vmatprep.subr.mxu1 %v1225_v26 }
 0x155   :  { %1362 = vmatpush2.msra.mxu1 %v1224_v27 }
 0x156   :  { %1363 = vmatprep.subr.mxu1 %v1222_v28 }
 0x157   :  { %1364 = vmatpush2.msra.mxu1 %v1221_v29 }
 0x158   :  { %1365 = vmatprep.subr.mxu1 %v1219_v30 }
 0x159   :  { %1366 = vmatpush2.msra.mxu1 %v1218_v31 }
 0x15a   :  { %1367 = vmatprep.subr.mxu1 %v1216_v32 }
 0x15b   :  { %1368 = vmatpush2.msra.mxu1 %v1215_v34 }
 0x15c   :  { %1369 = vmatprep.subr.mxu1 %v1213_v35 }
 0x15d   :  { %1370 = vmatpush2.msra.mxu1 %v1212_v36 }
 0x15e   :  { %1371 = vmatprep.subr.mxu1 %v1210_v37 }
 0x15f   :  { %1372 = vmatpush2.msra.mxu1 %v1209_v38 }
 0x160   :  { %1373 = vmatprep.subr.mxu1 %v1207_v39 }
 0x161   :  { %1374 = vmatpush2.msra.mxu1 %v1206_v40 }
 0x162   :  { %1375 = vmatprep.subr.mxu1 %v1204_v41 }
 0x163   :  { %1376 = vmatpush2.msra.mxu1 %v1203_v42 }
 0x164   :  { %1377 = vmatprep.subr.mxu1 %v1201_v56 }
 0x165   :  { %1378 = vmatpush2.msra.mxu1 %v1200_v43 }
 0x166   :  { %1379 = vmatprep.subr.mxu1 %v1198_v44 }
 0x167   :  { %1380 = vmatpush2.msra.mxu1 %v1197_v45 }
 0x168   :  { %1381 = vmatprep.subr.mxu1 %v1195_v46 }
 0x169   :  { %1382 = vmatpush2.msra.mxu1 %v1194_v47 }
 0x16a   :  { %1383 = vmatprep.subr.mxu1 %v1192_v48 }
 0x16b   :  { %1384 = vmatpush2.msra.mxu1 %v1191_v49 }
 0x16c   :  { %1385 = vmatprep.subr.mxu1 %v1189_v59 }
 0x16d   :  { %1386 = vmatpush2.msra.mxu1 %v1188_v15 }
 0x16e   :  { %1387 = vmatprep.subr.mxu1 %v1186_v50 }
 0x16f   :  { %1388 = vmatpush2.msra.mxu1 %v1185_v51 }
 0x170   :  { %1389 = vmatprep.subr.mxu1 %v1183_v52 }
 0x171   :  { %1390 = vmatpush2.msra.mxu1 %v1182_v53 }
 0x172   :  { %1391 = vmatprep.subr.mxu1 %v1180_v54 }
 0x173   :  { %1392 = vmatpush2.msra.mxu1 %v1179_v10 }
 0x1a2   :  { %v723_v16 = vpop.f32.mrf.mxu1  ;;  %v800_v18 = vpop.f32.mrf.mxu0 }
 0x1a3   :  { %v801_v13 = vadd.f32 %v800_v18, %v723_v16 }
 0x1a4   :  { %v725_v17 = vpop.f32.mrf.mxu1  ;;  %v802_v0 = vpop.f32.mrf.mxu0 }
 0x1a5   :  { %v803_v63 = vadd.f32 %v802_v0, %v725_v17 }
 0x1a7   :  { %v806_v22 = vpop.f32.mrf.mxu0 }
 0x1a9   :  { %v808_v30 = vpop.f32.mrf.mxu0 }
 0x1c2   :  { %v729_v19 = vpop.f32.mrf.mxu1 }
 0x1c3   :  { %v807_v29 = vadd.f32 %v806_v22, %v729_v19 }
 0x1c4   :  { %v731_v20 = vpop.f32.mrf.mxu1 }
 0x1c5   :  { %v809_v34 = vadd.f32 %v808_v30, %v731_v20  ;;  %v4198_v42 = vpop.f32.mrf.mxu0 }
 0x1c7   :  { %v4199_v45 = vpop.f32.mrf.mxu0 }
 0x1c8   :  { %v4200_v19 = vadd.f32 %v4199_v45, %v4198_v42 }
 0x1ca   :  { %v4201_v51 = vpop.f32.mrf.mxu0 }
 0x1cc   :  { %v4202_v62 = vpop.f32.mrf.mxu0 }
 0x1cf   :  { %v877_v21 = vpop.f32.mrf.mxu1 }
 0x1d0   :  { %v878_v23 = vadd.f32 %v877_v21, %v801_v13 }
 0x1d1   :  { %v879_v26 = vpop.f32.mrf.mxu1 }
 0x1d2   :  { %v1113_v27 = vmax.f32 %v878_v23, 1e-30  ;;  %v880_v28 = vadd.f32 %v879_v26, %v803_v63 }
 0x1d4   :  { %v1114_v31 = vmax.f32 %v880_v28, 1e-30  ;;  %v883_v32 = vpop.f32.mrf.mxu1  ;;  %4499 = vlog2.f32 %v1113_v27 }
 0x1d5   :  { %v884_v35 = vadd.f32 %v883_v32, %v807_v29  ;;  %v4203_v32 = vadd.f32 %v4202_v62, %v4201_v51 }
 0x1d6   :  { %4501 = vlog2.f32 %v1114_v31  ;;  %v885_v36 = vpop.f32.mrf.mxu1 }
 0x1d7   :  { %v1116_v37 = vmax.f32 %v884_v35, 1e-30  ;;  %v886_v38 = vadd.f32 %v885_v36, %v809_v34 }
 0x1d9   :  { %4503 = vlog2.f32 %v1116_v37  ;;  %v1117_v39 = vmax.f32 %v886_v38, 1e-30 }
 0x1db   :  { %4505 = vlog2.f32 %v1117_v39 }
 0x1e1   :  { %v4500_v40 = vpop.eup %4499 }
 0x1e2   :  { %v5934_v56 = vmul.f32 0.6931472, %v4500_v40 }
 0x1e3   :  { %v4502_v41 = vpop.eup %4501 }
 0x1e4   :  { %v5936_v44 = vmul.f32 0.6931472, %v4502_v41  ;;  %v1281_v48 = vmul.f32 %v5934_v56, %v5934_v56 }
 0x1e6   :  { %v4504_v43 = vpop.eup %4503  ;;  %v1282_v50 = vmul.f32 %v5936_v44, %v5936_v44 }
 0x1e7   :  { %v5938_v46 = vmul.f32 0.6931472, %v4504_v43 }
 0x1e8   :  { %v4506_v47 = vpop.eup %4505 }
 0x1e9   :  { %v1253_v49 = vadd.f32 %v5938_v46, %v5934_v56  ;;  %v1284_v59 = vmul.f32 %v5938_v46, %v5938_v46  ;;  %v5946_v15 = vmul.f32 0.6931472, %v4506_v47 }
 0x1eb   :  { %v1254_v52 = vrot.slane %v1253_v49, 4  ;;  %v1287_v53 = vadd.f32 %v1284_v59, %v1281_v48  ;;  %v1260_v54 = vadd.f32 %v5946_v15, %v5936_v44  ;;  %v1285_v10 = vmul.f32 %v5946_v15, %v5946_v15 }
 0x1ed   :  { %v1255_v25 = vadd.f32 %v1254_v52, %v1253_v49  ;;  %v1288_v55 = vrot.slane %v1287_v53, 4  ;;  %v1261_v61 = vrot.slane %v1260_v54, 4  ;;  %v1294_v24 = vadd.f32 %v1285_v10, %v1282_v50 }
 0x1ef   :  { %v1256_v1 = vrot.slane %v1255_v25, 2  ;;  %v1289_v2 = vadd.f32 %v1288_v55, %v1287_v53  ;;  %v1262_v3 = vadd.f32 %v1261_v61, %v1260_v54  ;;  %v1295_v4 = vrot.slane %v1294_v24, 4 }
 0x1f1   :  { %v4236_v5 = vpop.f32.mrf.mxu1  ;;  %v1104_v6 = vpop.f32.mrf.mxu0  ;;  %v1263_v7 = vrot.slane %v1262_v3, 2  ;;  %v1296_v8 = vadd.f32 %v1295_v4, %v1294_v24  ;;  %v1257_v9 = vadd.f32 %v1256_v1, %v1255_v25  ;;  %v1290_v11 = vrot.slane %v1289_v2, 2 }
 0x1f3   :  { %v4237_v12 = vpop.f32.mrf.mxu1  ;;  %v1106_v14 = vpop.f32.mrf.mxu0  ;;  %v1264_v16 = vadd.f32 %v1263_v7, %v1262_v3  ;;  %v1297_v17 = vrot.slane %v1296_v8, 2  ;;  %v1291_v18 = vadd.f32 %v1290_v11, %v1289_v2  ;;  %v1258_v20 = vrot.slane %v1257_v9, 1 }
 0x1f4   :  { %v4238_v0 = vadd.f32 %v4237_v12, %v4236_v5 }
 0x1f5   :  { %v4239_v13 = vpop.f32.mrf.mxu1  ;;  %v1109_v21 = vpop.f32.mrf.mxu0  ;;  %v1265_v63 = vrot.slane %v1264_v16, 1  ;;  %v1298_v22 = vadd.f32 %v1297_v17, %v1296_v8  ;;  %v1292_v23 = vrot.slane %v1291_v18, 1  ;;  %v1259_v36 = vadd.f32 %v1258_v20, %v1257_v9  ;;  %v1175_v20 = vld [vmem:[%s7280_s3 + $0x160] sm:$0xff] }
 0x1f6   :  { %v1030_v26 = vadd.f32 %v4238_v0, %v4200_v19  ;;  %v1223_v0 = vld [vmem:[%s7280_s3 + $0x2e0] sm:$0xff] }
 0x1f7   :  { %v4240_v27 = vpop.f32.mrf.mxu1  ;;  %v1111_v28 = vpop.f32.mrf.mxu0  ;;  %v1266_v29 = vadd.f32 %v1265_v63, %v1264_v16  ;;  %v1299_v30 = vrot.slane %v1298_v22, 1  ;;  %v1293_v31 = vadd.f32 %v1292_v23, %v1291_v18  ;;  %v1278_v45 = vmul.f32 0.0625, %v1259_v36  ;;  %v1178_v18 = vld [vmem:[%s7280_s3 + $0x178] sm:$0xff]  ;;  %v1217_v63 = vld [vmem:[%s7280_s3 + $0x2b0] sm:$0xff]  ;;  %v1199_v36 = vld [vmem:[%s7280_s3 + $0x220] sm:$0xff] }
 0x1f8   :  { %v1105_v34 = vadd.f32 %v1104_v6, %v1030_v26  ;;  %v4241_v35 = vadd.f32 %v4240_v27, %v4239_v13  ;;  %v1220_v13 = vld [vmem:[%s7280_s3 + $0x2c8] sm:$0xff]  ;;  %v1214_v23 = vld [vmem:[%s7280_s3 + $0x298] sm:$0xff]  ;;  %v1211_v27 = vld [vmem:[%s7280_s3 + $0x280] sm:$0xff] }
 0x1f9   :  { %v1300_v37 = vadd.f32 %v1299_v30, %v1298_v22  ;;  %v1310_v40 = vmul.f32 0.0625, %v1293_v31  ;;  %v1279_v41 = vmul.f32 0.0625, %v1266_v29  ;;  %v1169_v22 = vld [vmem:[%s7280_s3 + $0x130] sm:$0xff]  ;;  %v1166_v26 = vld [vmem:[%s7280_s3 + $0x118] sm:$0xff]  ;;  %v1163_v28 = vld [vmem:[%s7280_s3 + $0x100] sm:$0xff] }
 0x1fa   :  { %v1115_v38 = vmax.f32 %v1105_v34, 1e-30  ;;  %v1035_v39 = vadd.f32 %v4241_v35, %v4203_v32  ;;  %v1208_v29 = vld [vmem:[%s7280_s3 + $0x268] sm:$0xff]  ;;  %v1205_v31 = vld [vmem:[%s7280_s3 + $0x250] sm:$0xff]  ;;  %v1202_v34 = vld [vmem:[%s7280_s3 + $0x238] sm:$0xff] }
 0x1fb   :  { %v1311_v42 = vmul.f32 0.0625, %v1300_v37  ;;  %v5956_v49 = vsel %vm1313_vm3, %v1278_v45, %v1310_v40  ;;  %v1160_v30 = vld [vmem:[%s7280_s3 + $0xe8] sm:$0xff]  ;;  %v1157_v32 = vld [vmem:[%s7280_s3 + $0xd0] sm:$0xff]  ;;  %v1154_v35 = vld [vmem:[%s7280_s3 + $0xb8] sm:$0xff] }
 0x1fc   :  { %4507 = vlog2.f32 %v1115_v38  ;;  %v1110_v43 = vadd.f32 %v1109_v21, %v1035_v39  ;;  %v1172_v21 = vld [vmem:[%s7280_s3 + $0x148] sm:$0xff]  ;;  %v1151_v37 = vld [vmem:[%s7280_s3 + $0xa0] sm:$0xff]  ;;  %v1193_v40 = vld [vmem:[%s7280_s3 + $0x1f0] sm:$0xff] }
 0x1fd   :  { %v1315_v47 = vsel %vm1313_vm3, %v1279_v41, %v1311_v42  ;;  %v1196_v38 = vld [vmem:[%s7280_s3 + $0x208] sm:$0xff]  ;;  %v1145_v41 = vld [vmem:[%s7280_s3 + $0x70] sm:$0xff]  ;;  %v1190_v42 = vld [vmem:[%s7280_s3 + $0x1d8] sm:$0xff] }
 0x1fe   :  { %v1118_v48 = vmax.f32 %v1110_v43, 1e-30  ;;  %1393 = vmatprep.mubr.f32.mxu1 %v1315_v47  ;;  %v1148_v39 = vld [vmem:[%s7280_s3 + $0x88] sm:$0xff]  ;;  %v1142_v43 = vld [vmem:[%s7280_s3 + $0x58] sm:$0xff]  ;;  %v1187_v45 = vld [vmem:[%s7280_s3 + $0x1c0] sm:$0xff] }
 0x1ff   :  { %1394 = vmatmul.mubr.f32.vlgmr.msra.gmra.mxu1 %v5956_v49 }
 0x200   :  { %4509 = vlog2.f32 %v1118_v48  ;;  %v1184_v48 = vld [vmem:[%s7280_s3 + $0x1a8] sm:$0xff] }
 0x209   :  { %v4508_v59 = vpop.eup %4507 }
 0x20a   :  { %v5959_v50 = vmul.f32 0.6931472, %v4508_v59  ;;  %v1136_v59 = vld [vmem:[%s7280_s3 + $0x28] sm:$0xff] }
 0x20c   :  { %v1283_v52 = vmul.f32 %v5959_v50, %v5959_v50  ;;  %v1268_v54 = vsel %vm1267_vm4, %v5959_v50, 0.0 }
 0x20d   :  { %v4510_v51 = vpop.eup %4509 }
 0x20e   :  { %v5963_v53 = vmul.f32 0.6931472, %v4510_v51  ;;  %v1301_v61 = vsel %vm1267_vm4, %v1283_v52, 0.0  ;;  %v1181_v51 = vld [vmem:[%s7280_s3 + $0x190] sm:$0xff] }
 0x20f   :  { %v1133_v52 = vld [vmem:[%s7280_s3 + $0x10] sm:$0xff] }
 0x210   :  { %v1269_v10 = vsel %vm1267_vm4, %v5963_v53, 0.0  ;;  %v1286_v25 = vmul.f32 %v5963_v53, %v5963_v53 }
 0x211   :  { %v1270_v55 = vadd.f32 %v1269_v10, %v1268_v54  ;;  %v1755_v54 = vld [vmem:[%s7281_s4 + $0x170] sm:$0xff]  ;;  %v1754_v10 = vld [vmem:[%s7281_s4 + $0x168] sm:$0xff] }
 0x212   :  { %v1302_v24 = vsel %vm1267_vm4, %v1286_v25, 0.0  ;;  %v1250_v25 = vld [vmem:[%s7280_s3 + $0x3b8] sm:$0xf]  ;;  %1861 = vmatprep.subr.mxu1 %v1755_v54  ;;  %v1782_v54 = vld [vmem:[%s7281_s4 + $0x248] sm:$0xff] }
 0x213   :  { %v1271_v62 = vrot.slane %v1270_v55, 4  ;;  %v1303_v1 = vadd.f32 %v1302_v24, %v1301_v61  ;;  %1862 = vmatpush1.msra.mxu1 %v1754_v10  ;;  %v1247_v61 = vld [vmem:[%s7280_s3 + $0x3a0] sm:$0xff]  ;;  %v1751_v24 = vld [vmem:[%s7281_s4 + $0x150] sm:$0xff] }
 0x214   :  { %v1781_v10 = vld [vmem:[%s7281_s4 + $0x240] sm:$0xff] }
 0x215   :  { %v1272_v2 = vadd.f32 %v1271_v62, %v1270_v55  ;;  %v1304_v3 = vrot.slane %v1303_v1, 4  ;;  %v1752_v55 = vld [vmem:[%s7281_s4 + $0x158] sm:$0xff]  ;;  %v1244_v62 = vld [vmem:[%s7280_s3 + $0x388] sm:$0xff] }
 0x216   :  { %1863 = vmatprep.subr.mxu1 %v1752_v55  ;;  %v1778_v55 = vld [vmem:[%s7281_s4 + $0x228] sm:$0xff] }
 0x217   :  { %v1273_v4 = vrot.slane %v1272_v2, 2  ;;  %v1305_v5 = vadd.f32 %v1304_v3, %v1303_v1  ;;  %v1748_v1 = vld [vmem:[%s7281_s4 + $0x138] sm:$0xff]  ;;  %1864 = vmatpush1.msra.mxu1 %v1751_v24  ;;  %v1241_v3 = vld [vmem:[%s7280_s3 + $0x370] sm:$0xff] }
 0x218   :  { %v1775_v24 = vld [vmem:[%s7281_s4 + $0x210] sm:$0xff] }
 0x219   :  { %v1274_v6 = vadd.f32 %v1273_v4, %v1272_v2  ;;  %v1306_v7 = vrot.slane %v1305_v5, 2  ;;  %v1746_v2 = vld [vmem:[%s7281_s4 + $0x128] sm:$0xff]  ;;  %v1745_v4 = vld [vmem:[%s7281_s4 + $0x120] sm:$0xff] }
 0x21b   :  { %v1275_v8 = vrot.slane %v1274_v6, 1  ;;  %v1307_v9 = vadd.f32 %v1306_v7, %v1305_v5  ;;  %v1743_v5 = vld [vmem:[%s7281_s4 + $0x110] sm:$0xff]  ;;  %v1742_v7 = vld [vmem:[%s7281_s4 + $0x108] sm:$0xff] }
 0x21d   :  { %v1276_v11 = vadd.f32 %v1275_v8, %v1274_v6  ;;  %v1308_v12 = vrot.slane %v1307_v9, 1  ;;  %v1238_v6 = vld [vmem:[%s7280_s3 + $0x358] sm:$0xff] }
 0x21e   :  { %v1740_v8 = vld [vmem:[%s7281_s4 + $0xf8] sm:$0xff] }
 0x21f   :  { %v1309_v14 = vadd.f32 %v1308_v12, %v1307_v9  ;;  %v1280_v16 = vmul.f32 0.0625, %v1276_v11  ;;  %v1235_v9 = vld [vmem:[%s7280_s3 + $0x340] sm:$0xff]  ;;  %v1739_v11 = vld [vmem:[%s7281_s4 + $0xf0] sm:$0xff] }
 0x220   :  { %v1737_v12 = vld [vmem:[%s7281_s4 + $0xe0] sm:$0xff] }
 0x221   :  { %v1312_v17 = vmul.f32 0.0625, %v1309_v14  ;;  %v1232_v14 = vld [vmem:[%s7280_s3 + $0x328] sm:$0xff] }
 0x223   :  { %v5977_v19 = vsel %vm1313_vm3, %v1280_v16, %v1312_v17  ;;  %v1736_v16 = vld [vmem:[%s7281_s4 + $0xd8] sm:$0xff]  ;;  %v1734_v17 = vld [vmem:[%s7281_s4 + $0xc8] sm:$0xff] }
 0x224   :  { %4117 = vmatmul.mubr.msk.f32.vlgmr.msra.gmra.mxu0 %vm1267_vm4, %v5977_v19 }
 0x225   :  { %4243 = vmatpush3.msra.mxu0 %v1178_v18  ;;  %1535 = vmatprep.mubr.f32.mxu0 %v1315_v47  ;;  %v1139_v47 = vld [vmem:[%s7280_s3 + $0x40] sm:$0xff]  ;;  %v1229_v18 = vld [vmem:[%s7280_s3 + $0x310] sm:$0xff] }
 0x226   :  { %4244 = vmatprep.subr.mxu0 %v1223_v0  ;;  %v1733_v0 = vld [vmem:[%s7281_s4 + $0xc0] sm:$0xff] }
 0x227   :  { %4245 = vmatpush3.msra.mxu0 %v1175_v20  ;;  %v1731_v20 = vld [vmem:[%s7281_s4 + $0xb0] sm:$0xff] }
 0x228   :  { %4246 = vmatprep.subr.mxu0 %v1220_v13  ;;  %v1730_v13 = vld [vmem:[%s7281_s4 + $0xa8] sm:$0xff] }
 0x229   :  { %4247 = vmatpush3.msra.mxu0 %v1172_v21  ;;  %v1728_v21 = vld [vmem:[%s7281_s4 + $0x98] sm:$0xff] }
 0x22a   :  { %4248 = vmatprep.subr.mxu0 %v1217_v63  ;;  %v1727_v63 = vld [vmem:[%s7281_s4 + $0x90] sm:$0xff] }
 0x22b   :  { %4249 = vmatpush3.msra.mxu0 %v1169_v22  ;;  %v1725_v22 = vld [vmem:[%s7281_s4 + $0x80] sm:$0xff] }
 0x22c   :  { %4250 = vmatprep.subr.mxu0 %v1214_v23  ;;  %v1724_v23 = vld [vmem:[%s7281_s4 + $0x78] sm:$0xff] }
 0x22d   :  { %4251 = vmatpush3.msra.mxu0 %v1166_v26  ;;  %v1721_v26 = vld [vmem:[%s7281_s4 + $0x60] sm:$0xff] }
 0x22e   :  { %4252 = vmatprep.subr.mxu0 %v1211_v27  ;;  %v1719_v27 = vld [vmem:[%s7281_s4 + $0x50] sm:$0xff] }
 0x22f   :  { %4253 = vmatpush3.msra.mxu0 %v1163_v28  ;;  %v1718_v28 = vld [vmem:[%s7281_s4 + $0x48] sm:$0xff] }
 0x230   :  { %4254 = vmatprep.subr.mxu0 %v1208_v29  ;;  %v1716_v29 = vld [vmem:[%s7281_s4 + $0x38] sm:$0xff] }
 0x231   :  { %4255 = vmatpush3.msra.mxu0 %v1160_v30  ;;  %v1715_v30 = vld [vmem:[%s7281_s4 + $0x30] sm:$0xff] }
 0x232   :  { %4256 = vmatprep.subr.mxu0 %v1205_v31  ;;  %v1713_v31 = vld [vmem:[%s7281_s4 + $0x20] sm:$0xff] }
 0x233   :  { %4257 = vmatpush3.msra.mxu0 %v1157_v32  ;;  %v1712_v32 = vld [vmem:[%s7281_s4 + $0x18] sm:$0xff] }
 0x234   :  { %4258 = vmatprep.subr.mxu0 %v1202_v34  ;;  %v1710_v34 = vld [vmem:[%s7281_s4 + $0x8] sm:$0xff] }
 0x235   :  { %4259 = vmatpush3.msra.mxu0 %v1154_v35  ;;  %v1709_v35 = vld [vmem:[%s7281_s4] sm:$0xff] }
 0x236   :  { %4260 = vmatprep.subr.mxu0 %v1199_v36  ;;  %v1803_v36 = vld [vmem:[%s7281_s4 + $0x2f0] sm:$0xff] }
 0x237   :  { %4261 = vmatpush3.msra.mxu0 %v1151_v37  ;;  %v1802_v37 = vld [vmem:[%s7281_s4 + $0x2e8] sm:$0xff] }
 0x238   :  { %4262 = vmatprep.subr.mxu0 %v1196_v38  ;;  %v1800_v38 = vld [vmem:[%s7281_s4 + $0x2d8] sm:$0xff] }
 0x239   :  { %4263 = vmatpush3.msra.mxu0 %v1148_v39  ;;  %v1799_v39 = vld [vmem:[%s7281_s4 + $0x2d0] sm:$0xff] }
 0x23a   :  { %4264 = vmatprep.subr.mxu0 %v1193_v40  ;;  %v1797_v40 = vld [vmem:[%s7281_s4 + $0x2c0] sm:$0xff] }
 0x23b   :  { %4265 = vmatpush3.msra.mxu0 %v1145_v41  ;;  %v1796_v41 = vld [vmem:[%s7281_s4 + $0x2b8] sm:$0xff] }
 0x23c   :  { %4266 = vmatprep.subr.mxu0 %v1190_v42  ;;  %v1794_v42 = vld [vmem:[%s7281_s4 + $0x2a8] sm:$0xff] }
 0x23d   :  { %4267 = vmatpush3.msra.mxu0 %v1142_v43  ;;  %v1793_v43 = vld [vmem:[%s7281_s4 + $0x2a0] sm:$0xff] }
 0x23e   :  { %4268 = vmatprep.subr.mxu0 %v1187_v45  ;;  %v1791_v45 = vld [vmem:[%s7281_s4 + $0x290] sm:$0xff] }
 0x23f   :  { %4269 = vmatpush3.msra.mxu0 %v1139_v47  ;;  %v1790_v47 = vld [vmem:[%s7281_s4 + $0x288] sm:$0xff] }
 0x240   :  { %4270 = vmatprep.subr.mxu0 %v1184_v48  ;;  %v1788_v48 = vld [vmem:[%s7281_s4 + $0x278] sm:$0xff] }
 0x241   :  { %4271 = vmatpush3.msra.mxu0 %v1136_v59  ;;  %v1787_v59 = vld [vmem:[%s7281_s4 + $0x270] sm:$0xff] }
 0x242   :  { %4272 = vmatprep.subr.mxu0 %v1181_v51  ;;  %v1785_v51 = vld [vmem:[%s7281_s4 + $0x260] sm:$0xff] }
 0x243   :  { %4273 = vmatpush3.msra.mxu0 %v1133_v52  ;;  %v1784_v52 = vld [vmem:[%s7281_s4 + $0x258] sm:$0xff] }
 0x244   :  { %1536 = vmatmul.mubr.f32.vlgmr.msra.gmra.mxu0 %v5956_v49  ;;  %4366 = vmatprep.subr.mxu0 %v4561_v33  ;;  %v1749_v49 = vld [vmem:[%s7281_s4 + $0x140] sm:$0xff] }
 0x245   :  { %4367 = vmatpush3.msk.msra.mxu0 %vm647_vm1, %v1250_v25  ;;  %4382 = vmatprep.mubr.msk.f32.mxu0 %vm4562_vm5, %v4561_v33  ;;  %v1779_v25 = vld [vmem:[%s7281_s4 + $0x230] sm:$0xff] }
 0x246   :  { %4368 = vmatprep.subr.mxu0 %v4561_v33  ;;  %1865 = vmatprep.subr.mxu1 %v1749_v49  ;;  %v1773_v49 = vld [vmem:[%s7281_s4 + $0x200] sm:$0xff] }
 0x247   :  { %4369 = vmatpush3.msra.mxu0 %v1247_v61  ;;  %1866 = vmatpush1.msra.mxu1 %v1748_v1  ;;  %v1776_v61 = vld [vmem:[%s7281_s4 + $0x218] sm:$0xff]  ;;  %v1770_v1 = vld [vmem:[%s7281_s4 + $0x1e8] sm:$0xff] }
 0x248   :  { %4370 = vmatprep.subr.mxu0 %v4561_v33  ;;  %1867 = vmatprep.subr.mxu1 %v1746_v2  ;;  %v1769_v2 = vld [vmem:[%s7281_s4 + $0x1e0] sm:$0xff] }
 0x249   :  { %4371 = vmatpush3.msra.mxu0 %v1244_v62  ;;  %1868 = vmatpush1.msra.mxu1 %v1745_v4  ;;  %v1772_v62 = vld [vmem:[%s7281_s4 + $0x1f8] sm:$0xff]  ;;  %v1766_v4 = vld [vmem:[%s7281_s4 + $0x1c8] sm:$0xff] }
 0x24a   :  { %4372 = vmatprep.subr.mxu0 %v4561_v33  ;;  %1869 = vmatprep.subr.mxu1 %v1743_v5  ;;  %v1764_v5 = vld [vmem:[%s7281_s4 + $0x1b8] sm:$0xff] }
 0x24b   :  { %4373 = vmatpush3.msra.mxu0 %v1241_v3  ;;  %1870 = vmatpush1.msra.mxu1 %v1742_v7  ;;  %v1767_v3 = vld [vmem:[%s7281_s4 + $0x1d0] sm:$0xff]  ;;  %v1761_v7 = vld [vmem:[%s7281_s4 + $0x1a0] sm:$0xff] }
 0x24c   :  { %4374 = vmatprep.subr.mxu0 %v4561_v33  ;;  %1871 = vmatprep.subr.mxu1 %v1740_v8  ;;  %v1760_v8 = vld [vmem:[%s7281_s4 + $0x198] sm:$0xff] }
 0x24d   :  { %4375 = vmatpush3.msra.mxu0 %v1238_v6  ;;  %1872 = vmatpush1.msra.mxu1 %v1739_v11  ;;  %v1763_v6 = vld [vmem:[%s7281_s4 + $0x1b0] sm:$0xff]  ;;  %v1757_v11 = vld [vmem:[%s7281_s4 + $0x180] sm:$0xff] }
 0x24e   :  { %4376 = vmatprep.subr.mxu0 %v4561_v33  ;;  %1873 = vmatprep.subr.mxu1 %v1737_v12  ;;  %v1827_v12 = vld [vmem:[%s7281_s4 + $0x3b0] sm:$0xf] }
 0x24f   :  { %4377 = vmatpush3.msra.mxu0 %v1235_v9  ;;  %1874 = vmatpush1.msra.mxu1 %v1736_v16  ;;  %v1758_v9 = vld [vmem:[%s7281_s4 + $0x188] sm:$0xff]  ;;  %v1824_v16 = vld [vmem:[%s7281_s4 + $0x398] sm:$0xff] }
 0x250   :  { %4378 = vmatprep.subr.mxu0 %v4561_v33  ;;  %1875 = vmatprep.subr.mxu1 %v1734_v17  ;;  %v1823_v17 = vld [vmem:[%s7281_s4 + $0x390] sm:$0xff] }
 0x251   :  { %4379 = vmatpush3.msra.mxu0 %v1232_v14  ;;  %1876 = vmatpush1.msra.mxu1 %v1733_v0  ;;  %v1826_v14 = vld [vmem:[%s7281_s4 + $0x3a8] sm:$0xf]  ;;  %v1820_v0 = vld [vmem:[%s7281_s4 + $0x378] sm:$0xff] }
 0x252   :  { %4380 = vmatprep.subr.mxu0 %v4561_v33  ;;  %1877 = vmatprep.subr.mxu1 %v1731_v20  ;;  %v1818_v20 = vld [vmem:[%s7281_s4 + $0x368] sm:$0xff] }
 0x253   :  { %4381 = vmatpush3.msra.mxu0 %v1229_v18  ;;  %1878 = vmatpush1.msra.mxu1 %v1730_v13  ;;  %v1821_v18 = vld [vmem:[%s7281_s4 + $0x380] sm:$0xff] }
 0x254   :  { %4383 = vmatmul.mubr.msk.f32.vlgmr.msra.gmra.mxu0 %vm1267_vm4, %v5977_v19  ;;  %1879 = vmatprep.subr.mxu1 %v1728_v21  ;;  %v1722_v19 = vld [vmem:[%s7281_s4 + $0x68] sm:$0xff]  ;;  %v1817_v13 = vld [vmem:[%s7281_s4 + $0x360] sm:$0xff]  ;;  %v1815_v21 = vld [vmem:[%s7281_s4 + $0x350] sm:$0xff] }
 0x255   :  { %2002 = vmatprep.mubr.f32.mxu0 %v4561_v33  ;;  %1880 = vmatpush1.msra.mxu1 %v1727_v63  ;;  %v1814_v63 = vld [vmem:[%s7281_s4 + $0x348] sm:$0xff] }
 0x256   :  { %1881 = vmatprep.subr.mxu1 %v1725_v22  ;;  %4120 = vmatprep.subr.msk.mxu0 %vm647_vm1, %v1827_v12  ;;  %v1812_v22 = vld [vmem:[%s7281_s4 + $0x338] sm:$0xff] }
 0x257   :  { %1882 = vmatpush1.msra.mxu1 %v1724_v23  ;;  %4121 = vmatpush1.msk.msra.mxu0 %vm647_vm1, %v1826_v14  ;;  %v1811_v23 = vld [vmem:[%s7281_s4 + $0x330] sm:$0xff]  ;;  %v2212_v14 = vld [vmem:[%s7282_s5 + $0xe8] sm:$0xff] }
 0x258   :  { %1883 = vmatprep.subr.mxu1 %v1722_v19  ;;  %1956 = vmatprep.subr.mxu0 %v1824_v16  ;;  %v1809_v19 = vld [vmem:[%s7281_s4 + $0x320] sm:$0xff]  ;;  %v2210_v16 = vld [vmem:[%s7282_s5 + $0xd8] sm:$0xff] }
 0x259   :  { %1884 = vmatpush1.msra.mxu1 %v1721_v26  ;;  %1957 = vmatpush1.msra.mxu0 %v1823_v17  ;;  %v1808_v26 = vld [vmem:[%s7281_s4 + $0x318] sm:$0xff] }
 0x25a   :  { %1885 = vmatprep.subr.mxu1 %v1719_v27  ;;  %1958 = vmatprep.subr.mxu0 %v1821_v18  ;;  %v1806_v27 = vld [vmem:[%s7281_s4 + $0x308] sm:$0xff]  ;;  %v2209_v18 = vld [vmem:[%s7282_s5 + $0xd0] sm:$0xff] }
 0x25b   :  { %1886 = vmatpush1.msra.mxu1 %v1718_v28  ;;  %1959 = vmatpush1.msra.mxu0 %v1820_v0  ;;  %v1805_v28 = vld [vmem:[%s7281_s4 + $0x300] sm:$0xff]  ;;  %v2208_v0 = vld [vmem:[%s7282_s5 + $0xc8] sm:$0xff] }
 0x25c   :  { %1887 = vmatprep.subr.mxu1 %v1716_v29  ;;  %1960 = vmatprep.subr.mxu0 %v1818_v20  ;;  %v1804_v29 = vld [vmem:[%s7281_s4 + $0x2f8] sm:$0xff] }
 0x25d   :  { %1888 = vmatpush1.msra.mxu1 %v1715_v30  ;;  %1961 = vmatpush1.msra.mxu0 %v1817_v13  ;;  %v2207_v13 = vld [vmem:[%s7282_s5 + $0xc0] sm:$0xff] }
 0x25e   :  { %1889 = vmatprep.subr.mxu1 %v1713_v31  ;;  %1962 = vmatprep.subr.mxu0 %v1815_v21  ;;  %v2206_v21 = vld [vmem:[%s7282_s5 + $0xb8] sm:$0xff] }
 0x25f   :  { %1890 = vmatpush1.msra.mxu1 %v1712_v32  ;;  %1963 = vmatpush1.msra.mxu0 %v1814_v63  ;;  %v2205_v63 = vld [vmem:[%s7282_s5 + $0xb0] sm:$0xff] }
 0x260   :  { %1891 = vmatprep.subr.mxu1 %v1710_v34  ;;  %1964 = vmatprep.subr.mxu0 %v1812_v22  ;;  %v2214_v34 = vld [vmem:[%s7282_s5 + $0xf8] sm:$0xff]  ;;  %v2204_v22 = vld [vmem:[%s7282_s5 + $0xa8] sm:$0xff] }
 0x261   :  { %1892 = vmatpush1.msra.mxu1 %v1709_v35  ;;  %1965 = vmatpush1.msra.mxu0 %v1811_v23 }
 0x262   :  { %1893 = vmatprep.subr.mxu1 %v1803_v36  ;;  %1966 = vmatprep.subr.mxu0 %v1809_v19 }
 0x263   :  { %1894 = vmatpush2.msra.mxu1 %v1802_v37  ;;  %1967 = vmatpush1.msra.mxu0 %v1808_v26 }
 0x264   :  { %1895 = vmatprep.subr.mxu1 %v1800_v38  ;;  %1968 = vmatprep.subr.mxu0 %v1806_v27 }
 0x265   :  { %1896 = vmatpush2.msra.mxu1 %v1799_v39  ;;  %1969 = vmatpush1.msra.mxu0 %v1805_v28 }
 0x266   :  { %1897 = vmatprep.subr.mxu1 %v1797_v40  ;;  %4286 = vmatprep.subr.mxu0 %v1804_v29 }
 0x267   :  { %1898 = vmatpush2.msra.mxu1 %v1796_v41 }
 0x268   :  { %1899 = vmatprep.subr.mxu1 %v1794_v42 }
 0x269   :  { %1900 = vmatpush2.msra.mxu1 %v1793_v43 }
 0x26a   :  { %1901 = vmatprep.subr.mxu1 %v1791_v45 }
 0x26b   :  { %1902 = vmatpush2.msra.mxu1 %v1790_v47 }
 0x26c   :  { %1903 = vmatprep.subr.mxu1 %v1788_v48  ;;  %v6361_v48 = vld [vmem:[%s7284_s7 + $0x6] sm:$0x7] }
 0x26d   :  { %1904 = vmatpush2.msra.mxu1 %v1787_v59  ;;  %v1654_v59 = vrot.slane %v6361_v48, %v5233_v58 }
 0x26e   :  { %1905 = vmatprep.subr.mxu1 %v1785_v51  ;;  %v1658_v51 = vrot.slane %v6361_v48, %v5241_v60 }
 0x26f   :  { %1906 = vmatpush2.msra.mxu1 %v1784_v52 }
 0x270   :  { %1907 = vmatprep.subr.mxu1 %v1782_v54 }
 0x271   :  { %1908 = vmatpush2.msra.mxu1 %v1781_v10 }
 0x272   :  { %1909 = vmatprep.subr.mxu1 %v1779_v25 }
 0x273   :  { %1910 = vmatpush2.msra.mxu1 %v1778_v55 }
 0x274   :  { %1911 = vmatprep.subr.mxu1 %v1776_v61 }
 0x275   :  { %1912 = vmatpush2.msra.mxu1 %v1775_v24  ;;  %v1252_v24 = vld [vmem:[%s7284_s7 + $0x9] sm:$0x7] }
 0x276   :  { %1913 = vmatprep.subr.mxu1 %v1773_v49 }
 0x277   :  { %1914 = vmatpush2.msra.mxu1 %v1772_v62 }
 0x278   :  { %1915 = vmatprep.subr.mxu1 %v1770_v1 }
 0x279   :  { %1916 = vmatpush2.msra.mxu1 %v1769_v2 }
 0x27a   :  { %1917 = vmatprep.subr.mxu1 %v1767_v3 }
 0x27b   :  { %1918 = vmatpush2.msra.mxu1 %v1766_v4  ;;  %v1695_v4 = vrot.slane %v1252_v24, %v5241_v60 }
 0x27c   :  { %1919 = vmatprep.subr.mxu1 %v1764_v5 }
 0x27d   :  { %1920 = vmatpush2.msra.mxu1 %v1763_v6  ;;  %v1691_v6 = vrot.slane %v1252_v24, %v5233_v58 }
 0x27e   :  { %1921 = vmatprep.subr.mxu1 %v1761_v7 }
 0x27f   :  { %1922 = vmatpush2.msra.mxu1 %v1760_v8 }
 0x280   :  { %1923 = vmatprep.subr.mxu1 %v1758_v9 }
 0x281   :  { %1924 = vmatpush2.msra.mxu1 %v1757_v11 }
 0x282   :  { %2275 = vmatprep.subr.mxu1 %v2214_v34  ;;  %v1662_v34 = vrot.slane %v6361_v48, %v5230_v57  ;;  %v1801_v48 = vld [vmem:[%s7281_s4 + $0x2e0] sm:$0xff] }
 0x2bf   :  { %v1395_v30 = vpop.f32.mrf.mxu1 }
 0x2c1   :  { %v1397_v35 = vpop.f32.mrf.mxu1 }
 0x2e4   :  { %v1466_v31 = vpop.f32.mrf.mxu0 }
 0x2e5   :  { %v1467_v32 = vadd.f32 %v1466_v31, %v1395_v30 }
 0x2e6   :  { %v1468_v36 = vpop.f32.mrf.mxu0 }
 0x2e7   :  { %v1611_v37 = vmul.f32 %v1467_v32, %v1467_v32  ;;  %v1469_v38 = vadd.f32 %v1468_v36, %v1397_v35  ;;  %v1635_v54 = vrot.slane %v1467_v32, %v5233_v58 }
 0x2e9   :  { %v1617_v39 = vrot.slane %v1611_v37, 7  ;;  %v1612_v40 = vmul.f32 %v1469_v38, %v1469_v38  ;;  %v1639_v25 = vrot.slane %v1469_v38, %v5233_v58  ;;  %v1644_v62 = vsub.f32 %v5934_v56, %v1635_v54 }
 0x2ea   :  { %v1647_v9 = vsub.f32 %v5938_v46, %v1635_v54  ;;  %v2211_v46 = vld [vmem:[%s7282_s5 + $0xe0] sm:$0xff]  ;;  %v1747_v54 = vld [vmem:[%s7281_s4 + $0x130] sm:$0xff] }
 0x2eb   :  { %v1623_v41 = vsub.f32 %v1467_v32, %v1617_v39  ;;  %v1618_v42 = vrot.slane %v1612_v40, 7  ;;  %v1645_v1 = vsub.f32 %v5936_v44, %v1639_v25  ;;  %v1648_v2 = vsub.f32 %v5946_v15, %v1639_v25  ;;  %v2213_v44 = vld [vmem:[%s7282_s5 + $0xf0] sm:$0xff]  ;;  %v1744_v25 = vld [vmem:[%s7281_s4 + $0x118] sm:$0xff] }
 0x2ed   :  { %v1626_v43 = vadd.f32 1e-05, %v1623_v41  ;;  %v1624_v45 = vsub.f32 %v1469_v38, %v1618_v42  ;;  %v1699_v38 = vrot.slane %v1252_v24, %v5230_v57  ;;  %v1786_v24 = vld [vmem:[%s7281_s4 + $0x268] sm:$0xff] }
 0x2ef   :  { %4511 = vrsqrt.f32 %v1626_v43  ;;  %v1627_v47 = vadd.f32 1e-05, %v1624_v45 }
 0x2f1   :  { %4513 = vrsqrt.f32 %v1627_v47  ;;  %v1756_v47 = vld [vmem:[%s7281_s4 + $0x178] sm:$0xff] }
 0x2fc   :  { %v4512_v52 = vpop.eup %4511 }
 0x2fd   :  { %v1666_v10 = vmul.f32 %v4512_v52, %v1654_v59  ;;  %v1795_v52 = vld [vmem:[%s7281_s4 + $0x2b0] sm:$0xff] }
 0x2fe   :  { %v4514_v55 = vpop.eup %4513 }
 0x2ff   :  { %v1672_v61 = vrot.slane %v1666_v10, %v5241_v60  ;;  %v1667_v49 = vmul.f32 %v4514_v55, %v1658_v51  ;;  %v1750_v51 = vld [vmem:[%s7281_s4 + $0x148] sm:$0xff]  ;;  %v1792_v10 = vld [vmem:[%s7281_s4 + $0x298] sm:$0xff]  ;;  %v1789_v55 = vld [vmem:[%s7281_s4 + $0x280] sm:$0xff] }
 0x301   :  { %v1676_v3 = vrot.slane %v1667_v49, %v5241_v60  ;;  %v1681_v5 = vmul.f32 %v1672_v61, %v1644_v62  ;;  %v1684_v56 = vmul.f32 %v1672_v61, %v1647_v9  ;;  %v1741_v61 = vld [vmem:[%s7281_s4 + $0x100] sm:$0xff]  ;;  %v1738_v49 = vld [vmem:[%s7281_s4 + $0xe8] sm:$0xff]  ;;  %v1783_v62 = vld [vmem:[%s7281_s4 + $0x250] sm:$0xff] }
 0x302   :  { %v1723_v9 = vld [vmem:[%s7281_s4 + $0x70] sm:$0xff] }
 0x303   :  { %v1682_v7 = vmul.f32 %v1676_v3, %v1645_v1  ;;  %v1685_v8 = vmul.f32 %v1676_v3, %v1648_v2  ;;  %v6382_v12 = vadd.f32 %v1691_v6, %v1681_v5  ;;  %v6401_v17 = vadd.f32 %v1691_v6, %v1684_v56  ;;  %v1735_v1 = vld [vmem:[%s7281_s4 + $0xd0] sm:$0xff]  ;;  %v1780_v2 = vld [vmem:[%s7281_s4 + $0x238] sm:$0xff]  ;;  %v1729_v5 = vld [vmem:[%s7281_s4 + $0xa0] sm:$0xff] }
 0x304   :  { %v4274_v20 = vpop.f32.mrf.mxu0  ;;  %v1732_v3 = vld [vmem:[%s7281_s4 + $0xb8] sm:$0xff]  ;;  %v1774_v6 = vld [vmem:[%s7281_s4 + $0x208] sm:$0xff] }
 0x305   :  { %v6380_v11 = vadd.f32 %v1695_v4, %v1682_v7  ;;  %v6388_v15 = vadd.f32 %v1695_v4, %v1685_v8  ;;  %v1777_v4 = vld [vmem:[%s7281_s4 + $0x220] sm:$0xff]  ;;  %v1726_v7 = vld [vmem:[%s7281_s4 + $0x88] sm:$0xff]  ;;  %v1771_v8 = vld [vmem:[%s7281_s4 + $0x1f0] sm:$0xff] }
 0x306   :  { %v4275_v23 = vpop.f32.mrf.mxu0  ;;  %v2202_v56 = vld [vmem:[%s7282_s5 + $0x98] sm:$0xff] }
 0x307   :  { %1925 = vmatprep.mubr.f32.mxu1 %v6380_v11  ;;  %v4276_v19 = vadd.f32 %v4275_v23, %v4274_v20  ;;  %v2199_v20 = vld [vmem:[%s7282_s5 + $0x80] sm:$0xff]  ;;  %v2196_v23 = vld [vmem:[%s7282_s5 + $0x68] sm:$0xff] }
 0x308   :  { %1926 = vmatmul.mubr.f32.vlgmr.msra.gmra.mxu1 %v6382_v12 }
 0x309   :  { %1931 = vmatprep.mubr.f32.mxu1 %v6388_v15  ;;  %2276 = vmatpush1.msra.mxu1 %v2213_v44  ;;  %v1768_v44 = vld [vmem:[%s7281_s4 + $0x1d8] sm:$0xff] }
 0x30a   :  { %2277 = vmatprep.subr.mxu1 %v2212_v14  ;;  %v1720_v14 = vld [vmem:[%s7281_s4 + $0x58] sm:$0xff] }
 0x30b   :  { %2278 = vmatpush1.msra.mxu1 %v2211_v46  ;;  %v2201_v46 = vld [vmem:[%s7282_s5 + $0x90] sm:$0xff] }
 0x30c   :  { %1932 = vmatmul.mubr.f32.gmra.mxu1 %v6401_v17  ;;  %2279 = vmatprep.subr.mxu1 %v2210_v16  ;;  %v2200_v16 = vld [vmem:[%s7282_s5 + $0x88] sm:$0xff] }
 0x30d   :  { %2280 = vmatpush1.msra.mxu1 %v2209_v18  ;;  %v1765_v18 = vld [vmem:[%s7281_s4 + $0x1c0] sm:$0xff] }
 0x30e   :  { %2281 = vmatprep.subr.mxu1 %v2208_v0  ;;  %v1717_v0 = vld [vmem:[%s7281_s4 + $0x40] sm:$0xff] }
 0x30f   :  { %2282 = vmatpush1.msra.mxu1 %v2207_v13  ;;  %v2198_v13 = vld [vmem:[%s7282_s5 + $0x78] sm:$0xff] }
 0x310   :  { %2283 = vmatprep.subr.mxu1 %v2206_v21  ;;  %v1762_v21 = vld [vmem:[%s7281_s4 + $0x1a8] sm:$0xff] }
 0x311   :  { %2284 = vmatpush1.msra.mxu1 %v2205_v63  ;;  %v1714_v63 = vld [vmem:[%s7281_s4 + $0x28] sm:$0xff] }
 0x312   :  { %2285 = vmatprep.subr.mxu1 %v2204_v22  ;;  %v2197_v22 = vld [vmem:[%s7282_s5 + $0x70] sm:$0xff] }
 0x314   :  { %v1607_v26 = vpop.f32.mrf.mxu0 }
 0x315   :  { %v1608_v27 = vadd.f32 %v4276_v19, %v1607_v26  ;;  %v2195_v19 = vld [vmem:[%s7282_s5 + $0x60] sm:$0xff]  ;;  %v1759_v26 = vld [vmem:[%s7281_s4 + $0x190] sm:$0xff] }
 0x316   :  { %v4384_v28 = vpop.f32.mrf.mxu0 }
 0x317   :  { %v1613_v29 = vmul.f32 %v1608_v27, %v1608_v27  ;;  %v1643_v35 = vrot.slane %v1608_v27, %v5233_v58  ;;  %v1711_v28 = vld [vmem:[%s7281_s4 + $0x10] sm:$0xff] }
 0x319   :  { %v1619_v30 = vrot.slane %v1613_v29, 7  ;;  %v1646_v39 = vsub.f32 %v5959_v50, %v1643_v35  ;;  %v1649_v41 = vsub.f32 %v5963_v53, %v1643_v35  ;;  %v1753_v50 = vld [vmem:[%s7281_s4 + $0x160] sm:$0xff]  ;;  %v1798_v53 = vld [vmem:[%s7281_s4 + $0x2c8] sm:$0xff]  ;;  %v2193_v29 = vld [vmem:[%s7282_s5 + $0x50] sm:$0xff] }
 0x31a   :  { %v1822_v35 = vld [vmem:[%s7281_s4 + $0x388] sm:$0xff] }
 0x31b   :  { %v1625_v31 = vsub.f32 %v1608_v27, %v1619_v30  ;;  %v2194_v27 = vld [vmem:[%s7282_s5 + $0x58] sm:$0xff] }
 0x31c   :  { %v1828_v30 = vld [vmem:[%s7281_s4 + $0x3b8] sm:$0xf] }
 0x31d   :  { %v1628_v32 = vadd.f32 1e-05, %v1625_v31  ;;  %v1825_v31 = vld [vmem:[%s7281_s4 + $0x3a0] sm:$0xff] }
 0x31f   :  { %4515 = vrsqrt.f32 %v1628_v32  ;;  %v2192_v32 = vld [vmem:[%s7282_s5 + $0x48] sm:$0xff] }
 0x32c   :  { %v4516_v36 = vpop.eup %4515 }
 0x32d   :  { %v1668_v37 = vmul.f32 %v4516_v36, %v1662_v34  ;;  %v2191_v34 = vld [vmem:[%s7282_s5 + $0x40] sm:$0xff]  ;;  %v2190_v36 = vld [vmem:[%s7282_s5 + $0x38] sm:$0xff] }
 0x32f   :  { %v1680_v40 = vrot.slane %v1668_v37, %v5241_v60  ;;  %v1816_v37 = vld [vmem:[%s7281_s4 + $0x358] sm:$0xff] }
 0x331   :  { %v1683_v42 = vmul.f32 %v1680_v40, %v1646_v39  ;;  %v1686_v43 = vmul.f32 %v1680_v40, %v1649_v41  ;;  %v1813_v39 = vld [vmem:[%s7281_s4 + $0x340] sm:$0xff]  ;;  %v2186_v40 = vld [vmem:[%s7282_s5 + $0x18] sm:$0xff]  ;;  %v2185_v41 = vld [vmem:[%s7282_s5 + $0x10] sm:$0xff] }
 0x333   :  { %v6429_v45 = vadd.f32 %v1699_v38, %v1683_v42  ;;  %v6446_v59 = vadd.f32 %v1699_v38, %v1686_v43  ;;  %v2188_v38 = vld [vmem:[%s7282_s5 + $0x28] sm:$0xff] }
 0x334   :  { %v1810_v42 = vld [vmem:[%s7281_s4 + $0x328] sm:$0xff] }
 0x335   :  { %4122 = vmatmul.mubr.msk.f32.vlgmr.msra.gmra.mxu0 %vm1267_vm4, %v6429_v45  ;;  %v2184_v43 = vld [vmem:[%s7282_s5 + $0x8] sm:$0xff] }
 0x336   :  { %4287 = vmatpush3.msra.mxu0 %v1756_v47  ;;  %2008 = vmatprep.mubr.f32.mxu0 %v4561_v33  ;;  %v1807_v47 = vld [vmem:[%s7281_s4 + $0x310] sm:$0xff] }
 0x337   :  { %4288 = vmatprep.subr.mxu0 %v1801_v48  ;;  %v2246_v48 = vld [vmem:[%s7282_s5 + $0x1f8] sm:$0xff] }
 0x338   :  { %4289 = vmatpush3.msra.mxu0 %v1753_v50  ;;  %v2245_v50 = vld [vmem:[%s7282_s5 + $0x1f0] sm:$0xff] }
 0x339   :  { %4290 = vmatprep.subr.mxu0 %v1798_v53  ;;  %4123 = vmatmul.mubr.msk.f32.gmra.mxu0 %vm1267_vm4, %v6446_v59  ;;  %v2244_v53 = vld [vmem:[%s7282_s5 + $0x1e8] sm:$0xff] }
 0x33a   :  { %4291 = vmatpush3.msra.mxu0 %v1750_v51  ;;  %2079 = vmatprep.mubr.f32.mxu0 %v6380_v11  ;;  %v2203_v11 = vld [vmem:[%s7282_s5 + $0xa0] sm:$0xff] }
 0x33b   :  { %4292 = vmatprep.subr.mxu0 %v1795_v52  ;;  %2286 = vmatpush1.msra.mxu1 %v2203_v11  ;;  %v2243_v51 = vld [vmem:[%s7282_s5 + $0x1e0] sm:$0xff]  ;;  %v2242_v52 = vld [vmem:[%s7282_s5 + $0x1d8] sm:$0xff] }
 0x33c   :  { %4293 = vmatpush3.msra.mxu0 %v1747_v54  ;;  %2287 = vmatprep.subr.mxu1 %v2202_v56  ;;  %v2241_v54 = vld [vmem:[%s7282_s5 + $0x1d0] sm:$0xff]  ;;  %v2223_v11 = vld [vmem:[%s7282_s5 + $0x140] sm:$0xff]  ;;  %v2222_v56 = vld [vmem:[%s7282_s5 + $0x138] sm:$0xff] }
 0x33d   :  { %4294 = vmatprep.subr.mxu0 %v1792_v10  ;;  %2288 = vmatpush1.msra.mxu1 %v2201_v46  ;;  %v2240_v10 = vld [vmem:[%s7282_s5 + $0x1c8] sm:$0xff]  ;;  %v2219_v46 = vld [vmem:[%s7282_s5 + $0x120] sm:$0xff] }
 0x33e   :  { %4295 = vmatpush3.msra.mxu0 %v1744_v25  ;;  %2289 = vmatprep.subr.mxu1 %v2200_v16  ;;  %v2239_v25 = vld [vmem:[%s7282_s5 + $0x1c0] sm:$0xff]  ;;  %v2218_v16 = vld [vmem:[%s7282_s5 + $0x118] sm:$0xff] }
 0x33f   :  { %4296 = vmatprep.subr.mxu0 %v1789_v55  ;;  %2290 = vmatpush1.msra.mxu1 %v2199_v20  ;;  %v2237_v55 = vld [vmem:[%s7282_s5 + $0x1b0] sm:$0xff]  ;;  %v2215_v20 = vld [vmem:[%s7282_s5 + $0x100] sm:$0xff] }
 0x340   :  { %4297 = vmatpush3.msra.mxu0 %v1741_v61  ;;  %2291 = vmatprep.subr.mxu1 %v2198_v13  ;;  %v2236_v61 = vld [vmem:[%s7282_s5 + $0x1a8] sm:$0xff]  ;;  %v2262_v13 = vld [vmem:[%s7282_s5 + $0x278] sm:$0xf] }
 0x341   :  { %4298 = vmatprep.subr.mxu0 %v1786_v24  ;;  %2292 = vmatpush1.msra.mxu1 %v2197_v22  ;;  %v2235_v24 = vld [vmem:[%s7282_s5 + $0x1a0] sm:$0xff] }
 0x342   :  { %4299 = vmatpush3.msra.mxu0 %v1738_v49  ;;  %2293 = vmatprep.subr.mxu1 %v2196_v23  ;;  %v2234_v49 = vld [vmem:[%s7282_s5 + $0x198] sm:$0xff]  ;;  %v2259_v22 = vld [vmem:[%s7282_s5 + $0x260] sm:$0xff] }
 0x343   :  { %4300 = vmatprep.subr.mxu0 %v1783_v62  ;;  %2294 = vmatpush1.msra.mxu1 %v2195_v19  ;;  %v2233_v62 = vld [vmem:[%s7282_s5 + $0x190] sm:$0xff]  ;;  %v2258_v23 = vld [vmem:[%s7282_s5 + $0x258] sm:$0xff] }
 0x344   :  { %4301 = vmatpush3.msra.mxu0 %v1735_v1  ;;  %2295 = vmatprep.subr.mxu1 %v2194_v27  ;;  %v2232_v1 = vld [vmem:[%s7282_s5 + $0x188] sm:$0xff]  ;;  %v2257_v19 = vld [vmem:[%s7282_s5 + $0x250] sm:$0xff]  ;;  %v2255_v27 = vld [vmem:[%s7282_s5 + $0x240] sm:$0xff] }
 0x345   :  { %4302 = vmatprep.subr.mxu0 %v1780_v2  ;;  %2296 = vmatpush1.msra.mxu1 %v2193_v29  ;;  %v2231_v2 = vld [vmem:[%s7282_s5 + $0x180] sm:$0xff]  ;;  %v2253_v29 = vld [vmem:[%s7282_s5 + $0x230] sm:$0xff] }
 0x346   :  { %4303 = vmatpush3.msra.mxu0 %v1732_v3  ;;  %2297 = vmatprep.subr.mxu1 %v2192_v32  ;;  %v2230_v3 = vld [vmem:[%s7282_s5 + $0x178] sm:$0xff] }
 0x347   :  { %4304 = vmatprep.subr.mxu0 %v1777_v4  ;;  %2298 = vmatpush1.msra.mxu1 %v2191_v34  ;;  %v2229_v4 = vld [vmem:[%s7282_s5 + $0x170] sm:$0xff]  ;;  %v2250_v32 = vld [vmem:[%s7282_s5 + $0x218] sm:$0xff] }
 0x348   :  { %4305 = vmatpush3.msra.mxu0 %v1729_v5  ;;  %2299 = vmatprep.subr.mxu1 %v2190_v36  ;;  %v2228_v5 = vld [vmem:[%s7282_s5 + $0x168] sm:$0xff]  ;;  %v2249_v34 = vld [vmem:[%s7282_s5 + $0x210] sm:$0xff] }
 0x349   :  { %4306 = vmatprep.subr.mxu0 %v1774_v6  ;;  %v2227_v6 = vld [vmem:[%s7282_s5 + $0x160] sm:$0xff] }
 0x34a   :  { %4307 = vmatpush3.msra.mxu0 %v1726_v7  ;;  %v2226_v7 = vld [vmem:[%s7282_s5 + $0x158] sm:$0xff] }
 0x34b   :  { %4308 = vmatprep.subr.mxu0 %v1771_v8  ;;  %v2225_v8 = vld [vmem:[%s7282_s5 + $0x150] sm:$0xff] }
 0x34c   :  { %4309 = vmatpush3.msra.mxu0 %v1723_v9  ;;  %v2224_v9 = vld [vmem:[%s7282_s5 + $0x148] sm:$0xff] }
 0x34d   :  { %4310 = vmatprep.subr.mxu0 %v1768_v44  ;;  %v2221_v44 = vld [vmem:[%s7282_s5 + $0x130] sm:$0xff] }
 0x34e   :  { %4311 = vmatpush3.msra.mxu0 %v1720_v14  ;;  %v2220_v14 = vld [vmem:[%s7282_s5 + $0x128] sm:$0xff] }
 0x34f   :  { %4312 = vmatprep.subr.mxu0 %v1765_v18  ;;  %v2217_v18 = vld [vmem:[%s7282_s5 + $0x110] sm:$0xff] }
 0x350   :  { %4313 = vmatpush3.msra.mxu0 %v1717_v0  ;;  %v2216_v0 = vld [vmem:[%s7282_s5 + $0x108] sm:$0xff] }
 0x351   :  { %4314 = vmatprep.subr.mxu0 %v1762_v21  ;;  %v2261_v21 = vld [vmem:[%s7282_s5 + $0x270] sm:$0xf] }
 0x352   :  { %4315 = vmatpush3.msra.mxu0 %v1714_v63  ;;  %v2260_v63 = vld [vmem:[%s7282_s5 + $0x268] sm:$0xff] }
 0x353   :  { %4316 = vmatprep.subr.mxu0 %v1759_v26  ;;  %v2256_v26 = vld [vmem:[%s7282_s5 + $0x248] sm:$0xff] }
 0x354   :  { %4317 = vmatpush3.msra.mxu0 %v1711_v28  ;;  %v2254_v28 = vld [vmem:[%s7282_s5 + $0x238] sm:$0xff] }
 0x355   :  { %2080 = vmatmul.mubr.f32.vlgmr.msra.gmra.mxu0 %v6382_v12  ;;  %4385 = vmatprep.subr.msk.mxu0 %vm647_vm1, %v1828_v30  ;;  %v1819_v12 = vld [vmem:[%s7281_s4 + $0x370] sm:$0xff] }
 0x356   :  { %2084 = vmatprep.mubr.f32.mxu0 %v6388_v15  ;;  %4386 = vmatpush3.msk.msra.mxu0 %vm647_vm1, %v1828_v30  ;;  %v2189_v15 = vld [vmem:[%s7282_s5 + $0x30] sm:$0xff]  ;;  %v2252_v30 = vld [vmem:[%s7282_s5 + $0x228] sm:$0xff] }
 0x357   :  { %4387 = vmatprep.subr.mxu0 %v1825_v31  ;;  %2300 = vmatpush1.msra.mxu1 %v2189_v15  ;;  %v1829_v15 = vld [vmem:[%s7284_s7 + $0xc] sm:$0x7] }
 0x358   :  { %4388 = vmatpush3.msra.mxu0 %v1825_v31  ;;  %2301 = vmatprep.subr.mxu1 %v2188_v38  ;;  %v2251_v31 = vld [vmem:[%s7282_s5 + $0x220] sm:$0xff]  ;;  %v1834_v38 = vrot.slane %v1829_v15, %v5233_v58 }
 0x359   :  { %2085 = vmatmul.mubr.f32.gmra.mxu0 %v6401_v17  ;;  %4389 = vmatprep.subr.mxu0 %v1822_v35  ;;  %v2187_v17 = vld [vmem:[%s7282_s5 + $0x20] sm:$0xff] }
 0x35a   :  { %4390 = vmatpush3.msra.mxu0 %v1822_v35  ;;  %4401 = vmatprep.mubr.msk.f32.mxu0 %vm1267_vm4, %v6429_v45  ;;  %v2183_v45 = vld [vmem:[%s7282_s5] sm:$0xff]  ;;  %v2248_v35 = vld [vmem:[%s7282_s5 + $0x208] sm:$0xff] }
 0x35b   :  { %4391 = vmatprep.subr.mxu0 %v1819_v12  ;;  %2302 = vmatpush1.msra.mxu1 %v2187_v17  ;;  %v1838_v17 = vrot.slane %v1829_v15, %v5241_v60 }
 0x35c   :  { %4392 = vmatpush3.msra.mxu0 %v1819_v12  ;;  %2303 = vmatprep.subr.mxu1 %v2186_v40  ;;  %v2247_v12 = vld [vmem:[%s7282_s5 + $0x200] sm:$0xff] }
 0x35d   :  { %4393 = vmatprep.subr.mxu0 %v1816_v37  ;;  %2304 = vmatpush1.msra.mxu1 %v2185_v41 }
 0x35e   :  { %4394 = vmatpush3.msra.mxu0 %v1816_v37  ;;  %2305 = vmatprep.subr.mxu1 %v2184_v43 }
 0x35f   :  { %4395 = vmatprep.subr.mxu0 %v1813_v39  ;;  %2306 = vmatpush1.msra.mxu1 %v2183_v45 }
 0x360   :  { %4396 = vmatpush3.msra.mxu0 %v1813_v39  ;;  %2307 = vmatprep.subr.mxu1 %v2246_v48 }
 0x361   :  { %4397 = vmatprep.subr.mxu0 %v1810_v42  ;;  %2308 = vmatpush2.msra.mxu1 %v2245_v50 }
 0x362   :  { %4398 = vmatpush3.msra.mxu0 %v1810_v42  ;;  %2309 = vmatprep.subr.mxu1 %v2244_v53 }
 0x363   :  { %4399 = vmatprep.subr.mxu0 %v1807_v47  ;;  %2310 = vmatpush2.msra.mxu1 %v2243_v51 }
 0x364   :  { %4400 = vmatpush3.msra.mxu0 %v1807_v47  ;;  %2311 = vmatprep.subr.mxu1 %v2242_v52 }
 0x365   :  { %4402 = vmatmul.mubr.msk.f32.vlgmr.msra.gmra.mxu0 %vm1267_vm4, %v6446_v59  ;;  %2312 = vmatpush2.msra.mxu1 %v2241_v54  ;;  %v2238_v59 = vld [vmem:[%s7282_s5 + $0x1b8] sm:$0xff] }
 0x366   :  { %2416 = vmatprep.mubr.f32.mxu0 %v4561_v33  ;;  %2313 = vmatprep.subr.mxu1 %v2240_v10 }
 0x367   :  { %2314 = vmatpush2.msra.mxu1 %v2239_v25  ;;  %4127 = vmatprep.subr.msk.mxu0 %vm647_vm1, %v2262_v13  ;;  %v2459_v13 = vld [vmem:[%s7283_s6 + $0xf0] sm:$0xff] }
 0x368   :  { %2315 = vmatprep.subr.mxu1 %v2238_v59  ;;  %4128 = vmatpush1.msk.msra.mxu0 %vm647_vm1, %v2261_v21  ;;  %v2458_v21 = vld [vmem:[%s7283_s6 + $0xe8] sm:$0xff] }
 0x369   :  { %2316 = vmatpush2.msra.mxu1 %v2237_v55  ;;  %2370 = vmatprep.subr.mxu0 %v2260_v63  ;;  %v2457_v63 = vld [vmem:[%s7283_s6 + $0xe0] sm:$0xff] }
 0x36a   :  { %2317 = vmatprep.subr.mxu1 %v2236_v61  ;;  %2371 = vmatpush1.msra.mxu0 %v2259_v22  ;;  %v2456_v22 = vld [vmem:[%s7283_s6 + $0xd8] sm:$0xff] }
 0x36b   :  { %2318 = vmatpush2.msra.mxu1 %v2235_v24  ;;  %2372 = vmatprep.subr.mxu0 %v2258_v23  ;;  %v2455_v23 = vld [vmem:[%s7283_s6 + $0xd0] sm:$0xff] }
 0x36c   :  { %2319 = vmatprep.subr.mxu1 %v2234_v49  ;;  %2373 = vmatpush1.msra.mxu0 %v2257_v19  ;;  %v2454_v19 = vld [vmem:[%s7283_s6 + $0xc8] sm:$0xff] }
 0x36d   :  { %2320 = vmatpush2.msra.mxu1 %v2233_v62  ;;  %2374 = vmatprep.subr.mxu0 %v2256_v26  ;;  %v2453_v26 = vld [vmem:[%s7283_s6 + $0xc0] sm:$0xff] }
 0x36e   :  { %2321 = vmatprep.subr.mxu1 %v2232_v1  ;;  %2375 = vmatpush1.msra.mxu0 %v2255_v27  ;;  %v2452_v27 = vld [vmem:[%s7283_s6 + $0xb8] sm:$0xff] }
 0x36f   :  { %2322 = vmatpush2.msra.mxu1 %v2231_v2  ;;  %2376 = vmatprep.subr.mxu0 %v2254_v28  ;;  %v2451_v28 = vld [vmem:[%s7283_s6 + $0xb0] sm:$0xff] }
 0x370   :  { %2323 = vmatprep.subr.mxu1 %v2230_v3  ;;  %2377 = vmatpush1.msra.mxu0 %v2253_v29  ;;  %v2450_v29 = vld [vmem:[%s7283_s6 + $0xa8] sm:$0xff] }
 0x371   :  { %2324 = vmatpush2.msra.mxu1 %v2229_v4  ;;  %2378 = vmatprep.subr.mxu0 %v2252_v30  ;;  %v2449_v30 = vld [vmem:[%s7283_s6 + $0xa0] sm:$0xff] }
 0x372   :  { %2325 = vmatprep.subr.mxu1 %v2228_v5  ;;  %2379 = vmatpush1.msra.mxu0 %v2251_v31  ;;  %v2448_v31 = vld [vmem:[%s7283_s6 + $0x98] sm:$0xff] }
 0x373   :  { %2326 = vmatpush2.msra.mxu1 %v2227_v6  ;;  %2380 = vmatprep.subr.mxu0 %v2250_v32  ;;  %v2447_v32 = vld [vmem:[%s7283_s6 + $0x90] sm:$0xff] }
 0x374   :  { %2327 = vmatprep.subr.mxu1 %v2226_v7  ;;  %2381 = vmatpush1.msra.mxu0 %v2249_v34  ;;  %v2446_v34 = vld [vmem:[%s7283_s6 + $0x88] sm:$0xff] }
 0x375   :  { %2328 = vmatpush2.msra.mxu1 %v2225_v8  ;;  %2382 = vmatprep.subr.mxu0 %v2248_v35  ;;  %v1842_v8 = vrot.slane %v1829_v15, %v5230_v57  ;;  %v2460_v57 = vld [vmem:[%s7283_s6 + $0xf8] sm:$0xff]  ;;  %v2445_v35 = vld [vmem:[%s7283_s6 + $0x80] sm:$0xff]  ;;  %v2442_v15 = vld [vmem:[%s7283_s6 + $0x68] sm:$0xff] }
 0x376   :  { %2329 = vmatprep.subr.mxu1 %v2224_v9  ;;  %2383 = vmatpush1.msra.mxu0 %v2247_v12  ;;  %v2444_v12 = vld [vmem:[%s7283_s6 + $0x78] sm:$0xff] }
 0x377   :  { %2330 = vmatpush2.msra.mxu1 %v2223_v11  ;;  %2522 = vmatprep.subr.mxu0 %v2460_v57 }
 0x378   :  { %2331 = vmatprep.subr.mxu1 %v2222_v56 }
 0x379   :  { %2332 = vmatpush2.msra.mxu1 %v2221_v44 }
 0x37a   :  { %2333 = vmatprep.subr.mxu1 %v2220_v14 }
 0x37b   :  { %2334 = vmatpush2.msra.mxu1 %v2219_v46 }
 0x37c   :  { %2335 = vmatprep.subr.mxu1 %v2218_v16 }
 0x37d   :  { %2336 = vmatpush2.msra.mxu1 %v2217_v18 }
 0x37e   :  { %2337 = vmatprep.subr.mxu1 %v2216_v0 }
 0x37f   :  { %2338 = vmatpush2.msra.mxu1 %v2215_v20 }
 0x3c8   :  { %v1927_v36 = vpop.f32.mrf.mxu1 }
 0x3c9   :  { %v1928_v40 = vadd.f32 %v1927_v36, %v1834_v38  ;;  %v2443_v36 = vld [vmem:[%s7283_s6 + $0x70] sm:$0xff] }
 0x3ca   :  { %v1929_v37 = vpop.f32.mrf.mxu1 }
 0x3cb   :  { %v1930_v42 = vadd.f32 %v1929_v37, %v1838_v17  ;;  %v2441_v37 = vld [vmem:[%s7283_s6 + $0x60] sm:$0xff] }
 0x3cc   :  { %v1933_v39 = vpop.f32.mrf.mxu1 }
 0x3cd   :  { %v1934_v48 = vadd.f32 %v1933_v39, %v1834_v38  ;;  %v2440_v38 = vld [vmem:[%s7283_s6 + $0x58] sm:$0xff]  ;;  %v2438_v39 = vld [vmem:[%s7283_s6 + $0x48] sm:$0xff] }
 0x3ce   :  { %v1935_v43 = vpop.f32.mrf.mxu1 }
 0x3cf   :  { %v1936_v53 = vadd.f32 %v1935_v43, %v1838_v17  ;;  %v2439_v17 = vld [vmem:[%s7283_s6 + $0x50] sm:$0xff]  ;;  %v2434_v43 = vld [vmem:[%s7283_s6 + $0x28] sm:$0xff] }
 0x3f5   :  { %v2004_v41 = vpop.f32.mrf.mxu0 }
 0x3f6   :  { %v2005_v45 = vadd.f32 %v2004_v41, %v1928_v40  ;;  %v2437_v40 = vld [vmem:[%s7283_s6 + $0x40] sm:$0xff]  ;;  %v2436_v41 = vld [vmem:[%s7283_s6 + $0x38] sm:$0xff] }
 0x3f7   :  { %v2006_v47 = vpop.f32.mrf.mxu0 }
 0x3f8   :  { %v2007_v50 = vadd.f32 %v2006_v47, %v1930_v42  ;;  %v2171_v51 = vmul.f32 0.01, %v2005_v45  ;;  %vm2165_vm6 = vcmp.gt.f32.partialorder %v2005_v45, 0.0  ;;  %v2435_v42 = vld [vmem:[%s7283_s6 + $0x30] sm:$0xff]  ;;  %v2432_v47 = vld [vmem:[%s7283_s6 + $0x18] sm:$0xff] }
 0x3f9   :  { %v2010_v52 = vpop.f32.mrf.mxu0 }
 0x3fa   :  { %v2172_v54 = vmul.f32 0.01, %v2007_v50  ;;  %v2011_v10 = vadd.f32 %v2010_v52, %v1934_v48  ;;  %vm2166_vm7 = vcmp.gt.f32.partialorder %v2007_v50, 0.0  ;;  %v2177_v61 = vsel %vm2165_vm6, %v2005_v45, %v2171_v51  ;;  %v2433_v45 = vld [vmem:[%s7283_s6 + $0x20] sm:$0xff]  ;;  %v2431_v48 = vld [vmem:[%s7283_s6 + $0x10] sm:$0xff] }
 0x3fb   :  { %v2012_v25 = vpop.f32.mrf.mxu0  ;;  %v2468_v51 = vld [vmem:[%s7283_s6 + $0x138] sm:$0xf]  ;;  %v2467_v52 = vld [vmem:[%s7283_s6 + $0x130] sm:$0xf]  ;;  %vm3520_vm6 = vcmask 64512  }
 0x3fc   :  { %v2013_v59 = vadd.f32 %v2012_v25, %v1936_v53  ;;  %v2178_v55 = vsel %vm2166_vm7, %v2007_v50, %v2172_v54  ;;  %v2174_v24 = vmul.f32 0.01, %v2011_v10  ;;  %vm2168_vm9 = vcmp.gt.f32.partialorder %v2011_v10, 0.0  ;;  %v2430_v50 = vld [vmem:[%s7283_s6 + $0x8] sm:$0xff]  ;;  %v2429_v53 = vld [vmem:[%s7283_s6] sm:$0xff]  ;;  %v2464_v25 = vld [vmem:[%s7283_s6 + $0x118] sm:$0xff] }
 0x3fd   :  { %2339 = vmatprep.mubr.f32.mxu1 %v2178_v55  ;;  %v2466_v54 = vld [vmem:[%s7283_s6 + $0x128] sm:$0xff]  ;;  %vm3534_vm7 = vcmask 195584  }
 0x3fe   :  { %v2175_v49 = vmul.f32 0.01, %v2013_v59  ;;  %2340 = vmatmul.mubr.f32.vlgmr.msra.gmra.mxu1 %v2177_v61  ;;  %vm2169_vm8 = vcmp.gt.f32.partialorder %v2013_v59, 0.0  ;;  %v2180_v1 = vsel %vm2168_vm9, %v2011_v10, %v2174_v24  ;;  %v2465_v10 = vld [vmem:[%s7283_s6 + $0x120] sm:$0xff]  ;;  %v2462_v55 = vld [vmem:[%s7283_s6 + $0x108] sm:$0xff] }
 0x3ff   :  { %v2461_v61 = vld [vmem:[%s7283_s6 + $0x100] sm:$0xff]  ;;  %v2668_v24 = vld [vmem:[%s7285_s8 + $0x28] sm:$0xff] }
 0x400   :  { %v2181_v62 = vsel %vm2169_vm8, %v2013_v59, %v2175_v49  ;;  %v2463_v59 = vld [vmem:[%s7283_s6 + $0x110] sm:$0xff]  ;;  %v4563_v49 = vmov 0   ;;  %vm3721_vm8 = vcmask 123904  }
 0x401   :  { %2345 = vmatprep.mubr.f32.mxu1 %v2181_v62  ;;  %4494 = vset.pattern.permute.xlu0 %v4563_v49  ;;  %v2667_v62 = vld [vmem:[%s7285_s8 + $0x10] sm:$0xff] }
 0x402   :  { %2346 = vmatmul.mubr.f32.gmra.mxu1 %v2180_v1  ;;  %4496 = vset.pattern.permute.xlu1 %v4563_v49 }
 0x403   :  { %2756 = vmatprep.mubr.f32.mxu1 %v4561_v33  ;;  %2676 = vperm.xlu0 %4494, %v2668_v24  }
 0x407   :  { %2671 = vperm.xlu0 %4494, %v2667_v62  }
 0x415   :  { %v4318_v2 = vpop.f32.mrf.mxu0 }
 0x417   :  { %v4319_v3 = vpop.f32.mrf.mxu0 }
 0x418   :  { %v4320_v6 = vadd.f32 %v4319_v3, %v4318_v2 }
 0x419   :  { %v4321_v4 = vpop.f32.mrf.mxu0 }
 0x41a   :  { %v2082_v56 = vadd.f32 %v4320_v6, %v1842_v8 }
 0x41b   :  { %v4322_v5 = vpop.f32.mrf.mxu0 }
 0x41c   :  { %v4323_v7 = vadd.f32 %v4322_v5, %v4321_v4 }
 0x41e   :  { %v2087_v11 = vadd.f32 %v4323_v7, %v1842_v8 }
 0x425   :  { %v4403_v9 = vpop.f32.mrf.mxu0 }
 0x426   :  { %v2162_v14 = vadd.f32 %v4403_v9, %v2087_v11 }
 0x427   :  { %v2156_v44 = vpop.f32.mrf.mxu0 }
 0x428   :  { %v2157_v46 = vadd.f32 %v2156_v44, %v2082_v56  ;;  %v2176_v18 = vmul.f32 0.01, %v2162_v14  ;;  %vm2170_vm11 = vcmp.gt.f32.partialorder %v2162_v14, 0.0 }
 0x42a   :  { %vm2167_vm10 = vcmp.gt.f32.partialorder %v2157_v46, 0.0  ;;  %v2173_v16 = vmul.f32 0.01, %v2157_v46  ;;  %v2182_v20 = vsel %vm2170_vm11, %v2162_v14, %v2176_v18 }
 0x42c   :  { %v2179_v0 = vsel %vm2167_vm10, %v2157_v46, %v2173_v16 }
 0x42d   :  { %4129 = vmatmul.mubr.msk.f32.vlgmr.msra.gmra.mxu0 %vm1267_vm4, %v2179_v0 }
 0x42e   :  { %2422 = vmatprep.mubr.f32.mxu0 %v4561_v33  ;;  %2523 = vmatpush1.msra.mxu0 %v2459_v13 }
 0x42f   :  { %2524 = vmatprep.subr.mxu0 %v2458_v21 }
 0x430   :  { %2525 = vmatpush1.msra.mxu0 %v2457_v63 }
 0x431   :  { %4130 = vmatmul.mubr.msk.f32.gmra.mxu0 %vm1267_vm4, %v2182_v20  ;;  %2526 = vmatprep.subr.mxu0 %v2456_v22 }
 0x432   :  { %2527 = vmatpush1.msra.mxu0 %v2455_v23 }
 0x433   :  { %2528 = vmatprep.subr.mxu0 %v2454_v19 }
 0x434   :  { %2529 = vmatpush1.msra.mxu0 %v2453_v26 }
 0x435   :  { %2530 = vmatprep.subr.mxu0 %v2452_v27 }
 0x436   :  { %2531 = vmatpush1.msra.mxu0 %v2451_v28 }
 0x437   :  { %2532 = vmatprep.subr.mxu0 %v2450_v29 }
 0x438   :  { %2533 = vmatpush1.msra.mxu0 %v2449_v30 }
 0x439   :  { %2534 = vmatprep.subr.mxu0 %v2448_v31 }
 0x43a   :  { %2535 = vmatpush1.msra.mxu0 %v2447_v32 }
 0x43b   :  { %2536 = vmatprep.subr.mxu0 %v2446_v34 }
 0x43c   :  { %2537 = vmatpush1.msra.mxu0 %v2445_v35 }
 0x43d   :  { %2538 = vmatprep.subr.mxu0 %v2444_v12 }
 0x43e   :  { %2539 = vmatpush1.msra.mxu0 %v2443_v36 }
 0x43f   :  { %2540 = vmatprep.subr.mxu0 %v2442_v15 }
 0x440   :  { %2541 = vmatpush1.msra.mxu0 %v2441_v37 }
 0x441   :  { %2542 = vmatprep.subr.mxu0 %v2440_v38 }
 0x442   :  { %2543 = vmatpush1.msra.mxu0 %v2439_v17 }
 0x443   :  { %2544 = vmatprep.subr.mxu0 %v2438_v39 }
 0x444   :  { %2545 = vmatpush1.msra.mxu0 %v2437_v40 }
 0x445   :  { %2546 = vmatprep.subr.mxu0 %v2436_v41 }
 0x446   :  { %2547 = vmatpush1.msra.mxu0 %v2435_v42 }
 0x447   :  { %2548 = vmatprep.subr.mxu0 %v2434_v43 }
 0x448   :  { %2549 = vmatpush1.msra.mxu0 %v2433_v45 }
 0x449   :  { %2550 = vmatprep.subr.mxu0 %v2432_v47 }
 0x44a   :  { %2551 = vmatpush1.msra.mxu0 %v2431_v48 }
 0x44b   :  { %2552 = vmatprep.subr.mxu0 %v2430_v50 }
 0x44c   :  { %2553 = vmatpush1.msra.mxu0 %v2429_v53 }
 0x44d   :  { %4131 = vmatprep.subr.msk.mxu0 %vm647_vm1, %v2468_v51 }
 0x44e   :  { %4132 = vmatpush2.msk.msra.mxu0 %vm647_vm1, %v2467_v52 }
 0x44f   :  { %2580 = vmatprep.subr.mxu0 %v2466_v54 }
 0x450   :  { %2581 = vmatpush2.msra.mxu0 %v2465_v10 }
 0x451   :  { %2582 = vmatprep.subr.mxu0 %v2464_v25 }
 0x452   :  { %2583 = vmatpush2.msra.mxu0 %v2463_v59 }
 0x453   :  { %2584 = vmatprep.subr.mxu0 %v2462_v55 }
 0x454   :  { %2585 = vmatpush2.msra.mxu0 %v2461_v61 }
 0x4be   :  { %v2341_v1 = vpop.f32.mrf.mxu1 }
 0x4c0   :  { %v2343_v2 = vpop.f32.mrf.mxu1 }
 0x4c2   :  { %v2347_v4 = vpop.f32.mrf.mxu1 }
 0x4c4   :  { %v2349_v11 = vpop.f32.mrf.mxu1 }
 0x4ed   :  { %v2418_v3 = vpop.f32.mrf.mxu0 }
 0x4ee   :  { %v6913_v5 = vadd.f32 %v2418_v3, %v2341_v1 }
 0x4ef   :  { %v2420_v6 = vpop.f32.mrf.mxu0 }
 0x4f0   :  { %v6915_v7 = vadd.f32 %v2420_v6, %v2343_v2  ;;  %v2489_v56 = vmul.f32 %v6913_v5, %v6913_v5 }
 0x4f1   :  { %v2424_v8 = vpop.f32.mrf.mxu0 }
 0x4f2   :  { %v6917_v9 = vadd.f32 %v2424_v8, %v2347_v4  ;;  %v2490_v14 = vmul.f32 %v6915_v7, %v6915_v7  ;;  %v2478_v0 = vsel %vm640_vm2, %v6915_v7, 0.0  ;;  %v2469_v4 = vld [vmem:[%s7284_s7 + $0xf] sm:$0x3] }
 0x4f3   :  { %v2426_v44 = vpop.f32.mrf.mxu0  ;;  %v2623_v6 = vrot.slane %v2469_v4, %v5233_v58 }
 0x4f4   :  { %v2471_v46 = vadd.f32 %v6917_v9, %v6913_v5  ;;  %v2491_v16 = vmul.f32 %v6917_v9, %v6917_v9  ;;  %v6927_v18 = vadd.f32 %v2426_v44, %v2349_v11  ;;  %v2500_v22 = vsel %vm640_vm2, %v2490_v14, 0.0 }
 0x4f5   :  { %v2627_v11 = vrot.slane %v2469_v4, %v5241_v60 }
 0x4f6   :  { %v2472_v20 = vrot.slane %v2471_v46, 4  ;;  %v2493_v57 = vadd.f32 %v2491_v16, %v2489_v56  ;;  %v2479_v13 = vsel %vm640_vm2, %v6927_v18, 0.0  ;;  %v2492_v21 = vmul.f32 %v6927_v18, %v6927_v18  ;;  %v2470_v56 = vld [vmem:[%s7284_s7 + $0x11] sm:$0x3] }
 0x4f7   :  { %v2480_v63 = vadd.f32 %v2479_v13, %v2478_v0  ;;  %v2648_v0 = vrot.slane %v2470_v56, %v5233_v58 }
 0x4f8   :  { %v2473_v23 = vadd.f32 %v2472_v20, %v2471_v46  ;;  %v2494_v19 = vrot.slane %v2493_v57, 4  ;;  %v2501_v26 = vsel %vm640_vm2, %v2492_v21, 0.0 }
 0x4f9   :  { %v2481_v27 = vrot.slane %v2480_v63, 4  ;;  %v2502_v28 = vadd.f32 %v2501_v26, %v2500_v22  ;;  %v2652_v22 = vrot.slane %v2470_v56, %v5241_v60 }
 0x4fa   :  { %v2474_v29 = vrot.slane %v2473_v23, 2  ;;  %v2495_v30 = vadd.f32 %v2494_v19, %v2493_v57 }
 0x4fb   :  { %v2482_v31 = vadd.f32 %v2481_v27, %v2480_v63  ;;  %v2503_v32 = vrot.slane %v2502_v28, 4 }
 0x4fc   :  { %v2475_v34 = vadd.f32 %v2474_v29, %v2473_v23  ;;  %v2496_v35 = vrot.slane %v2495_v30, 2 }
 0x4fd   :  { %v2483_v12 = vrot.slane %v2482_v31, 2  ;;  %v2504_v36 = vadd.f32 %v2503_v32, %v2502_v28  ;;  %v2677_v28 = vpop.permute.xlu0 %2676 }
 0x4fe   :  { %v2497_v15 = vadd.f32 %v2496_v35, %v2495_v30  ;;  %v2476_v17 = vrot.slane %v2475_v34, 1 }
 0x4ff   :  { %v2484_v37 = vadd.f32 %v2483_v12, %v2482_v31  ;;  %v2505_v38 = vrot.slane %v2504_v36, 2  ;;  %v2662_v31 = vld [vmem:[%s7285_s8 + $0x20] sm:$0xff] }
 0x500   :  { %v2498_v39 = vrot.slane %v2497_v15, 1  ;;  %v2477_v47 = vadd.f32 %v2476_v17, %v2475_v34 }
 0x501   :  { %v2485_v40 = vrot.slane %v2484_v37, 1  ;;  %v2506_v41 = vadd.f32 %v2505_v38, %v2504_v36  ;;  %v2672_v36 = vpop.permute.xlu0 %2671 }
 0x502   :  { %v2499_v42 = vadd.f32 %v2498_v39, %v2497_v15  ;;  %v2487_v52 = vmul.f32 0.0625, %v2477_v47 }
 0x503   :  { %v2486_v43 = vadd.f32 %v2485_v40, %v2484_v37  ;;  %v2507_v45 = vrot.slane %v2506_v41, 1 }
 0x504   :  { %v2509_v50 = vmul.f32 0.0625, %v2499_v42 }
 0x505   :  { %v2508_v48 = vadd.f32 %v2507_v45, %v2506_v41  ;;  %v2488_v53 = vmul.f32 0.0625, %v2486_v43  ;;  %v2687_v45 = vld [vmem:[%s7286_s9] sm:$0x3f] }
 0x506   :  { %v2511_v10 = vsel %vm1313_vm3, %v2487_v52, %v2509_v50 }
 0x507   :  { %v2510_v51 = vmul.f32 0.0625, %v2508_v48 }
 0x509   :  { %v2512_v54 = vsel %vm1313_vm3, %v2488_v53, %v2510_v51  ;;  %vm2841_vm3 = vcmask 46080  }
 0x50a   :  { %4133 = vmatprep.mubr.msk.f32.mxu0 %vm640_vm2, %v2512_v54 }
 0x50b   :  { %2587 = vmatmul.mubr.f32.vlgmr.msra.gmra.mxu0 %v2511_v10 }
 0x5cb   :  { %v2588_v25 = vpop.f32.mrf.mxu0 }
 0x5cc   :  { %v2593_v59 = vmul.f32 %v2588_v25, %v2588_v25  ;;  %v2610_v8 = vrot.slane %v2588_v25, %v5233_v58 }
 0x5cd   :  { %v2590_v55 = vpop.f32.mrf.mxu0 }
 0x5ce   :  { %v2597_v61 = vrot.slane %v2593_v59, 7  ;;  %v2594_v24 = vmul.f32 %v2590_v55, %v2590_v55  ;;  %v2614_v14 = vrot.slane %v2590_v55, %v5233_v58  ;;  %v2615_v20 = vsub.f32 %v6913_v5, %v2610_v8  ;;  %v2661_v58 = vld [vmem:[%s7285_s8 + $0x18] sm:$0xff] }
 0x5cf   :  { %v2617_v57 = vsub.f32 %v6917_v9, %v2610_v8  ;;  %v2839_v8 = vld [vmem:[%s7287_s10 + $0x8] sm:$0x3f] }
 0x5d0   :  { %v2601_v49 = vsub.f32 %v2588_v25, %v2597_v61  ;;  %v2598_v62 = vrot.slane %v2594_v24, 7  ;;  %v2616_v63 = vsub.f32 %v6915_v7, %v2614_v14  ;;  %v2618_v26 = vsub.f32 %v6927_v18, %v2614_v14  ;;  %v2659_v7 = vld [vmem:[%s7285_s8] sm:$0xff] }
 0x5d2   :  { %v2603_v1 = vadd.f32 1e-05, %v2601_v49  ;;  %v2602_v2 = vsub.f32 %v2590_v55, %v2598_v62  ;;  %v6999_v55 = vld [vmem:[%s7287_s10 + $0x18] sm:$0x3f] }
 0x5d4   :  { %4517 = vrsqrt.f32 %v2603_v1  ;;  %v2604_v3 = vadd.f32 1e-05, %v2602_v2  ;;  %v7006_v1 = vld [vmem:[%s7287_s10 + $0x10] sm:$0x3f] }
 0x5d6   :  { %4519 = vrsqrt.f32 %v2604_v3  ;;  %v2836_v3 = vld [vmem:[%s7287_s10] sm:$0x3f] }
 0x5e1   :  { %v4518_v44 = vpop.eup %4517 }
 0x5e2   :  { %v2630_v46 = vmul.f32 %v4518_v44, %v2623_v6 }
 0x5e3   :  { %v4520_v16 = vpop.eup %4519 }
 0x5e4   :  { %v2635_v13 = vrot.slane %v2630_v46, %v5241_v60  ;;  %v2631_v21 = vmul.f32 %v4520_v16, %v2627_v11 }
 0x5e6   :  { %v2640_v23 = vmul.f32 %v2635_v13, %v2615_v20  ;;  %v2642_v19 = vmul.f32 %v2635_v13, %v2617_v57  ;;  %v2639_v27 = vrot.slane %v2631_v21, %v5241_v60  ;;  %v2660_v60 = vld [vmem:[%s7285_s8 + $0x8] sm:$0xff]  ;;  %v4565_v20 = vmov 1   ;;  %v3005_v57 = vld [vmem:[%s7288_s11 + $0x78] sm:$0xff]  ;;  %v3004_v13 = vld [vmem:[%s7288_s11 + $0x70] sm:$0xff] }
 0x5e7   :  { %v3003_v21 = vld [vmem:[%s7288_s11 + $0x68] sm:$0xff] }
 0x5e8   :  { %v2641_v5 = vmul.f32 %v2639_v27, %v2616_v63  ;;  %v2643_v9 = vmul.f32 %v2639_v27, %v2618_v26  ;;  %v2657_v29 = vadd.f32 %v2648_v0, %v2642_v19  ;;  %v2655_v30 = vadd.f32 %v2648_v0, %v2640_v23  ;;  %v3002_v63 = vld [vmem:[%s7288_s11 + $0x60] sm:$0xff]  ;;  %v3000_v23 = vld [vmem:[%s7288_s11 + $0x50] sm:$0xff]  ;;  %v2999_v19 = vld [vmem:[%s7288_s11 + $0x48] sm:$0xff] }
 0x5e9   :  { %v2998_v26 = vld [vmem:[%s7288_s11 + $0x40] sm:$0xff]  ;;  %v2997_v27 = vld [vmem:[%s7288_s11 + $0x38] sm:$0xff] }
 0x5ea   :  { %v2658_v18 = vadd.f32 %v2652_v22, %v2643_v9  ;;  %v2665_v32 = vmul.f32 %v2661_v58, %v2657_v29  ;;  %v2656_v34 = vadd.f32 %v2652_v22, %v2641_v5  ;;  %v2663_v35 = vmul.f32 %v2659_v7, %v2655_v30  ;;  %v3001_v22 = vld [vmem:[%s7288_s11 + $0x58] sm:$0xff]  ;;  %v2995_v58 = vld [vmem:[%s7288_s11 + $0x28] sm:$0xff]  ;;  %v2994_v5 = vld [vmem:[%s7288_s11 + $0x20] sm:$0xff] }
 0x5eb   :  { %v2993_v9 = vld [vmem:[%s7288_s11 + $0x18] sm:$0xff]  ;;  %v2992_v29 = vld [vmem:[%s7288_s11 + $0x10] sm:$0xff]  ;;  %v2991_v30 = vld [vmem:[%s7288_s11 + $0x8] sm:$0xff] }
 0x5ec   :  { %v2666_v12 = vmul.f32 %v2662_v31, %v2658_v18  ;;  %v2664_v15 = vmul.f32 %v2660_v60, %v2656_v34  ;;  %v2681_v37 = vsub.f32 %v2665_v32, %v2677_v28  ;;  %v2679_v39 = vsub.f32 %v2663_v35, %v2672_v36  ;;  %v2990_v7 = vld [vmem:[%s7288_s11] sm:$0xff]  ;;  %v3009_v32 = vld [vmem:[%s7288_s11 + $0x98] sm:$0xf]  ;;  %v3008_v34 = vld [vmem:[%s7288_s11 + $0x90] sm:$0xff] }
 0x5ee   :  { %v2682_v38 = vsub.f32 %v2666_v12, %v2677_v28  ;;  %v2680_v17 = vsub.f32 %v2664_v15, %v2672_v36  ;;  %v2685_v41 = vmax.f32 %v2681_v37, 0.0  ;;  %v2683_v43 = vmax.f32 %v2679_v39, 0.0  ;;  %v2996_v28 = vld [vmem:[%s7288_s11 + $0x30] sm:$0xff]  ;;  %v3007_v15 = vld [vmem:[%s7288_s11 + $0x88] sm:$0xff]  ;;  %v3006_v37 = vld [vmem:[%s7288_s11 + $0x80] sm:$0xff]  ;;  %s4570_s11 = smov 96  }
 0x5f0   :  { %v2686_v40 = vmax.f32 %v2682_v38, 0.0  ;;  %v2684_v42 = vmax.f32 %v2680_v17, 0.0 }
 0x5f2   :  { %2720 = vmatprep.subr.mxu1 %v2686_v40 }
 0x5f3   :  { %2721 = vmatpush1.msra.mxu1 %v2685_v41 }
 0x5f4   :  { %2722 = vmatprep.subr.mxu1 %v2684_v42 }
 0x5f5   :  { %2723 = vmatpush1.msra.mxu1 %v2683_v43 }
 0x5f6   :  { %4134 = vmatmul.mubr.msk.f32.vlgmr.msra.gmra.mxu1 %vm2688_vm12, %v2687_v45  ;;  %4404 = vmatprep.subr.mxu1 %v4561_v33 }
 0x5f7   :  { %4406 = vmatprep.mubr.msk.f32.mxu1 %vm4562_vm5, %v4561_v33 }
 0x6b6   :  { %v6977_v47 = vpop.f32.mrf.mxu1 }
 0x6b7   :  { %v2862_v50 = vsel %vm2861_vm13, %v6977_v47, 0.0  ;;  %v2870_v51 = vmul.f32 %v6977_v47, %v6977_v47 }
 0x6b8   :  { %v6979_v48 = vpop.f32.mrf.mxu1 }
 0x6b9   :  { %4135 = vmatprep.subr.msk.mxu0 %vm640_vm2, %v6979_v48  ;;  %4136 = vmatprep.mubr.msk.f32.mxu0 %vm640_vm2, %v6979_v48  ;;  %v2864_v53 = vsel %vm2863_vm14, %v6979_v48, 0.0  ;;  %v2871_v52 = vmul.f32 %v6979_v48, %v6979_v48  ;;  %v2872_v25 = vsel %vm2861_vm13, %v2870_v51, 0.0 }
 0x6ba   :  { %2797 = vmatpush1.xpose.msra.mxu0 %v6977_v47  ;;  %v2865_v54 = vadd.f32 %v2864_v53, %v2862_v50 }
 0x6bb   :  { %v2873_v10 = vsel %vm2863_vm14, %v2871_v52, 0.0  ;;  %3016 = vmatprep.subr.mxu0 %v4561_v33 }
 0x6bc   :  { %2866 = vadd.xlane.f32.xlu1 %v2865_v54  ;;  %v2874_v59 = vadd.f32 %v2873_v10, %v2872_v25 }
 0x6bd   :  { %2831 = vmatmul.mubr.f32.vlgmr.msra.gmra.mxu0 %v6977_v47 }
 0x6be   :  { %3017 = vmatpush1.msra.mxu0 %v3005_v57 }
 0x6bf   :  { %3018 = vmatprep.subr.mxu0 %v4561_v33 }
 0x6c0   :  { %2875 = vadd.xlane.f32.xlu1 %v2874_v59  ;;  %3019 = vmatpush1.msra.mxu0 %v3004_v13 }
 0x6c1   :  { %3020 = vmatprep.subr.mxu0 %v4561_v33 }
 0x6c2   :  { %3021 = vmatpush1.msra.mxu0 %v3003_v21 }
 0x6c3   :  { %3022 = vmatprep.subr.mxu0 %v4561_v33 }
 0x6c4   :  { %3023 = vmatpush1.msra.mxu0 %v3002_v63 }
 0x6c5   :  { %3024 = vmatprep.subr.mxu0 %v4561_v33 }
 0x6c6   :  { %3025 = vmatpush1.msra.mxu0 %v3001_v22 }
 0x6c7   :  { %3026 = vmatprep.subr.mxu0 %v4561_v33 }
 0x6c8   :  { %3027 = vmatpush1.msra.mxu0 %v3000_v23 }
 0x6c9   :  { %3028 = vmatprep.subr.mxu0 %v4561_v33 }
 0x6ca   :  { %3029 = vmatpush1.msra.mxu0 %v2999_v19  ;;  %v4567_v19 = vmov 3  }
 0x6cb   :  { %3030 = vmatprep.subr.mxu0 %v4561_v33 }
 0x6cc   :  { %3031 = vmatpush1.msra.mxu0 %v2998_v26 }
 0x6cd   :  { %3032 = vmatprep.subr.mxu0 %v4561_v33 }
 0x6ce   :  { %3033 = vmatpush1.msra.mxu0 %v2997_v27 }
 0x6cf   :  { %3034 = vmatprep.subr.mxu0 %v4561_v33 }
 0x6d0   :  { %3035 = vmatpush1.msra.mxu0 %v2996_v28 }
 0x6d1   :  { %2973 = vrot.lane.b32.xlu1 %v6999_v55, %s4564_s21  ;;  %3036 = vmatprep.subr.mxu0 %v4561_v33 }
 0x6d2   :  { %3037 = vmatpush1.msra.mxu0 %v2995_v58 }
 0x6d3   :  { %3038 = vmatprep.subr.mxu0 %v4561_v33 }
 0x6d4   :  { %3039 = vmatpush1.msra.mxu0 %v2994_v5 }
 0x6d5   :  { %3040 = vmatprep.subr.mxu0 %v4561_v33 }
 0x6d6   :  { %3041 = vmatpush1.msra.mxu0 %v2993_v9 }
 0x6d7   :  { %3042 = vmatprep.subr.mxu0 %v4561_v33 }
 0x6d8   :  { %3043 = vmatpush1.msra.mxu0 %v2992_v29 }
 0x6d9   :  { %3044 = vmatprep.subr.mxu0 %v4561_v33 }
 0x6da   :  { %3045 = vmatpush1.msra.mxu0 %v2991_v30 }
 0x6db   :  { %3046 = vmatprep.subr.mxu0 %v4561_v33 }
 0x6dc   :  { %3047 = vmatpush1.msra.mxu0 %v2990_v7 }
 0x6dd   :  { %3072 = vmatprep.subr.mxu0 %v4561_v33 }
 0x6de   :  { %4139 = vmatpush2.msk.msra.mxu0 %vm647_vm1, %v3009_v32  ;;  %v3526_v32 = vld [vmem:[%s7290_s13 + $0x10] sm:$0xff] }
 0x6df   :  { %3074 = vmatprep.subr.mxu0 %v4561_v33 }
 0x6e0   :  { %3075 = vmatpush2.msra.mxu0 %v3008_v34  ;;  %v3525_v34 = vld [vmem:[%s7290_s13 + $0x8] sm:$0xff] }
 0x6e1   :  { %3076 = vmatprep.subr.mxu0 %v4561_v33 }
 0x6e2   :  { %3077 = vmatpush2.msra.mxu0 %v3007_v15 }
 0x6e3   :  { %3078 = vmatprep.subr.mxu0 %v4561_v33 }
 0x6e4   :  { %3079 = vmatpush2.msra.mxu0 %v3006_v37 }
 0x6e5   :  { %4473 = vmatprep.subr.mxu0 %v4561_v33 }
 0x745   :  { %v2867_v61 = vpop.xlane.xlu1 %2866 }
 0x746   :  { %v2869_v49 = vmul.f32 0.0064102565, %v2867_v61 }
 0x749   :  { %v2876_v24 = vpop.xlane.xlu1 %2875 }
 0x74a   :  { %v2877_v62 = vmul.f32 0.0064102565, %v2876_v24  ;;  %v4141_v24 = vld [vmem:[%s7284_s7 + $0x13] ss:$0 sm:$0xff] }
 0x74c   :  { %v2879_v2 = vsel %vm2878_vm15, %v2869_v49, %v2877_v62 }
 0x74d   :  { %4405 = vmatpush3.msk.msra.mxu1 %vm2861_vm13, %v2879_v2  ;;  %v2974_v12 = vpop.permute.xlu1 %2973 }
 0x74e   :  { %4407 = vmatmul.mubr.msk.f32.vlgmr.msra.gmra.mxu1 %vm2880_vm0, %v7006_v1  ;;  %4409 = vmatprep.subr.mxu1 %v4561_v33 }
 0x74f   :  { %4411 = vmatprep.mubr.msk.f32.mxu1 %vm4562_vm5, %v4561_v33 }
 0x77d   :  { %v2832_v4 = vpop.f32.mrf.mxu0 }
 0x77e   :  { %v2837_v6 = vmul.f32 %v2836_v3, %v2832_v4 }
 0x77f   :  { %v2834_v11 = vpop.f32.mrf.mxu0 }
 0x780   :  { %v2838_v56 = vmax.f32 %v2837_v6, 0.0 }
 0x782   :  { %v7021_v44 = vadd.f32 %v2839_v8, %v2838_v56 }
 0x784   :  { %v7024_v14 = vsel %vm2841_vm3, %v7021_v44, 0.0 }
 0x785   :  { %2843 = vadd.xlane.f32.xlu1 %v7024_v14  ;;  %v2845_v53 = vrot.slane %v7024_v14, 4 }
 0x787   :  { %v2846_v51 = vadd.f32 %v2845_v53, %v7024_v14 }
 0x789   :  { %v2847_v52 = vrot.slane %v2846_v51, 2 }
 0x78b   :  { %v2848_v54 = vadd.f32 %v2847_v52, %v2846_v51  ;;  %v4156_v52 = vld [vmem:[%s7284_s7 + $0x16] ss:$0 sm:$0xff] }
 0x78d   :  { %v2849_v10 = vrot.slane %v2848_v54, 1 }
 0x80e   :  { %v2953_v46 = vpop.f32.mrf.mxu1 }
 0x80f   :  { %v2957_v16 = vmul.f32 %v2953_v46, %v2953_v46 }
 0x810   :  { %v4408_v0 = vpop.f32.mrf.mxu1 }
 0x811   :  { %2959 = vrot.lane.b32.xlu0 %v2957_v16, %s4564_s21 }
 0x815   :  { %2967 = vperm.xlu0 %4494, %v2953_v46  }
 0x819   :  { %4495 = vset.pattern.permute.xlu0 %v4565_v20 }
 0x883   :  { %v2960_v31 = vpop.permute.xlu0 %2959 }
 0x884   :  { %v2962_v60 = vsub.f32 %v2953_v46, %v2960_v31 }
 0x886   :  { %v2963_v18 = vadd.f32 1e-05, %v2962_v60 }
 0x888   :  { %4521 = vrsqrt.f32 %v2963_v18  ;;  %v4151_v18 = vld [vmem:[%s7289_s12 + $0x4] sm:$0x3] }
 0x890   :  { %v2968_v38 = vpop.permute.xlu0 %2967 }
 0x891   :  { %v2970_v39 = vsub.f32 %v6977_v47, %v2968_v38  ;;  %v2971_v40 = vsub.f32 %v6979_v48, %v2968_v38  ;;  %v2844_v47 = vpop.xlane.xlu1 %2843  ;;  %v2850_v48 = vadd.f32 %v2849_v10, %v2848_v54 }
 0x892   :  { %vm2851_vm1 = vcmp.eq.f32.partialorder %v2844_v47, 0.0 }
 0x893   :  { %v2852_v25 = vsel %vm2851_vm1, 1.0, %v2844_v47  ;;  %vm2854_vm4 = vcmp.eq.f32.partialorder %v2850_v48, 0.0 }
 0x894   :  { %4523 = vrsqrt.f32 %v2852_v25  ;;  %v2855_v59 = vsel %vm2854_vm4, 1.0, %v2850_v48  ;;  %v4154_v48 = vld [vmem:[%s7284_s7 + $0x15] ss:$0 sm:$0xff] }
 0x895   :  { %v4522_v35 = vpop.eup %4521  ;;  %4525 = vrsqrt.f32 %v2855_v59 }
 0x896   :  { %v2976_v36 = vmul.f32 %v4522_v35, %v2974_v12  ;;  %v3524_v35 = vld [vmem:[%s7290_s13] sm:$0xff] }
 0x898   :  { %2979 = vperm.xlu0 %4495, %v2976_v36  }
 0x89c   :  { %2985 = vperm.xlu0 %4495, %v6999_v55  }
 0x8a0   :  { %4498 = vset.pattern.permute.xlu0 %v4567_v19  ;;  %v3924_v19 = vld [vmem:[%s7291_s14 + $0x18] sm:$0xff] }
 0x8a1   :  { %v4524_v61 = vpop.eup %4523 }
 0x8a2   :  { %v2857_v49 = vmul.f32 %v4524_v61, %v7021_v44  ;;  %v4526_v2 = vpop.eup %4525 }
 0x8a4   :  { %v2858_v6 = vmul.f32 %v4526_v2, %v2857_v49 }
 0x913   :  { %v2980_v17 = vpop.permute.xlu0 %2979 }
 0x914   :  { %v2982_v41 = vmul.f32 %v2980_v17, %v2970_v39  ;;  %v2983_v42 = vmul.f32 %v2980_v17, %v2971_v40 }
 0x917   :  { %v2986_v43 = vpop.permute.xlu0 %2985 }
 0x918   :  { %v2988_v45 = vadd.f32 %v2986_v43, %v2982_v41  ;;  %v2989_v50 = vadd.f32 %v2986_v43, %v2983_v42  ;;  %v3609_v42 = vld [vmem:[%s7290_s13 + $0x20] sm:$0xff] }
 0x91a   :  { %4140 = vmatprep.mubr.msk.f32.mxu0 %vm640_vm2, %v2989_v50  ;;  %vm3171_vm2 = vcmask 62464   ;;  %v3523_v50 = vld [vmem:[%s7292_s15] sm:$0x3] }
 0x91b   :  { %3081 = vmatmul.mubr.f32.vlgmr.msra.gmra.mxu0 %v2988_v45  ;;  %v3608_v45 = vld [vmem:[%s7290_s13 + $0x18] sm:$0xff] }
 0x91c   :  { %4477 = vmatprep.mubr.msk.f32.mxu0 %vm4562_vm5, %v4561_v33 }
 0x9db   :  { %v3082_v62 = vpop.f32.mrf.mxu0 }
 0x9dc   :  { %v3093_v3 = vsub.f32 %v3082_v62, %v4141_v24 }
 0x9dd   :  { %v3084_v4 = vpop.f32.mrf.mxu0 }
 0x9de   :  { %4410 = vmatpush3.msk.msra.mxu1 %vm2861_vm13, %v3093_v3 }
 0x9df   :  { %4412 = vmatmul.mubr.msk.f32.vlgmr.msra.gmra.mxu1 %vm2880_vm0, %v2858_v6  ;;  %4414 = vmatprep.subr.mxu1 %v4561_v33 }
 0x9e0   :  { %4416 = vmatprep.mubr.msk.f32.mxu1 %vm4562_vm5, %v4561_v33 }
 0xa9f   :  { %v3166_v8 = vpop.f32.mrf.mxu1 }
 0xaa0   :  { %v3170_v11 = vmax.f32 %v3166_v8, 0.0  ;;  %v3726_v8 = vld [vmem:[%s7290_s13 + $0x30] sm:$0xff] }
 0xaa1   :  { %v4413_v56 = vpop.f32.mrf.mxu1 }
 0xaa2   :  { %v3172_v14 = vsel %vm3171_vm2, %v3170_v11, 0.0  ;;  %v3177_v44 = vmul.f32 %v3170_v11, %v3170_v11 }
 0xaa3   :  { %3173 = vadd.xlane.f32.xlu0 %v3172_v14 }
 0xaa4   :  { %v3178_v46 = vsel %vm3171_vm2, %v3177_v44, 0.0 }
 0xaa7   :  { %3179 = vadd.xlane.f32.xlu0 %v3178_v46 }
 0xabd   :  { %3270 = vrot.lane.b32.xlu0 %v6999_v55, %s4566_s24 }
 0xac1   :  { %3281 = vperm.xlu0 %4498, %v6999_v55   ;;  %v4148_v55 = vld [vmem:[%s7289_s12 + $0x2] sm:$0x3] }
 0xb2c   :  { %v3174_v16 = vpop.xlane.xlu0 %3173 }
 0xb2d   :  { %v3176_v57 = vmul.f32 0.125, %v3174_v16 }
 0xb30   :  { %v3180_v0 = vpop.xlane.xlu0 %3179 }
 0xb31   :  { %v3181_v13 = vmul.f32 0.125, %v3180_v0 }
 0xb33   :  { %v3182_v21 = vsel %vm2878_vm15, %v3176_v57, %v3181_v13  ;;  %v3807_v13 = vld [vmem:[%s7290_s13 + $0x40] sm:$0xff] }
 0xb34   :  { %4415 = vmatpush3.msk.msra.mxu1 %vm2861_vm13, %v3182_v21  ;;  %v3271_v28 = vpop.permute.xlu0 %3270 }
 0xb35   :  { %4417 = vmatmul.mubr.msk.f32.vlgmr.msra.gmra.mxu1 %vm2880_vm0, %v7006_v1  ;;  %4419 = vmatprep.subr.mxu1 %v4561_v33 }
 0xb36   :  { %4421 = vmatprep.mubr.msk.f32.mxu1 %vm4562_vm5, %v4561_v33 }
 0xb3c   :  { %v3282_v7 = vpop.permute.xlu0 %3281 }
 0xbf5   :  { %v3252_v63 = vpop.f32.mrf.mxu1 }
 0xbf6   :  { %v3256_v22 = vmul.f32 %v3252_v63, %v3252_v63 }
 0xbf7   :  { %v4418_v23 = vpop.f32.mrf.mxu1 }
 0xbf8   :  { %3258 = vrot.lane.b32.xlu1 %v3256_v22, %s4564_s21  ;;  %s4571_s21 = smov 32   ;;  %v4158_v22 = vld [vmem:[%s7292_s15 + $0x2] sm:$0x3] }
 0xbf9   :  { %v3925_v23 = vld [vmem:[%s7291_s14 + $0x20] sm:$0xff] }
 0xbfc   :  { %3266 = vperm.xlu1 %4496, %v3252_v63  }
 0xc00   :  { %4497 = vset.pattern.permute.xlu1 %v4565_v20  ;;  %v3285_v20 = vld [vmem:[%s7289_s12] sm:$0x3] }
 0xc6a   :  { %v3259_v1 = vpop.permute.xlu1 %3258 }
 0xc6b   :  { %v3261_v26 = vsub.f32 %v3252_v63, %v3259_v1  ;;  %v3806_v63 = vld [vmem:[%s7290_s13 + $0x38] sm:$0xff]  ;;  %v3923_v1 = vld [vmem:[%s7291_s14 + $0x10] sm:$0xff] }
 0xc6d   :  { %v3262_v27 = vadd.f32 1e-05, %v3261_v26 }
 0xc6f   :  { %4527 = vrsqrt.f32 %v3262_v27 }
 0xc77   :  { %v3267_v9 = vpop.permute.xlu1 %3266 }
 0xc78   :  { %v3269_v29 = vsub.f32 %v3170_v11, %v3267_v9  ;;  %v3725_v11 = vld [vmem:[%s7290_s13 + $0x28] sm:$0xff] }
 0xc7c   :  { %v4528_v58 = vpop.eup %4527 }
 0xc7d   :  { %v3273_v5 = vmul.f32 %v4528_v58, %v3271_v28  ;;  %v4161_v28 = vld [vmem:[%s7284_s7 + $0x18] ss:$0 sm:$0xff] }
 0xc7f   :  { %3276 = vperm.xlu1 %4497, %v3273_v5  }
 0xcfa   :  { %v3277_v30 = vpop.permute.xlu1 %3276 }
 0xcfb   :  { %v3279_v31 = vmul.f32 %v3277_v30, %v3269_v29 }
 0xcfd   :  { %v3284_v60 = vadd.f32 %v3282_v7, %v3279_v31  ;;  %v4159_v7 = vld [vmem:[%s7284_s7 + $0x17] ss:$0 sm:$0xff] }
 0xcff   :  { %4420 = vmatpush3.msk.msra.mxu1 %vm2861_vm13, %v3284_v60 }
 0xd00   :  { %4422 = vmatmul.mubr.msk.f32.vlgmr.msra.gmra.mxu1 %vm2880_vm0, %v3285_v20  ;;  %4424 = vmatprep.subr.mxu1 %v4561_v33 }
 0xd01   :  { %4425 = vmatpush3.msk.msra.mxu1 %vm2861_vm13, %v3284_v60  ;;  %4426 = vmatprep.mubr.msk.f32.mxu1 %vm4562_vm5, %v4561_v33 }
 0xd02   :  { %4429 = vmatprep.subr.mxu1 %v4561_v33 }
 0xd04   :  { %4427 = vmatmul.mubr.msk.f32.vlgmr.msra.gmra.mxu1 %vm2880_vm0, %v4148_v55 }
 0xd05   :  { %4430 = vmatpush3.msk.msra.mxu1 %vm2861_vm13, %v3284_v60  ;;  %4431 = vmatprep.mubr.msk.f32.mxu1 %vm4562_vm5, %v4561_v33 }
 0xd06   :  { %4434 = vmatprep.subr.mxu1 %v4561_v33 }
 0xd08   :  { %4432 = vmatmul.mubr.msk.f32.vlgmr.msra.gmra.mxu1 %vm2880_vm0, %v4151_v18 }
 0xd09   :  { %4440 = vmatprep.mubr.msk.f32.mxu1 %vm4562_vm5, %v4561_v33  ;;  %4435 = vmatpush3.msra.mxu1 %v3526_v32 }
 0xd0a   :  { %4436 = vmatprep.subr.mxu1 %v4561_v33 }
 0xd0b   :  { %4437 = vmatpush3.msra.mxu1 %v3525_v34 }
 0xd0c   :  { %4438 = vmatprep.subr.mxu1 %v4561_v33 }
 0xd0d   :  { %4439 = vmatpush3.msra.mxu1 %v3524_v35 }
 0xd0e   :  { %4443 = vmatprep.subr.mxu1 %v4561_v33 }
 0xdc0   :  { %v3358_v12 = vpop.f32.mrf.mxu1 }
 0xdc2   :  { %v4423_v36 = vpop.f32.mrf.mxu1 }
 0xdc4   :  { %v3433_v15 = vpop.f32.mrf.mxu1 }
 0xdc5   :  { %3513 = vrot.lane.b32.xlu1 %v3433_v15, %s4568_s30  ;;  %v3922_v15 = vld [vmem:[%s7291_s14 + $0x8] sm:$0xff] }
 0xdc6   :  { %v4428_v37 = vpop.f32.mrf.mxu1  ;;  %4474 = vmatpush3.msra.mxu0 %v3922_v15 }
 0xdc7   :  { %v3921_v37 = vld [vmem:[%s7291_s14] sm:$0xff]  ;;  %4475 = vmatprep.subr.mxu0 %v4561_v33  ;;  %s4573_s14 = smov [#allocation2]  }
 0xdc8   :  { %v3508_v38 = vpop.f32.mrf.mxu1  ;;  %4476 = vmatpush3.msra.mxu0 %v3921_v37 }
 0xdc9   :  { %3517 = vrot.lane.b32.xlu1 %v3508_v38, %s4569_s18 }
 0xdca   :  { %v4433_v17 = vpop.f32.mrf.mxu1 }
 0xe37   :  { %v3514_v39 = vpop.permute.xlu1 %3513 }
 0xe38   :  { %v3521_v40 = vsel %vm3520_vm6, %v3358_v12, %v3514_v39 }
 0xe3b   :  { %v3518_v41 = vpop.permute.xlu1 %3517 }
 0xe3c   :  { %v7179_v43 = vsel %vm2688_vm12, %v3521_v40, %v3518_v41 }
 0xe3d   :  { %4441 = vmatmul.mubr.msk.f32.vlgmr.msra.gmra.mxu1 %vm3534_vm7, %v7179_v43 }
 0xe3e   :  { %4444 = vmatpush3.msra.mxu1 %v3609_v42  ;;  %4447 = vmatprep.mubr.msk.f32.mxu1 %vm4562_vm5, %v4561_v33 }
 0xe3f   :  { %4445 = vmatprep.subr.mxu1 %v4561_v33 }
 0xe40   :  { %4446 = vmatpush3.msra.mxu1 %v3608_v45 }
 0xe41   :  { %4448 = vmatmul.mubr.msk.f32.vlgmr.msra.gmra.mxu1 %vm2688_vm12, %v3523_v50  ;;  %4450 = vmatprep.subr.mxu1 %v4561_v33 }
 0xe42   :  { %4454 = vmatprep.mubr.msk.f32.mxu1 %vm4562_vm5, %v4561_v33  ;;  %4451 = vmatpush3.msra.mxu1 %v3726_v8 }
 0xe43   :  { %4452 = vmatprep.subr.mxu1 %v4561_v33 }
 0xe44   :  { %4453 = vmatpush3.msra.mxu1 %v3725_v11 }
 0xe45   :  { %4457 = vmatprep.subr.mxu1 %v4561_v33 }
 0xefd   :  { %v3604_v53 = vpop.f32.mrf.mxu1 }
 0xefe   :  { %v3605_v25 = vadd.f32 %v4154_v48, %v3604_v53 }
 0xeff   :  { %v4442_v51 = vpop.f32.mrf.mxu1 }
 0xf01   :  { %v3686_v54 = vpop.f32.mrf.mxu1 }
 0xf02   :  { %v3687_v47 = vadd.f32 %v4156_v52, %v3686_v54 }
 0xf03   :  { %v4449_v10 = vpop.f32.mrf.mxu1 }
 0xf04   :  { %3696 = vrot.lane.b32.xlu0 %v3687_v47, %s4570_s11  ;;  %v3690_v59 = vadd.f32 %v3687_v47, %v3605_v25 }
 0xf06   :  { %v3691_v61 = vmul.f32 0.5, %v3690_v59 }
 0xf08   :  { %4529 = vtanh.f32 %v3691_v61 }
 0xf15   :  { %v4530_v24 = vpop.eup %4529 }
 0xf16   :  { %v3693_v49 = vadd.f32 1.0, %v4530_v24 }
 0xf18   :  { %v3694_v62 = vmul.f32 0.5, %v3693_v49 }
 0xf1a   :  { %v3706_v44 = vsub.f32 1.0, %v3694_v62 }
 0xf76   :  { %v3697_v2 = vpop.permute.xlu0 %3696 }
 0xf77   :  { %v3699_v3 = vmul.f32 %v3697_v2, %v3694_v62 }
 0xf79   :  { %3701 = vrot.lane.b32.xlu1 %v3699_v3, %s4571_s21 }
 0xf7d   :  { %3712 = vrot.lane.b32.xlu1 %v3523_v50, %s4569_s18 }
 0xfeb   :  { %v3702_v4 = vpop.permute.xlu1 %3701 }
 0xfec   :  { %v3704_v6 = vadd.f32 %v3702_v4, %v3605_v25 }
 0xfee   :  { %4531 = vtanh.f32 %v3704_v6 }
 0xfef   :  { %v3713_v14 = vpop.permute.xlu1 %3712 }
 0xff0   :  { %v3715_v16 = vmul.f32 %v3713_v14, %v3694_v62 }
 0xffb   :  { %v4532_v56 = vpop.eup %4531 }
 0xffc   :  { %3708 = vrot.lane.b32.xlu0 %v4532_v56, %s4572_s27 }
0x106e   :  { %v3709_v46 = vpop.permute.xlu0 %3708 }
0x106f   :  { %v3711_v0 = vmul.f32 %v3709_v46, %v3706_v44 }
0x1071   :  { %v3716_v57 = vadd.f32 %v3715_v16, %v3711_v0 }
0x1073   :  { %3718 = vrot.lane.b32.xlu0 %v3716_v57, %s4572_s27 }
0x10e5   :  { %v3719_v21 = vpop.permute.xlu0 %3718 }
0x10e6   :  { %4455 = vmatmul.mubr.msk.f32.vlgmr.msra.gmra.mxu1 %vm2688_vm12, %v3719_v21  ;;  %3722 = vst.msk [vmem:[#allocation2] sm:$0x3] %vm3721_vm8, %v3719_v21 }
0x10e7   :  { %4458 = vmatpush3.msra.mxu1 %v3807_v13  ;;  %4461 = vmatprep.mubr.msk.f32.mxu1 %vm4562_vm5, %v4561_v33 }
0x10e8   :  { %4459 = vmatprep.subr.mxu1 %v4561_v33 }
0x10e9   :  { %4460 = vmatpush3.msra.mxu1 %v3806_v63 }
0x10ea   :  { %4464 = vmatprep.subr.mxu1 %v4561_v33  ;;  %4462 = vmatmul.mubr.msk.f32.vlgmr.msra.gmra.mxu1 %vm2688_vm12, %v4158_v22 }
0x10eb   :  { %4465 = vmatpush3.msra.mxu1 %v3925_v23  ;;  %4470 = vmatprep.mubr.msk.f32.mxu1 %vm4562_vm5, %v4561_v33 }
0x10ec   :  { %4466 = vmatprep.subr.mxu1 %v4561_v33 }
0x10ed   :  { %4467 = vmatpush3.msra.mxu1 %v3924_v19 }
0x10ee   :  { %4468 = vmatprep.subr.mxu1 %v4561_v33 }
0x10ef   :  { %4469 = vmatpush3.msra.mxu1 %v3923_v1 }
0x10f0   :  { %4471 = vmatmul.mubr.msk.f32.vlgmr.msra.gmra.mxu1 %vm3534_vm7, %v7179_v43 }
0x11a6   :  { %v3802_v26 = vpop.f32.mrf.mxu1 }
0x11a7   :  { %v3803_v31 = vadd.f32 %v4159_v7, %v3802_v26 }
0x11a8   :  { %v4456_v27 = vpop.f32.mrf.mxu1 }
0x11aa   :  { %v3884_v58 = vpop.f32.mrf.mxu1 }
0x11ab   :  { %v3885_v5 = vadd.f32 %v4161_v28, %v3884_v58 }
0x11ac   :  { %v4463_v9 = vpop.f32.mrf.mxu1 }
0x11ad   :  { %3894 = vrot.lane.b32.xlu1 %v3885_v5, %s4570_s11  ;;  %v3888_v60 = vadd.f32 %v3885_v5, %v3803_v31 }
0x11af   :  { %v3889_v20 = vmul.f32 0.5, %v3888_v60 }
0x11b0   :  { %v3992_v29 = vpop.f32.mrf.mxu1 }
0x11b1   :  { %4533 = vtanh.f32 %v3889_v20 }
0x11b2   :  { %v4472_v30 = vpop.f32.mrf.mxu1 }
0x11be   :  { %v4534_v55 = vpop.eup %4533 }
0x11bf   :  { %v3891_v18 = vadd.f32 1.0, %v4534_v55 }
0x11c1   :  { %v3892_v32 = vmul.f32 0.5, %v3891_v18 }
0x11c3   :  { %v3904_v39 = vsub.f32 1.0, %v3892_v32 }
0x121f   :  { %v3895_v34 = vpop.permute.xlu1 %3894 }
0x1220   :  { %v3897_v35 = vmul.f32 %v3895_v34, %v3892_v32 }
0x1222   :  { %3899 = vrot.lane.b32.xlu0 %v3897_v35, %s4571_s21 }
0x1226   :  { %3910 = vrot.lane.b32.xlu0 %v4158_v22, %s4569_s18  ;;  %s4089_s18 = sshll.u32 %s4573_s14, 4  ;;  %s4090_s18 = int_to_ptr.vmem [resolvable:$true] %s4089_s18 }
0x1227   :  { %s4539_s25 = scalar_lea.vmem %s4090_s18, 64  ;;  %p4544_p1 = scmp.lt.s32.totalorder %s4090_s18, %s4090_s18 }
0x1228   :  { %p4540_p0 = scmp.ne.s32.totalorder %s4090_s18, %s4539_s25  ;;  %p4545_p2 = scmp.lt.s32.totalorder %s4539_s25, %s4539_s25 }
0x122a   :  { %p4546_p3 = por %p4545_p2, %p4544_p1 }
0x122c   :  { %p4547_p4 = pnand %p4546_p3, %p4540_p0 }
0x1294   :  { %v3900_v12 = vpop.permute.xlu0 %3899 }
0x1295   :  { %v3902_v36 = vadd.f32 %v3900_v12, %v3803_v31 }
0x1297   :  { %4535 = vtanh.f32 %v3902_v36 }
0x1298   :  { %v3911_v17 = vpop.permute.xlu0 %3910 }
0x1299   :  { %v3913_v41 = vmul.f32 %v3911_v17, %v3892_v32 }
0x12a4   :  { %v4536_v38 = vpop.eup %4535 }
0x12a5   :  { %3906 = vrot.lane.b32.xlu1 %v4536_v38, %s4572_s27 }
0x1317   :  { %v3907_v40 = vpop.permute.xlu1 %3906 }
0x1318   :  { %v3909_v42 = vmul.f32 %v3907_v40, %v3904_v39 }
0x131a   :  { %v3914_v43 = vadd.f32 %v3913_v41, %v3909_v42 }
0x131c   :  { %3916 = vrot.lane.b32.xlu1 %v3914_v43, %s4572_s27 }
0x138e   :  { %v3917_v45 = vpop.permute.xlu1 %3916 }
0x138f   :  { %3920 = vst.msk [vmem:[#allocation2 + $0x2] sm:$0x3] %vm3721_vm8, %v3917_v45  ;;  %4478 = vmatmul.mubr.msk.f32.vlgmr.msra.gmra.mxu0 %vm2688_vm12, %v3917_v45 }
0x1390   :  { %4550 = shalt.err (!%p4547_p4)
}
0x1391   :  { %s4574_s6 = smov 2   ;;  %v4165_v50 = vld [vmem:[%s7284_s7 + $0x14] ss:$0 sm:$0xff]  ;;  %vm4080_vm5 = vcmask 1024  }
0x1392   :  { %4095 = dma.vmem_to_hbm [thread:$0]  %s4090_s18, 64, %s7294_s17, [#allocation3], %s4571_s21, %s4571_s21, %s4574_s6  }
0x144f   :  { %v4064_v33 = vpop.f32.mrf.mxu0 }
0x1450   :  { %v4065_v53 = vadd.f32 %v4064_v33, %v3992_v29 }
0x1451   :  { %v4479_v51 = vpop.f32.mrf.mxu0 }
0x1452   :  { %v4075_v52 = vadd.f32 %v4165_v50, %v4065_v53 }
0x1454   :  { %v4076_v54 = vmul.f32 0.5, %v4075_v52 }
0x1456   :  { %4537 = vtanh.f32 %v4076_v54 }
0x1463   :  { %v4538_v47 = vpop.eup %4537 }
0x1464   :  { %v4078_v10 = vadd.f32 1.0, %v4538_v47 }
0x1466   :  { %v4079_v48 = vmul.f32 0.5, %v4078_v10 }
0x1468   :  { %4081 = vst.msk [vmem:[%s7293_s16] sm:$0x3] %vm4080_vm5, %v4079_v48 }
0x1469   :  { %4559 = dma.done.wait [#allocation3], 64  }
0x146a   :  { %4560 = vsyncadd [#allocation3], 4294967232 }
0x146b   :  { %4101 = vsyncpa [#allocation3], 1 }

</bundles_post_ra>
